<compile_context>
chip_gen: v5e
topology: v5e:2x2
jax: 0.10.0
libtpu: 0.0.40
codegen_flags: <defaults>
</compile_context>

<pallas_src>
import jax
import jax.numpy as jnp
from jax import lax
from jax.experimental import pallas as pl
from jax.experimental.pallas import tpu as pltpu

EPS = 1e-5  # torch.nn.LayerNorm default eps


def _dot(h, w_ref, b_ref):
    """h[TN,K] (f32) @ W[K,M] + b, f32 accumulation on the MXU.

    Weights arrive pre-transposed ([K,M], contraction (((1,),(0,)),((),())),
    no trans_b) and pre-cast to the MXU operand dtype by the wrapper, so the
    kernel body does no per-step transpose and no per-step weight cast.
    """
    w = w_ref[...]
    y = lax.dot_general(h.astype(w.dtype), w,
                        dimension_numbers=(((1,), (0,)), ((), ())),
                        preferred_element_type=jnp.float32)
    return y + b_ref[...].astype(jnp.float32)


def _layer_norm(v, gamma, beta):
    # Two-pass (centered) stats: numerically stable; reductions go to the XLU,
    # rsqrt to the EUP. One-pass E[x^2]-E[x]^2 only pays if VALU-bound.
    mean = jnp.mean(v, axis=-1, keepdims=True)
    c = v - mean
    var = jnp.mean(c * c, axis=-1, keepdims=True)       # biased, like torch
    return c * lax.rsqrt(var + EPS) * gamma + beta


def _mlp_kernel(x_ref, wf_ref, bf_ref, wc_ref, bc_ref,
                g_ref, bt_ref, wl_ref, bl_ref, o_ref):
    # Hoist LN param broadcasts once per row tile (f32).
    gamma = g_ref[...].astype(jnp.float32)
    beta = bt_ref[...].astype(jnp.float32)

    # Fused node_encoder + layers[0].conv (single matmul, see wrapper).
    x = _dot(x_ref[...], wf_ref, bf_ref)                 # [TN, H] f32

    # AdaGNN layer 0 (unfixed): h = dropout(relu(LN(x))); x = conv0(h) + x
    # dropout(p=0.5) is identity at inference.
    h = jnp.maximum(_layer_norm(x, gamma, beta), 0.0)
    x = _dot(h, wc_ref, bc_ref) + x                      # residual

    # layers[1:] are fixed -> identity.
    # TODO(synk): if more layers are unfix()'d, apply their (conv, norm)
    # blocks here with per-layer weights; training-mode dropout (p>0) would
    # need pltpu.prng_seed / pltpu.prng_random_bits.

    # Tail: LN -> ReLU -> dropout(0.1, eval=identity) -> Linear(H, C_out)
    h = jnp.maximum(_layer_norm(x, gamma, beta), 0.0)
    o_ref[...] = _dot(h, wl_ref, bl_ref).astype(o_ref.dtype)


def _round_up(v, m):
    return ((v + m - 1) // m) * m


def _vmem_capacity_bytes():
    """Generation-aware physical VMEM (64 MiB on v7x, 128 MiB on v5e/v6e)."""
    try:
        cap = getattr(pltpu.get_tpu_info(), "vmem_capacity_bytes", None)
        if cap:
            return int(cap)
    except Exception:
        pass
    return 64 << 20  # conservative fallback = v7x per-TensorCore VMEM


def mlp_forward(x, we, be, wc, bc, gamma, beta, wl, bl, *,
                row_tile=1024, mxu_bf16=True):
    """x: [N, C_in]; we: [H, C_in]; wc: [H, H]; wl: [C_out, H] (torch layouts).

    mxu_bf16=True (default) feeds bf16 operands to the MXU with f32
    accumulation (the fast path on all generations, ~3x fewer MXU passes than
    emulated f32); set False for strict-f32 matmul operands.
    """
    N, C_in = x.shape
    H = wc.shape[0]
    C_out = wl.shape[0]
    assert we.shape == (H, C_in) and wc.shape == (H, H) and wl.shape == (C_out, H)

    compute_dtype = jnp.bfloat16 if mxu_bf16 else jnp.float32

    # ---- one-time weight preprocessing (wrapper side, f32 HIGHEST) ----------
    # Fuse node_encoder + layers[0].conv:  x@We^T+be then @Wc^T+bc
    #   == x @ (Wc@We)^T + (Wc@be + bc)
    P = lax.Precision.HIGHEST
    wf = jnp.dot(wc.astype(jnp.float32), we.astype(jnp.float32), precision=P)
    bf = jnp.dot(wc.astype(jnp.float32), be.astype(jnp.float32), precision=P) \
        + bc.astype(jnp.float32)
    # Pre-transpose every weight to [K, M] (no trans_b / per-step transpose)
    # and pre-cast to the MXU operand dtype.
    wf_t = wf.T.astype(compute_dtype)                    # [C_in, H]
    wc_t = wc.T.astype(compute_dtype)                    # [H, H]
    wl_t = wl.T.astype(compute_dtype)                    # [H, C_out]
    # Biases / LN params stay f32 (bias add and LN math are f32 in-kernel).
    bf2 = bf.reshape(1, H)
    bc2 = bc.astype(jnp.float32).reshape(1, H)
    g2 = gamma.astype(jnp.float32).reshape(1, H)
    bt2 = beta.astype(jnp.float32).reshape(1, H)
    bl2 = bl.astype(jnp.float32).reshape(1, C_out)
    # TODO(synk): optionally zero-pad C_in to 128 (fold into wf_t) to make the
    # first matmul's K pass lane-dense; marginal at these sizes.

    # ---- row tile / grid ----------------------------------------------------
    # Keep >= 4 grid steps (>= 2 per TensorCore on v7x) so input/output DMA
    # overlaps compute and both cores stay busy; cap at row_tile.
    MIN_GRID_STEPS = 4
    if N <= 8:
        tn = N                                           # full-array block
    else:
        tn = min(row_tile, max(8, _round_up(pl.cdiv(N, MIN_GRID_STEPS), 8)))
    grid = (pl.cdiv(N, tn),)

    def resident(shape):
        # Constant-index blocks: weights/params stay in VMEM across the grid.
        # (pipeline_mode=pl.Buffered(1) would halve their footprint; negligible
        #  at these sizes, so skipped for portability.)
        return pl.BlockSpec(shape, lambda i: (0,) * len(shape))

    # ---- cost estimate (advisory) -------------------------------------------
    x_itemsize = int(jnp.dtype(x.dtype).itemsize)
    resident_arrays = (wf_t, bf2, wc_t, bc2, g2, bt2, wl_t, bl2)
    resident_bytes = sum(int(a.size) * int(jnp.dtype(a.dtype).itemsize)
                         for a in resident_arrays)
    flops = 2 * N * (C_in * H + H * H + H * C_out)
    bytes_accessed = N * (C_in + C_out) * x_itemsize + resident_bytes
    cost = pl.CostEstimate(flops=int(flops), transcendentals=0,
                           bytes_accessed=int(bytes_accessed))

    # ---- VMEM budget ---------------------------------------------------------
    # resident blocks are double-buffered by default; x/out tiles are
    # double-buffered; plus the live f32 intermediates the body materializes.
    io_bytes = 2 * tn * (C_in + C_out) * x_itemsize
    interm_bytes = 4 * tn * H * 4
    vmem_needed = 2 * resident_bytes + io_bytes + interm_bytes
    vmem_cap = int(0.8 * _vmem_capacity_bytes())
    vmem_limit = min(max(32 << 20, int(1.25 * vmem_needed) + (4 << 20)), vmem_cap)

    return pl.pallas_call(
        _mlp_kernel,
        out_shape=jax.ShapeDtypeStruct((N, C_out), x.dtype),
        grid_spec=pltpu.PrefetchScalarGridSpec(
            num_scalar_prefetch=0,
            grid=grid,
            in_specs=[
                pl.BlockSpec((tn, C_in), lambda i: (i, 0)),   # x, pipelined
                resident((C_in, H)), resident((1, H)),        # fused enc+conv
                resident((H, H)), resident((1, H)),           # layers[0].conv
                resident((1, H)), resident((1, H)),           # LN gamma/beta
                resident((H, C_out)), resident((1, C_out)),   # final lin
            ],
            out_specs=pl.BlockSpec((tn, C_out), lambda i: (i, 0)),
        ),
        compiler_params=pltpu.CompilerParams(
            dimension_semantics=("parallel",),                # rows independent
            vmem_limit_bytes=vmem_limit),
        cost_estimate=cost,
    )(x, wf_t, bf2, wc_t, bc2, g2, bt2, wl_t, bl2)


def _reference(x, we, be, wc, bc, gamma, beta, wl, bl):
    """Pure-JAX f32 reference of the torch forward (eval mode)."""
    P = lax.Precision.HIGHEST

    def lin(h, w, b):
        return jnp.dot(h, w.T, precision=P) + b

    def ln(v):
        m = jnp.mean(v, axis=-1, keepdims=True)
        var = jnp.mean((v - m) ** 2, axis=-1, keepdims=True)
        return (v - m) / jnp.sqrt(var + EPS) * gamma + beta

    x = lin(x, we, be)
    x = lin(x, wc, bc)
    h = jnp.maximum(ln(x), 0.0)
    x = lin(h, wc, bc) + x
    h = jnp.maximum(ln(x), 0.0)
    return lin(h, wl, bl)


if __name__ == "__main__":
    key = jax.random.PRNGKey(0)
    k_x, k_we, k_be, k_wc, k_bc, k_wl, k_bl = jax.random.split(key, 7)

    # Small but lane-dense shapes: N nodes, C_in=64 -> H=128 hidden -> C_out=128.
    N, C_IN, H, C_OUT = 1024, 64, 128, 128
    x = jax.random.normal(k_x, (N, C_IN), dtype=jnp.float32)

    def lin_init(kw, kb, fan_out, fan_in):
        bound = 1.0 / jnp.sqrt(fan_in)
        w = jax.random.uniform(kw, (fan_out, fan_in), jnp.float32, -bound, bound)
        b = jax.random.uniform(kb, (fan_out,), jnp.float32, -bound, bound)
        return w, b

    we, be = lin_init(k_we, k_be, H, C_IN)      # node_encoder
    wc, bc = lin_init(k_wc, k_bc, H, H)         # layers[0].conv
    wl, bl = lin_init(k_wl, k_bl, C_OUT, H)     # final lin
    gamma = jnp.ones((H,), jnp.float32)         # LayerNorm defaults
    beta = jnp.zeros((H,), jnp.float32)

    ref = _reference(x, we, be, wc, bc, gamma, beta, wl, bl)

    # 1) Strict-f32 MXU path: tight semantic check against the torch-equivalent
    #    f32 reference.
    out_f32 = mlp_forward(x, we, be, wc, bc, gamma, beta, wl, bl,
                          row_tile=1024, mxu_bf16=False)
    out_f32 = jax.block_until_ready(out_f32)
    assert out_f32.shape == (N, C_OUT) and out_f32.dtype == x.dtype
    err_f32 = jnp.max(jnp.abs(out_f32 - ref))
    assert jnp.allclose(out_f32, ref, atol=5e-3, rtol=5e-3), \
        f"f32 path mismatch vs reference: {err_f32}"

    # 2) Default perf path: bf16 MXU operands with f32 accumulation. Activation
    #    quantization (two LayerNorms amplify it) needs a wider tolerance vs
    #    the f32 HIGHEST-precision reference; this is standard for inference.
    out_bf16 = mlp_forward(x, we, be, wc, bc, gamma, beta, wl, bl,
                           row_tile=1024, mxu_bf16=True)
    out_bf16 = jax.block_until_ready(out_bf16)
    assert out_bf16.shape == (N, C_OUT) and out_bf16.dtype == x.dtype
    err_bf16 = jnp.max(jnp.abs(out_bf16 - ref))
    assert jnp.allclose(out_bf16, ref, atol=1e-1, rtol=5e-2), \
        f"bf16 path mismatch vs reference: {err_bf16}"

    print("KERNEL_OK")
</pallas_src>

<mosaic_0001>
module attributes {stable_mosaic.version = 11 : i64} {
  func.func @_mlp_kernel(%arg0: i32, %arg1: memref<256x64xf32, #tpu.memory_space<vmem>>, %arg2: memref<64x128xf32, #tpu.memory_space<vmem>>, %arg3: memref<1x128xf32, #tpu.memory_space<vmem>>, %arg4: memref<128x128xf32, #tpu.memory_space<vmem>>, %arg5: memref<1x128xf32, #tpu.memory_space<vmem>>, %arg6: memref<1x128xf32, #tpu.memory_space<vmem>>, %arg7: memref<1x128xf32, #tpu.memory_space<vmem>>, %arg8: memref<128x128xf32, #tpu.memory_space<vmem>>, %arg9: memref<1x128xf32, #tpu.memory_space<vmem>>, %arg10: memref<256x128xf32, #tpu.memory_space<vmem>>) attributes {dimension_semantics = [#tpu.dimension_semantics<parallel>], iteration_bounds = array<i64: 4>, scalar_prefetch = 0 : i64, scratch_operands = 0 : i64, tpu.core_type = #tpu.core_type<tc>, window_params = [{transform_indices = @transform_0, window_bounds = array<i64: 256, 64>}, {pipeline_mode = #tpu.pipeline_mode<synchronous>, transform_indices = @transform_1, window_bounds = array<i64: 64, 128>}, {pipeline_mode = #tpu.pipeline_mode<synchronous>, transform_indices = @transform_2, window_bounds = array<i64: 1, 128>}, {pipeline_mode = #tpu.pipeline_mode<synchronous>, transform_indices = @transform_3, window_bounds = array<i64: 128, 128>}, {pipeline_mode = #tpu.pipeline_mode<synchronous>, transform_indices = @transform_4, window_bounds = array<i64: 1, 128>}, {pipeline_mode = #tpu.pipeline_mode<synchronous>, transform_indices = @transform_5, window_bounds = array<i64: 1, 128>}, {pipeline_mode = #tpu.pipeline_mode<synchronous>, transform_indices = @transform_6, window_bounds = array<i64: 1, 128>}, {pipeline_mode = #tpu.pipeline_mode<synchronous>, transform_indices = @transform_7, window_bounds = array<i64: 128, 128>}, {pipeline_mode = #tpu.pipeline_mode<synchronous>, transform_indices = @transform_8, window_bounds = array<i64: 1, 128>}, {transform_indices = @transform_9, window_bounds = array<i64: 256, 128>}]} {
    %c0 = arith.constant 0 : index
    %c0_0 = arith.constant 0 : index
    %0 = vector.load %arg6[%c0, %c0_0] : memref<1x128xf32, #tpu.memory_space<vmem>>, vector<1x128xf32>
    %c0_1 = arith.constant 0 : index
    %c0_2 = arith.constant 0 : index
    %1 = vector.load %arg7[%c0_1, %c0_2] : memref<1x128xf32, #tpu.memory_space<vmem>>, vector<1x128xf32>
    %c0_3 = arith.constant 0 : index
    %c0_4 = arith.constant 0 : index
    %2 = vector.load %arg1[%c0_3, %c0_4] : memref<256x64xf32, #tpu.memory_space<vmem>>, vector<256x64xf32>
    %c0_5 = arith.constant 0 : index
    %c0_6 = arith.constant 0 : index
    %3 = vector.load %arg2[%c0_5, %c0_6] : memref<64x128xf32, #tpu.memory_space<vmem>>, vector<64x128xf32>
    %cst = arith.constant dense<0.000000e+00> : vector<256x128xf32>
    %4 = tpu.matmul %2, %3, %cst {dimension_numbers = #tpu.dot_dimension_numbers<[1], [0], [0], [1], [0, 0, 1, 1], [], []>} : vector<256x64xf32>, vector<64x128xf32>, vector<256x128xf32> -> vector<256x128xf32>
    %c0_7 = arith.constant 0 : index
    %c0_8 = arith.constant 0 : index
    %5 = vector.load %arg3[%c0_7, %c0_8] : memref<1x128xf32, #tpu.memory_space<vmem>>, vector<1x128xf32>
    %6 = vector.broadcast %5 : vector<1x128xf32> to vector<256x128xf32>
    %7 = arith.addf %4, %6 : vector<256x128xf32>
    %cst_9 = arith.constant dense<0.000000e+00> : vector<256xf32>
    %8 = vector.multi_reduction <add>, %7, %cst_9 [1] : vector<256x128xf32> to vector<256xf32>
    %9 = vector.shape_cast %8 : vector<256xf32> to vector<256x1xf32>
    %cst_10 = arith.constant 1.280000e+02 : f32
    %10 = vector.broadcast %cst_10 : f32 to vector<256x1xf32>
    %11 = arith.divf %9, %10 : vector<256x1xf32>
    %12 = vector.broadcast %11 : vector<256x1xf32> to vector<256x128xf32>
    %13 = arith.subf %7, %12 : vector<256x128xf32>
    %14 = arith.mulf %13, %13 : vector<256x128xf32>
    %cst_11 = arith.constant dense<0.000000e+00> : vector<256xf32>
    %15 = vector.multi_reduction <add>, %14, %cst_11 [1] : vector<256x128xf32> to vector<256xf32>
    %16 = vector.shape_cast %15 : vector<256xf32> to vector<256x1xf32>
    %cst_12 = arith.constant 1.280000e+02 : f32
    %17 = vector.broadcast %cst_12 : f32 to vector<256x1xf32>
    %18 = arith.divf %16, %17 : vector<256x1xf32>
    %cst_13 = arith.constant 9.99999974E-6 : f32
    %19 = vector.broadcast %cst_13 : f32 to vector<256x1xf32>
    %20 = arith.addf %18, %19 : vector<256x1xf32>
    %21 = math.rsqrt %20 : vector<256x1xf32>
    %22 = vector.broadcast %21 : vector<256x1xf32> to vector<256x128xf32>
    %23 = arith.mulf %13, %22 : vector<256x128xf32>
    %24 = vector.broadcast %0 : vector<1x128xf32> to vector<256x128xf32>
    %25 = arith.mulf %23, %24 : vector<256x128xf32>
    %26 = vector.broadcast %1 : vector<1x128xf32> to vector<256x128xf32>
    %27 = arith.addf %25, %26 : vector<256x128xf32>
    %cst_14 = arith.constant 0.000000e+00 : f32
    %28 = vector.broadcast %cst_14 : f32 to vector<256x128xf32>
    %29 = arith.maximumf %27, %28 : vector<256x128xf32>
    %c0_15 = arith.constant 0 : index
    %c0_16 = arith.constant 0 : index
    %30 = vector.load %arg4[%c0_15, %c0_16] : memref<128x128xf32, #tpu.memory_space<vmem>>, vector<128x128xf32>
    %cst_17 = arith.constant dense<0.000000e+00> : vector<256x128xf32>
    %31 = tpu.matmul %29, %30, %cst_17 {dimension_numbers = #tpu.dot_dimension_numbers<[1], [0], [0], [1], [0, 0, 1, 1], [], []>} : vector<256x128xf32>, vector<128x128xf32>, vector<256x128xf32> -> vector<256x128xf32>
    %c0_18 = arith.constant 0 : index
    %c0_19 = arith.constant 0 : index
    %32 = vector.load %arg5[%c0_18, %c0_19] : memref<1x128xf32, #tpu.memory_space<vmem>>, vector<1x128xf32>
    %33 = vector.broadcast %32 : vector<1x128xf32> to vector<256x128xf32>
    %34 = arith.addf %31, %33 : vector<256x128xf32>
    %35 = arith.addf %34, %7 : vector<256x128xf32>
    %cst_20 = arith.constant dense<0.000000e+00> : vector<256xf32>
    %36 = vector.multi_reduction <add>, %35, %cst_20 [1] : vector<256x128xf32> to vector<256xf32>
    %37 = vector.shape_cast %36 : vector<256xf32> to vector<256x1xf32>
    %cst_21 = arith.constant 1.280000e+02 : f32
    %38 = vector.broadcast %cst_21 : f32 to vector<256x1xf32>
    %39 = arith.divf %37, %38 : vector<256x1xf32>
    %40 = vector.broadcast %39 : vector<256x1xf32> to vector<256x128xf32>
    %41 = arith.subf %35, %40 : vector<256x128xf32>
    %42 = arith.mulf %41, %41 : vector<256x128xf32>
    %cst_22 = arith.constant dense<0.000000e+00> : vector<256xf32>
    %43 = vector.multi_reduction <add>, %42, %cst_22 [1] : vector<256x128xf32> to vector<256xf32>
    %44 = vector.shape_cast %43 : vector<256xf32> to vector<256x1xf32>
    %cst_23 = arith.constant 1.280000e+02 : f32
    %45 = vector.broadcast %cst_23 : f32 to vector<256x1xf32>
    %46 = arith.divf %44, %45 : vector<256x1xf32>
    %cst_24 = arith.constant 9.99999974E-6 : f32
    %47 = vector.broadcast %cst_24 : f32 to vector<256x1xf32>
    %48 = arith.addf %46, %47 : vector<256x1xf32>
    %49 = math.rsqrt %48 : vector<256x1xf32>
    %50 = vector.broadcast %49 : vector<256x1xf32> to vector<256x128xf32>
    %51 = arith.mulf %41, %50 : vector<256x128xf32>
    %52 = vector.broadcast %0 : vector<1x128xf32> to vector<256x128xf32>
    %53 = arith.mulf %51, %52 : vector<256x128xf32>
    %54 = vector.broadcast %1 : vector<1x128xf32> to vector<256x128xf32>
    %55 = arith.addf %53, %54 : vector<256x128xf32>
    %cst_25 = arith.constant 0.000000e+00 : f32
    %56 = vector.broadcast %cst_25 : f32 to vector<256x128xf32>
    %57 = arith.maximumf %55, %56 : vector<256x128xf32>
    %c0_26 = arith.constant 0 : index
    %c0_27 = arith.constant 0 : index
    %58 = vector.load %arg8[%c0_26, %c0_27] : memref<128x128xf32, #tpu.memory_space<vmem>>, vector<128x128xf32>
    %cst_28 = arith.constant dense<0.000000e+00> : vector<256x128xf32>
    %59 = tpu.matmul %57, %58, %cst_28 {dimension_numbers = #tpu.dot_dimension_numbers<[1], [0], [0], [1], [0, 0, 1, 1], [], []>} : vector<256x128xf32>, vector<128x128xf32>, vector<256x128xf32> -> vector<256x128xf32>
    %c0_29 = arith.constant 0 : index
    %c0_30 = arith.constant 0 : index
    %60 = vector.load %arg9[%c0_29, %c0_30] : memref<1x128xf32, #tpu.memory_space<vmem>>, vector<1x128xf32>
    %61 = vector.broadcast %60 : vector<1x128xf32> to vector<256x128xf32>
    %62 = arith.addf %59, %61 : vector<256x128xf32>
    %c0_31 = arith.constant 0 : index
    %c0_32 = arith.constant 0 : index
    %63 = vector.load %arg10[%c0_31, %c0_32] : memref<256x128xf32, #tpu.memory_space<vmem>>, vector<256x128xf32>
    tpu.vector_store %arg10[%c0_31, %c0_32], %62 {strides = array<i32>} : memref<256x128xf32, #tpu.memory_space<vmem>>, vector<256x128xf32>,
    return
  }
  func.func @transform_0(%arg0: i32) -> (i32, i32) {
    %c0_i32 = arith.constant 0 : i32
    %c0_i32_0 = arith.constant 0 : i32
    return %arg0, %c0_i32 : i32, i32
  }
  func.func @transform_1(%arg0: i32) -> (i32, i32) {
    %c0_i32 = arith.constant 0 : i32
    %c0_i32_0 = arith.constant 0 : i32
    %c0_i32_1 = arith.constant 0 : i32
    return %c0_i32, %c0_i32_0 : i32, i32
  }
  func.func @transform_2(%arg0: i32) -> (i32, i32) {
    %c0_i32 = arith.constant 0 : i32
    %c0_i32_0 = arith.constant 0 : i32
    %c0_i32_1 = arith.constant 0 : i32
    return %c0_i32, %c0_i32_0 : i32, i32
  }
  func.func @transform_3(%arg0: i32) -> (i32, i32) {
    %c0_i32 = arith.constant 0 : i32
    %c0_i32_0 = arith.constant 0 : i32
    %c0_i32_1 = arith.constant 0 : i32
    return %c0_i32, %c0_i32_0 : i32, i32
  }
  func.func @transform_4(%arg0: i32) -> (i32, i32) {
    %c0_i32 = arith.constant 0 : i32
    %c0_i32_0 = arith.constant 0 : i32
    %c0_i32_1 = arith.constant 0 : i32
    return %c0_i32, %c0_i32_0 : i32, i32
  }
  func.func @transform_5(%arg0: i32) -> (i32, i32) {
    %c0_i32 = arith.constant 0 : i32
    %c0_i32_0 = arith.constant 0 : i32
    %c0_i32_1 = arith.constant 0 : i32
    return %c0_i32, %c0_i32_0 : i32, i32
  }
  func.func @transform_6(%arg0: i32) -> (i32, i32) {
    %c0_i32 = arith.constant 0 : i32
    %c0_i32_0 = arith.constant 0 : i32
    %c0_i32_1 = arith.constant 0 : i32
    return %c0_i32, %c0_i32_0 : i32, i32
  }
  func.func @transform_7(%arg0: i32) -> (i32, i32) {
    %c0_i32 = arith.constant 0 : i32
    %c0_i32_0 = arith.constant 0 : i32
    %c0_i32_1 = arith.constant 0 : i32
    return %c0_i32, %c0_i32_0 : i32, i32
  }
  func.func @transform_8(%arg0: i32) -> (i32, i32) {
    %c0_i32 = arith.constant 0 : i32
    %c0_i32_0 = arith.constant 0 : i32
    %c0_i32_1 = arith.constant 0 : i32
    return %c0_i32, %c0_i32_0 : i32, i32
  }
  func.func @transform_9(%arg0: i32) -> (i32, i32) {
    %c0_i32 = arith.constant 0 : i32
    %c0_i32_0 = arith.constant 0 : i32
    return %arg0, %c0_i32 : i32, i32
  }
}

</mosaic_0001>

<bundles_post_ra>
// kernel: tpu_custom_call.1
= control target key start
LH: loop header
LB: loop body
LE: loop exit
PB: predicated region body
PF: predicated region fallthrough
CT: control target
= control target key end

     0   :  { %14 = vsyncpa [#allocation3], 0  ;;  %s4812_s0 = inlined_call_operand.vmem [shape: f32[1024,64], index: 0, kind: input, shape index: {}]   ;;  %s4813_s1 = inlined_call_operand.vmem [shape: f32[64,128], index: 1, kind: input, shape index: {}]   ;;  %s4814_s2 = inlined_call_operand.vmem [shape: f32[1,128], index: 2, kind: input, shape index: {}]   ;;  %s4815_s3 = inlined_call_operand.vmem [shape: f32[128,128], index: 3, kind: input, shape index: {}]   ;;  %s4816_s4 = inlined_call_operand.vmem [shape: f32[1,128], index: 4, kind: input, shape index: {}]   ;;  %s4817_s5 = inlined_call_operand.vmem [shape: f32[1,128], index: 5, kind: input, shape index: {}]   ;;  %s4818_s6 = inlined_call_operand.vmem [shape: f32[1,128], index: 6, kind: input, shape index: {}]   ;;  %s4819_s7 = inlined_call_operand.vmem [shape: f32[128,128], index: 7, kind: input, shape index: {}]   ;;  %s4820_s8 = inlined_call_operand.vmem [shape: f32[1,128], index: 8, kind: input, shape index: {}]   ;;  %s4821_s9 = inlined_call_operand.hbm [shape: f32[1024,128], index: 9, kind: output, shape index: {}]  }
   0x1   :  { %16 = vsyncpa [#allocation3 + $0x1], 0  ;;  %s2870_s30 = smov 0   ;;  %s2872_s10 = smov 0  }
   0x2   :  { %s2874_s11 = smov 0   ;;  %s2876_s12 = smov 0  }
   0x3 LB: > { %s2891_s13 = sadd.s32 4294967295, %s2815_s12   ;;  %s2483_s14 = sadd.s32 4294967294, %s2815_s12   ;;  %s2815_s12 = sphi %s2876_s12, %s4910_s12   ;;  %s2811_s11 = sphi %s2874_s11, %s4909_s11   ;;  %s2807_s10 = sphi %s2872_s10, %s4908_s10   ;;  %s2803_s30 = sphi %s2870_s30, %s4907_s30  }
   0x4   : > { %s2895_s15 = sadd.s32 1, %s2815_s12   ;;  %s223_s16 = sadd.s32 1, %s2811_s11 }
   0x5   : > { %s220_s17 = ssub.s32 %s2815_s12, %s2895_s15  ;;  %p233_p0 = scmp.ne.s32.totalorder %s2811_s11, %s2807_s10 }
   0x6   : > { %p221_p1 = scmp.eq.s32.totalorder %s220_s17, 0  ;;  %p234_p2 = scmp.eq.s32.totalorder %s2891_s13, 3 }
   0x7   : > { %p239_p3 = scmp.ne.s32.totalorder %s2807_s10, %s2803_s30  ;;  %p240_p4 = scmp.eq.s32.totalorder %s2483_s14, 3 }
   0x8   : > { %s2906_s18 = scalar_select %p221_p1, %s2811_s11, %s223_s16  }
   0x9   : > { %p2908_p5 = por %p234_p2, %p233_p0  ;;  %p2912_p6 = por %p240_p4, %p239_p3 }
   0xa   : > { %p2486_p7 = scmp.ge.s32.totalorder %s2815_s12, 1  ;;  %p291_p8 = scmp.lt.s32.totalorder %s2815_s12, 5 }
   0xc   : > { %p292_p9 = pnand %p2486_p7, %p291_p8 }
   0xe   : > { %295 = sbr.rel (%p292_p9) target bundleno = 1514 (0x5ea), region = 56 }
  0x13   : > { %v375_v0 = vld [vmem:[%s4813_s1 + $0x38] sm:$0xff]  ;;  %v374_v1 = vld [vmem:[%s4813_s1 + $0x30] sm:$0xff]  ;;  %s2488_s25 = sshll.u32 %s2891_s13, 5  ;;  %v373_v2 = vld [vmem:[%s4813_s1 + $0x28] sm:$0xff]  ;;  %vm380_vm0 = vcmask 523264   ;;  %v2817_v45 = vmov 128.0  }
  0x14   : > { %485 = vmatpush.msra.mxu0 %v375_v0  ;;  %p328_p10 = scmp.lt.s32.totalorder %s2488_s25, 127  ;;  %2528 = vmatpush.msra.mxu3 %v375_v0  ;;  %v372_v3 = vld [vmem:[%s4813_s1 + $0x20] sm:$0xff]  ;;  %v371_v4 = vld [vmem:[%s4813_s1 + $0x18] sm:$0xff]  ;;  %v370_v5 = vld [vmem:[%s4813_s1 + $0x10] sm:$0xff]  ;;  %2615 = vrcp.f32 %v2817_v45  ;;  %s2527_s14 = sshll.u32 %s2891_s13, 8 }
  0x15   : > { %v369_v6 = vld [vmem:[%s4813_s1 + $0x8] sm:$0xff]  ;;  %v368_v7 = vld [vmem:[%s4813_s1] sm:$0xff]  ;;  %v1354_v45 = vld [vmem:[%s4815_s3 + $0x78] sm:$0xff]  ;;  %s2417_s21 = scalar_lea.hbm %s4821_s9, %s2527_s14  ;;  %s2773_s14 = scalar_lea.hbm %s4821_s9, 1024 }
  0x16   : > { %486 = vmatpush.msra.mxu0 %v374_v1  ;;  %s4912_s25 = smov (!%p328_p10, %s2488_s25), 127  ;;  %2529 = vmatpush.msra.mxu3 %v374_v1  ;;  %v2973_v19 = vld [vmem:[%s4814_s2] ss:$0 sm:$0xff]  ;;  %s2420_s24 = sshll.u32 %s2417_s21, 4  ;;  %s2421_s24 = int_to_ptr.hbm [resolvable:$true] %s2420_s24 }
  0x17   : > { %s2489_s17 = sshll.u32 %s4912_s25, 3  ;;  %1359 = vmatpush.msra.mxu1 %v1354_v45  ;;  %s2767_s13 = sshra.s32 %s2421_s24, 4  ;;  %s2768_s13 = int_to_ptr.hbm [resolvable:$true] %s2767_s13 }
  0x18   : > { %487 = vmatpush.msra.mxu0 %v373_v2  ;;  %2530 = vmatpush.msra.mxu3 %v373_v2  ;;  %s2943_s28 = scalar_lea.vmem %s4812_s0, %s2489_s17  ;;  %s2769_s27 = scalar_lea.hbm %s2768_s13, 256 }
  0x19   : > { %v336_v8 = vld [vmem:[%s2943_s28] sm:$0xff]  ;;  %v337_v9 = vld [vmem:[%s2943_s28 + $0x8] sm:$0xff]  ;;  %v338_v10 = vld [vmem:[%s2943_s28 + $0x10] sm:$0xff]  ;;  %p2770_p11 = scmp.ne.s32.totalorder %s2768_s13, %s2769_s27  ;;  %p2774_p0 = scmp.lt.s32.totalorder %s2768_s13, %s4821_s9 }
  0x1a   : > { %488 = vmatpush.msra.mxu0 %v372_v3  ;;  %2531 = vmatpush.msra.mxu3 %v372_v3  ;;  %v339_v11 = vld [vmem:[%s2943_s28 + $0x18] sm:$0xff]  ;;  %v340_v12 = vld [vmem:[%s2943_s28 + $0x20] sm:$0xff]  ;;  %v341_v13 = vld [vmem:[%s2943_s28 + $0x28] sm:$0xff]  ;;  %v2616_v47 = vpop.eup %2615  ;;  %p2775_p1 = scmp.lt.s32.totalorder %s2773_s14, %s2769_s27 }
  0x1b   : > { %v342_v14 = vld [vmem:[%s2943_s28 + $0x30] sm:$0xff]  ;;  %v343_v15 = vld [vmem:[%s2943_s28 + $0x38] sm:$0xff]  ;;  %v344_v16 = vld [vmem:[%s2943_s28 + $0x40] sm:$0xff]  ;;  %v655_v49 = vmul.f32 128.0, %v2616_v47  ;;  %vm659_vm1 = vweird.f32 %v2616_v47  ;;  %p2771_p12 = pnand %p2770_p11, %p2908_p5 }
  0x1c   : > { %489 = vmatpush.msra.mxu0 %v371_v4  ;;  %2532 = vmatpush.msra.mxu3 %v371_v4  ;;  %v345_v17 = vld [vmem:[%s2943_s28 + $0x48] sm:$0xff]  ;;  %v346_v18 = vld [vmem:[%s2943_s28 + $0x50] sm:$0xff]  ;;  %v347_v22 = vld [vmem:[%s2943_s28 + $0x58] sm:$0xff]  ;;  %p2776_p2 = por %p2775_p1, %p2774_p0 }
  0x1d   : > { %v348_v25 = vld [vmem:[%s2943_s28 + $0x60] sm:$0xff]  ;;  %v349_v28 = vld [vmem:[%s2943_s28 + $0x68] sm:$0xff]  ;;  %v350_v31 = vld [vmem:[%s2943_s28 + $0x70] sm:$0xff]  ;;  %v656_v51 = vsub.f32 1.0, %v655_v49  ;;  %p2772_p13 = pneg %p2771_p12 }
  0x1e   : > { %490 = vmatpush.msra.mxu0 %v370_v5  ;;  %2533 = vmatpush.msra.mxu3 %v370_v5  ;;  %v351_v34 = vld [vmem:[%s2943_s28 + $0x78] sm:$0xff]  ;;  %v352_v37 = vld [vmem:[%s2943_s28 + $0x80] sm:$0xff]  ;;  %v353_v40 = vld [vmem:[%s2943_s28 + $0x88] sm:$0xff] }
  0x1f   : > { %v354_v41 = vld [vmem:[%s2943_s28 + $0x90] sm:$0xff]  ;;  %v355_v42 = vld [vmem:[%s2943_s28 + $0x98] sm:$0xff]  ;;  %v356_v43 = vld [vmem:[%s2943_s28 + $0xa0] sm:$0xff]  ;;  %v657_v53 = vmul.f32 %v2616_v47, %v656_v51  ;;  %p2777_p3 = pnand %p2776_p2, %p2772_p13 }
  0x20   : > { %491 = vmatpush.msra.mxu0 %v369_v6  ;;  %2534 = vmatpush.msra.mxu3 %v369_v6  ;;  %v357_v44 = vld [vmem:[%s2943_s28 + $0xa8] sm:$0xff]  ;;  %v358_v46 = vld [vmem:[%s2943_s28 + $0xb0] sm:$0xff]  ;;  %v359_v50 = vld [vmem:[%s2943_s28 + $0xb8] sm:$0xff] }
  0x21   : > { %v360_v54 = vld [vmem:[%s2943_s28 + $0xc0] sm:$0xff]  ;;  %v658_v55 = vadd.f32 %v2616_v47, %v657_v53  ;;  %v361_v56 = vld [vmem:[%s2943_s28 + $0xc8] sm:$0xff]  ;;  %v362_v61 = vld [vmem:[%s2943_s28 + $0xd0] sm:$0xff] }
  0x22   : > { %492 = vmatpush.msra.mxu0 %v368_v7  ;;  %2535 = vmatpush.msra.mxu3 %v368_v7  ;;  %v363_v3 = vld [vmem:[%s2943_s28 + $0xd8] sm:$0xff]  ;;  %v1352_v53 = vld [vmem:[%s4815_s3 + $0x68] sm:$0xff] }
  0x23   : > { %2490 = vmatmul.msk.f32.vlgmr.msra.gmra.mxu0 %vm380_vm0, %v336_v8  ;;  %2515 = vmatmul.msk.f32.vlgmr.msra.gmra.mxu3 %vm380_vm0, %v361_v56  ;;  %v3033_v57 = vsel %vm659_vm1, %v2616_v47, %v658_v55  ;;  %v1350_v56 = vld [vmem:[%s4815_s3 + $0x58] sm:$0xff] }
  0x24   : > { %2536 = vmatpush.msrb.mxu3 %v1354_v45 }
  0x2b   : > { %2491 = vmatmul.msk.f32.gmra.mxu0 %vm380_vm0, %v337_v9  ;;  %2516 = vmatmul.msk.f32.gmra.mxu3 %vm380_vm0, %v362_v61  ;;  %v364_v9 = vld [vmem:[%s2943_s28 + $0xe0] sm:$0xff]  ;;  %v1346_v61 = vld [vmem:[%s4815_s3 + $0x38] sm:$0xff] }
  0x33   : > { %2492 = vmatmul.msk.f32.gmra.mxu0 %vm380_vm0, %v338_v10  ;;  %2517 = vmatmul.msk.f32.gmra.mxu3 %vm380_vm0, %v363_v3  ;;  %v1342_v3 = vld [vmem:[%s4815_s3 + $0x18] sm:$0xff] }
  0x3b   : > { %2493 = vmatmul.msk.f32.gmra.mxu0 %vm380_vm0, %v339_v11  ;;  %2518 = vmatmul.msk.f32.gmra.mxu3 %vm380_vm0, %v364_v9  ;;  %v1340_v9 = vld [vmem:[%s4815_s3 + $0x8] sm:$0xff] }
  0x43   : > { %2494 = vmatmul.msk.f32.gmra.mxu0 %vm380_vm0, %v340_v12 }
  0x4b   : > { %2495 = vmatmul.msk.f32.gmra.mxu0 %vm380_vm0, %v341_v13 }
  0x53   : > { %2496 = vmatmul.msk.f32.gmra.mxu0 %vm380_vm0, %v342_v14 }
  0x5b   : > { %2497 = vmatmul.msk.f32.gmra.mxu0 %vm380_vm0, %v343_v15  ;;  %v365_v15 = vld [vmem:[%s2943_s28 + $0xe8] sm:$0xff] }
  0x5c   : > { %2519 = vmatmul.msk.f32.gmra.mxu3 %vm380_vm0, %v365_v15 }
  0x63   : > { %2498 = vmatmul.msk.f32.gmra.mxu0 %vm380_vm0, %v344_v16 }
  0x6b   : > { %2499 = vmatmul.msk.f32.gmra.mxu0 %vm380_vm0, %v345_v17 }
  0x73   : > { %2500 = vmatmul.msk.f32.gmra.mxu0 %vm380_vm0, %v346_v18 }
  0x7b   : > { %2501 = vmatmul.msk.f32.gmra.mxu0 %vm380_vm0, %v347_v22 }
  0x83   : > { %2502 = vmatmul.msk.f32.gmra.mxu0 %vm380_vm0, %v348_v25 }
  0x8b   : > { %2503 = vmatmul.msk.f32.gmra.mxu0 %vm380_vm0, %v349_v28 }
  0x93   : > { %2504 = vmatmul.msk.f32.gmra.mxu0 %vm380_vm0, %v350_v31 }
  0x9b   : > { %2505 = vmatmul.msk.f32.gmra.mxu0 %vm380_vm0, %v351_v34 }
  0xa0   : > { %v494_v20 = vpop.f32.mrf.mxu0 }
  0xa1   : > { %v2976_v21 = vadd.f32 %v2973_v19, %v494_v20 }
  0xa3   : > { %590 = vadd.xlane.f32.xlu0 %v2976_v21  ;;  %2506 = vmatmul.msk.f32.gmra.mxu0 %vm380_vm0, %v352_v37 }
  0xa8   : > { %v497_v23 = vpop.f32.mrf.mxu0 }
  0xa9   : > { %v2982_v24 = vadd.f32 %v2973_v19, %v497_v23 }
  0xab   : > { %592 = vadd.xlane.f32.xlu0 %v2982_v24  ;;  %2507 = vmatmul.msk.f32.gmra.mxu0 %vm380_vm0, %v353_v40 }
  0xb0   : > { %v500_v26 = vpop.f32.mrf.mxu0 }
  0xb1   : > { %v2988_v27 = vadd.f32 %v2973_v19, %v500_v26 }
  0xb3   : > { %594 = vadd.xlane.f32.xlu1 %v2988_v27  ;;  %2508 = vmatmul.msk.f32.gmra.mxu0 %vm380_vm0, %v354_v41 }
  0xb8   : > { %v503_v29 = vpop.f32.mrf.mxu0 }
  0xb9   : > { %v2994_v30 = vadd.f32 %v2973_v19, %v503_v29 }
  0xbb   : > { %596 = vadd.xlane.f32.xlu1 %v2994_v30  ;;  %2509 = vmatmul.msk.f32.gmra.mxu0 %vm380_vm0, %v355_v42 }
  0xc0   : > { %v506_v32 = vpop.f32.mrf.mxu0 }
  0xc1   : > { %v3000_v33 = vadd.f32 %v2973_v19, %v506_v32 }
  0xc3   : > { %598 = vadd.xlane.f32.xlu2 %v3000_v33  ;;  %2510 = vmatmul.msk.f32.gmra.mxu0 %vm380_vm0, %v356_v43 }
  0xc8   : > { %v509_v35 = vpop.f32.mrf.mxu0 }
  0xc9   : > { %v3006_v36 = vadd.f32 %v2973_v19, %v509_v35 }
  0xcb   : > { %600 = vadd.xlane.f32.xlu2 %v3006_v36  ;;  %2511 = vmatmul.msk.f32.gmra.mxu0 %vm380_vm0, %v357_v44 }
  0xd0   : > { %v512_v38 = vpop.f32.mrf.mxu0 }
  0xd1   : > { %v3012_v39 = vadd.f32 %v2973_v19, %v512_v38 }
  0xd3   : > { %602 = vadd.xlane.f32.xlu1 %v3012_v39  ;;  %2512 = vmatmul.msk.f32.gmra.mxu0 %vm380_vm0, %v358_v46 }
  0xd8   : > { %v515_v48 = vpop.f32.mrf.mxu0 }
  0xd9   : > { %v3049_v5 = vadd.f32 %v2973_v19, %v515_v48 }
  0xdb   : > { %2513 = vmatmul.msk.f32.gmra.mxu0 %vm380_vm0, %v359_v50 }
  0xe0   : > { %v518_v52 = vpop.f32.mrf.mxu0 }
  0xe1   : > { %v3061_v11 = vadd.f32 %v2973_v19, %v518_v52  ;;  %v1353_v52 = vld [vmem:[%s4815_s3 + $0x70] sm:$0xff] }
  0xe2   : > { %1360 = vmatpush.msra.mxu1 %v1353_v52  ;;  %2537 = vmatpush.msrb.mxu3 %v1353_v52 }
  0xe3   : > { %2514 = vmatmul.msk.f32.gmra.mxu0 %vm380_vm0, %v360_v54  ;;  %v1351_v54 = vld [vmem:[%s4815_s3 + $0x60] sm:$0xff] }
  0xe4   : > { %1361 = vmatpush.msra.mxu1 %v1352_v53  ;;  %2538 = vmatpush.msrb.mxu3 %v1352_v53 }
  0xe6   : > { %1362 = vmatpush.msra.mxu1 %v1351_v54  ;;  %2539 = vmatpush.msrb.mxu3 %v1351_v54 }
  0xe8   : > { %v521_v58 = vpop.f32.mrf.mxu0  ;;  %1363 = vmatpush.msra.mxu1 %v1350_v56  ;;  %2540 = vmatpush.msrb.mxu3 %v1350_v56 }
  0xe9   : > { %v3073_v18 = vadd.f32 %v2973_v19, %v521_v58  ;;  %v1349_v58 = vld [vmem:[%s4815_s3 + $0x50] sm:$0xff] }
  0xea   : > { %1364 = vmatpush.msra.mxu1 %v1349_v58  ;;  %2541 = vmatpush.msrb.mxu3 %v1349_v58 }
  0xf0   : > { %v524_v2 = vpop.f32.mrf.mxu0 }
  0xf1   : > { %v3084_v28 = vadd.f32 %v2973_v19, %v524_v2  ;;  %v1343_v2 = vld [vmem:[%s4815_s3 + $0x20] sm:$0xff] }
  0xf8   : > { %v527_v12 = vpop.f32.mrf.mxu0 }
  0xf9   : > { %v3094_v37 = vadd.f32 %v2973_v19, %v527_v12  ;;  %v1339_v12 = vld [vmem:[%s4815_s3] sm:$0xff] }
 0x100   : > { %v530_v22 = vpop.f32.mrf.mxu0 }
 0x101   : > { %v3106_v44 = vadd.f32 %v2973_v19, %v530_v22 }
 0x108   : > { %v533_v31 = vpop.f32.mrf.mxu0 }
 0x109   : > { %v3117_v48 = vadd.f32 %v2973_v19, %v533_v31 }
 0x110   : > { %v3099_v40 = vpop.f32.mrf.mxu0 }
 0x116   : > { %v591_v59 = vpop.xlane.xlu0 %590 }
 0x117   : > { %v661_v60 = vmul.f32 %v3033_v57, %v591_v59  ;;  %v1348_v59 = vld [vmem:[%s4815_s3 + $0x48] sm:$0xff] }
 0x118   : > { %v3114_v47 = vpop.f32.mrf.mxu0  ;;  %1365 = vmatpush.msra.mxu1 %v1348_v59  ;;  %2542 = vmatpush.msrb.mxu3 %v1348_v59 }
 0x119   : > { %v3038_v62 = vsub.f32 %v2976_v21, %v661_v60  ;;  %v1347_v60 = vld [vmem:[%s4815_s3 + $0x40] sm:$0xff] }
 0x11a   : > { %1366 = vmatpush.msra.mxu1 %v1347_v60  ;;  %2543 = vmatpush.msrb.mxu3 %v1347_v60 }
 0x11b   : > { %v725_v63 = vmul.f32 %v3038_v62, %v3038_v62 }
 0x11c   : > { %1367 = vmatpush.msra.mxu1 %v1346_v61  ;;  %2544 = vmatpush.msrb.mxu3 %v1346_v61 }
 0x11d   : > { %757 = vadd.xlane.f32.xlu0 %v725_v63 }
 0x11e   : > { %v593_v0 = vpop.xlane.xlu0 %592 }
 0x11f   : > { %v662_v1 = vmul.f32 %v3033_v57, %v593_v0  ;;  %v1345_v0 = vld [vmem:[%s4815_s3 + $0x30] sm:$0xff] }
 0x120   : > { %v3120_v49 = vpop.f32.mrf.mxu0  ;;  %1368 = vmatpush.msra.mxu1 %v1345_v0  ;;  %2545 = vmatpush.msrb.mxu3 %v1345_v0 }
 0x121   : > { %v3046_v4 = vsub.f32 %v2982_v24, %v662_v1  ;;  %v1344_v1 = vld [vmem:[%s4815_s3 + $0x28] sm:$0xff] }
 0x122   : > { %1369 = vmatpush.msra.mxu1 %v1344_v1  ;;  %2546 = vmatpush.msrb.mxu3 %v1344_v1 }
 0x123   : > { %v726_v6 = vmul.f32 %v3046_v4, %v3046_v4 }
 0x124   : > { %1370 = vmatpush.msra.mxu1 %v1343_v2  ;;  %2547 = vmatpush.msrb.mxu3 %v1343_v2  ;;  %v3202_v2 = vadd.f32 %v2973_v19, %v3099_v40  ;;  %v3217_v40 = vld [vmem:[%s4818_s6] ss:$0 sm:$0xff] }
 0x125   : > { %604 = vadd.xlane.f32.xlu0 %v3049_v5  ;;  %759 = vadd.xlane.f32.xlu2 %v726_v6  ;;  %v1341_v6 = vld [vmem:[%s4815_s3 + $0x10] sm:$0xff] }
 0x126   : > { %v595_v7 = vpop.xlane.xlu1 %594  ;;  %1371 = vmatpush.msra.mxu1 %v1342_v3  ;;  %2548 = vmatpush.msrb.mxu3 %v1342_v3 }
 0x127   : > { %v663_v8 = vmul.f32 %v3033_v57, %v595_v7  ;;  %v366_v7 = vld [vmem:[%s2943_s28 + $0xf0] sm:$0xff] }
 0x128   : > { %v3122_v50 = vpop.f32.mrf.mxu0  ;;  %1372 = vmatpush.msra.mxu1 %v1341_v6  ;;  %2549 = vmatpush.msrb.mxu3 %v1341_v6  ;;  %v3210_v6 = vld [vmem:[%s4817_s5] ss:$0 sm:$0xff] }
 0x129   : > { %v3058_v10 = vsub.f32 %v2988_v27, %v663_v8  ;;  %2520 = vmatmul.msk.f32.gmra.mxu3 %vm380_vm0, %v366_v7 }
 0x12a   : > { %1373 = vmatpush.msra.mxu1 %v1340_v9  ;;  %2550 = vmatpush.msrb.mxu3 %v1340_v9 }
 0x12b   : > { %v727_v13 = vmul.f32 %v3058_v10, %v3058_v10 }
 0x12c   : > { %1374 = vmatpush.msra.mxu1 %v1339_v12  ;;  %2551 = vmatpush.msrb.mxu3 %v1339_v12 }
 0x12d   : > { %761 = vadd.xlane.f32.xlu1 %v727_v13  ;;  %606 = vadd.xlane.f32.xlu2 %v3061_v11 }
 0x12e   : > { %v597_v14 = vpop.xlane.xlu1 %596 }
 0x12f   : > { %v664_v16 = vmul.f32 %v3033_v57, %v597_v14 }
 0x130   : > { %v3124_v51 = vpop.f32.mrf.mxu0 }
 0x131   : > { %v3070_v17 = vsub.f32 %v2994_v30, %v664_v16  ;;  %v367_v16 = vld [vmem:[%s2943_s28 + $0xf8] sm:$0xff]  ;;  %s324_s28 = sand.u32 1, %s2807_s10  }
 0x132   : > { %2521 = vmatmul.msk.f32.gmra.mxu3 %vm380_vm0, %v367_v16  ;;  %s2487_s16 = sshll.u32 %s324_s28, 8  ;;  %s2406_s26 = scalar_lea.sflag [#allocation3], %s324_s28 }
 0x133   : > { %v728_v20 = vmul.f32 %v3070_v17, %v3070_v17  ;;  %s4283_s22 = scalar_lea.vmem [#allocation2], %s2487_s16 }
 0x134   : > { %s2418_s23 = sshll.u32 %s4283_s22, 4  ;;  %s2419_s23 = int_to_ptr.vmem [resolvable:$true] %s2418_s23 }
 0x135   : > { %608 = vadd.xlane.f32.xlu1 %v3073_v18  ;;  %763 = vadd.xlane.f32.xlu0 %v728_v20 }
 0x136   : > { %v599_v23 = vpop.xlane.xlu2 %598 }
 0x137   : > { %v665_v25 = vmul.f32 %v3033_v57, %v599_v23 }
 0x138   : > { %v3135_v55 = vpop.f32.mrf.mxu0 }
 0x139   : > { %v3081_v26 = vsub.f32 %v3000_v33, %v665_v25 }
 0x13b   : > { %v729_v29 = vmul.f32 %v3081_v26, %v3081_v26 }
 0x13d   : > { %610 = vadd.xlane.f32.xlu0 %v3084_v28  ;;  %765 = vadd.xlane.f32.xlu2 %v729_v29 }
 0x13e   : > { %v601_v32 = vpop.xlane.xlu2 %600 }
 0x13f   : > { %v666_v34 = vmul.f32 %v3033_v57, %v601_v32 }
 0x140   : > { %v3152_v63 = vpop.f32.mrf.mxu0 }
 0x141   : > { %v3091_v35 = vsub.f32 %v3006_v36, %v666_v34 }
 0x143   : > { %v730_v38 = vmul.f32 %v3091_v35, %v3091_v35 }
 0x145   : > { %767 = vadd.xlane.f32.xlu1 %v730_v38  ;;  %612 = vadd.xlane.f32.xlu2 %v3094_v37 }
 0x146   : > { %v603_v41 = vpop.xlane.xlu1 %602 }
 0x147   : > { %v667_v42 = vmul.f32 %v3033_v57, %v603_v41 }
 0x148   : > { %v3170_v8 = vpop.f32.mrf.mxu0 }
 0x149   : > { %v3103_v43 = vsub.f32 %v3012_v39, %v667_v42 }
 0x14b   : > { %v731_v46 = vmul.f32 %v3103_v43, %v3103_v43 }
 0x14d   : > { %614 = vadd.xlane.f32.xlu1 %v3106_v44  ;;  %769 = vadd.xlane.f32.xlu0 %v731_v46 }
 0x150   : > { %v3182_v20 = vpop.f32.mrf.mxu0 }
 0x155   : > { %616 = vadd.xlane.f32.xlu0 %v3117_v48 }
 0x158   : > { %v3191_v45 = vpop.f32.mrf.mxu0 }
 0x190   : > { %v758_v13 = vpop.xlane.xlu0 %757 }
 0x191   : > { %v821_v14 = vmul.f32 %v758_v13, %v3033_v57 }
 0x193   : > { %v853_v15 = vadd.f32 1e-05, %v821_v14 }
 0x195   : > { %2617 = vrsqrt.f32 %v853_v15  ;;  %vm891_vm3 = vweird.f32 %v853_v15 }
 0x198   : > { %v760_v22 = vpop.xlane.xlu2 %759  ;;  %v605_v23 = vpop.xlane.xlu0 %604 }
 0x199   : > { %v822_v25 = vmul.f32 %v760_v22, %v3033_v57  ;;  %v668_v29 = vmul.f32 %v3033_v57, %v605_v23  ;;  %v566_v23 = vpop.f32.mrf.mxu0 }
 0x19b   : > { %v2618_v31 = vpop.eup %2617  ;;  %v854_v32 = vadd.f32 1e-05, %v822_v25  ;;  %v3187_v34 = vsub.f32 %v3049_v5, %v668_v29  ;;  %v569_v29 = vpop.f32.mrf.mxu3 }
 0x19c   : > { %v886_v38 = vmul.f32 %v2618_v31, %v853_v15  ;;  %vm892_vm2 = vweird.f32 %v2618_v31 }
 0x19d   : > { %2619 = vrsqrt.f32 %v854_v32  ;;  %v732_v41 = vmul.f32 %v3187_v34, %v3187_v34  ;;  %vm893_vm4 = vmor %vm891_vm3, %vm892_vm2  ;;  %vm901_vm6 = vweird.f32 %v854_v32 }
 0x19e   : > { %v887_v42 = vmul.f32 %v2618_v31, %v886_v38 }
 0x19f   : > { %771 = vadd.xlane.f32.xlu2 %v732_v41 }
 0x1a0   : > { %v888_v46 = vmul.f32 0.5, %v887_v42  ;;  %v762_v52 = vpop.xlane.xlu1 %761  ;;  %v607_v53 = vpop.xlane.xlu2 %606 }
 0x1a1   : > { %v823_v54 = vmul.f32 %v762_v52, %v3033_v57  ;;  %v669_v56 = vmul.f32 %v3033_v57, %v607_v53  ;;  %v3230_v53 = vadd.f32 %v2973_v19, %v566_v23 }
 0x1a2   : > { %v889_v58 = vsub.f32 1.5, %v888_v46 }
 0x1a3   : > { %v2620_v59 = vpop.eup %2619  ;;  %v3195_v60 = vadd.f32 1e-05, %v823_v54  ;;  %v3198_v61 = vsub.f32 %v3061_v11, %v669_v56  ;;  %4839 = vst [vmem:[#allocation5_spill] sm:$0xff] %v3230_v53  ;;  %v3234_v54 = vadd.f32 %v2973_v19, %v3114_v47 }
 0x1a4   : > { %v890_v0 = vmul.f32 %v2618_v31, %v889_v58  ;;  %v896_v1 = vmul.f32 %v2620_v59, %v854_v32  ;;  %vm902_vm5 = vweird.f32 %v2620_v59 }
 0x1a5   : > { %2621 = vrsqrt.f32 %v3195_v60  ;;  %v733_v3 = vmul.f32 %v3198_v61, %v3198_v61  ;;  %4840 = vst [vmem:[#allocation6_spill] sm:$0xff] %v3234_v54  ;;  %vm903_vm7 = vmor %vm901_vm6, %vm902_vm5  ;;  %vm911_vm9 = vweird.f32 %v3195_v60 }
 0x1a6   : > { %v897_v7 = vmul.f32 %v2620_v59, %v896_v1  ;;  %v894_v9 = vsel %vm893_vm4, %v2618_v31, %v890_v0 }
 0x1a7   : > { %773 = vadd.xlane.f32.xlu1 %v733_v3  ;;  %618 = vadd.xlane.f32.xlu2 %v3202_v2  ;;  %v1205_v12 = vmul.f32 %v894_v9, %v3038_v62 }
 0x1a8   : > { %v898_v13 = vmul.f32 0.5, %v897_v7  ;;  %v609_v14 = vpop.xlane.xlu1 %608  ;;  %v764_v15 = vpop.xlane.xlu0 %763 }
 0x1a9   : > { %v670_v16 = vmul.f32 %v3033_v57, %v609_v14  ;;  %v824_v22 = vmul.f32 %v764_v15, %v3033_v57  ;;  %v1240_v25 = vmul.f32 %v3210_v6, %v1205_v12 }
 0x1aa   : > { %v899_v31 = vsub.f32 1.5, %v898_v13 }
 0x1ab   : > { %v2622_v38 = vpop.eup %2621  ;;  %v3223_v62 = vsub.f32 %v3073_v18, %v670_v16  ;;  %v3225_v41 = vadd.f32 1e-05, %v824_v22  ;;  %v1275_v42 = vadd.f32 %v3217_v40, %v1240_v25  ;;  %v572_v22 = vpop.f32.mrf.mxu3 }
 0x1ac   : > { %v900_v46 = vmul.f32 %v2620_v59, %v899_v31  ;;  %v906_v52 = vmul.f32 %v2622_v38, %v3195_v60  ;;  %vm912_vm8 = vweird.f32 %v2622_v38  ;;  %v3254_v31 = vadd.f32 %v2973_v19, %v569_v29 }
 0x1ad   : > { %2623 = vrsqrt.f32 %v3225_v41  ;;  %v734_v56 = vmul.f32 %v3223_v62, %v3223_v62  ;;  %v1307_v58 = vmax.f32 %v1275_v42, 0.0  ;;  %v3258_v42 = vadd.f32 %v2973_v19, %v3120_v49  ;;  %vm913_vm10 = vmor %vm911_vm9, %vm912_vm8 }
 0x1ae   : > { %v907_v0 = vmul.f32 %v2622_v38, %v906_v52  ;;  %v904_v1 = vsel %vm903_vm7, %v2620_v59, %v900_v46  ;;  %4841 = vst [vmem:[#allocation7_spill] sm:$0xff] %v3254_v31  ;;  %vm921_vm12 = vweird.f32 %v3225_v41 }
 0x1af   : > { %775 = vadd.xlane.f32.xlu0 %v734_v56  ;;  %620 = vadd.xlane.f32.xlu1 %v3234_v54  ;;  %v1206_v32 = vmul.f32 %v904_v1, %v3046_v4  ;;  %4842 = vst [vmem:[#allocation8_spill] sm:$0xff] %v3258_v42 }
 0x1b0   : > { %v908_v3 = vmul.f32 0.5, %v907_v0  ;;  %1375 = vmatmul.f32.vlgmr.msra.gmra.mxu1 %v1307_v58  ;;  %638 = vadd.xlane.f32.xlu2 %v3230_v53  ;;  %v766_v47 = vpop.xlane.xlu2 %765  ;;  %v611_v7 = vpop.xlane.xlu0 %610 }
 0x1b1   : > { %v825_v9 = vmul.f32 %v766_v47, %v3033_v57  ;;  %v671_v12 = vmul.f32 %v3033_v57, %v611_v7  ;;  %v1241_v13 = vmul.f32 %v3210_v6, %v1206_v32 }
 0x1b2   : > { %v909_v14 = vsub.f32 1.5, %v908_v3 }
 0x1b3   : > { %v2624_v59 = vpop.eup %2623  ;;  %v3245_v15 = vadd.f32 1e-05, %v825_v9  ;;  %v3248_v16 = vsub.f32 %v3084_v28, %v671_v12  ;;  %v1276_v4 = vadd.f32 %v3217_v40, %v1241_v13 }
 0x1b4   : > { %v910_v23 = vmul.f32 %v2622_v38, %v909_v14  ;;  %v916_v25 = vmul.f32 %v2624_v59, %v3225_v41  ;;  %vm922_vm11 = vweird.f32 %v2624_v59  ;;  %v3278_v14 = vadd.f32 %v2973_v19, %v572_v22 }
 0x1b5   : > { %2625 = vrsqrt.f32 %v3245_v15  ;;  %v1308_v46 = vmax.f32 %v1276_v4, 0.0  ;;  %v735_v52 = vmul.f32 %v3248_v16, %v3248_v16  ;;  %v3282_v4 = vadd.f32 %v2973_v19, %v3122_v50  ;;  %vm923_vm13 = vmor %vm921_vm12, %vm922_vm11 }
 0x1b6   : > { %v917_v56 = vmul.f32 %v2624_v59, %v916_v25  ;;  %v914_v58 = vsel %vm913_vm10, %v2622_v38, %v910_v23  ;;  %4843 = vst [vmem:[#allocation9_spill] sm:$0xff] %v3278_v14  ;;  %vm931_vm15 = vweird.f32 %v3245_v15 }
 0x1b7   : > { %622 = vadd.xlane.f32.xlu1 %v3258_v42  ;;  %777 = vadd.xlane.f32.xlu0 %v735_v52  ;;  %v1207_v60 = vmul.f32 %v914_v58, %v3058_v10  ;;  %4844 = vst [vmem:[#allocation10_spill] sm:$0xff] %v3282_v4 }
 0x1b8   : > { %v918_v29 = vmul.f32 0.5, %v917_v56  ;;  %1378 = vmatmul.f32.gmra.mxu1 %v1308_v46  ;;  %640 = vadd.xlane.f32.xlu2 %v3254_v31  ;;  %v768_v49 = vpop.xlane.xlu1 %767  ;;  %v613_v0 = vpop.xlane.xlu2 %612 }
 0x1b9   : > { %v826_v1 = vmul.f32 %v768_v49, %v3033_v57  ;;  %v672_v32 = vmul.f32 %v3033_v57, %v613_v0  ;;  %v1242_v3 = vmul.f32 %v3210_v6, %v1207_v60  ;;  %v575_v46 = vpop.f32.mrf.mxu3 }
 0x1ba   : > { %v919_v47 = vsub.f32 1.5, %v918_v29 }
 0x1bb   : > { %v2626_v38 = vpop.eup %2625  ;;  %v3269_v7 = vadd.f32 1e-05, %v826_v1  ;;  %v3272_v9 = vsub.f32 %v3094_v37, %v672_v32  ;;  %v1277_v10 = vadd.f32 %v3217_v40, %v1242_v3 }
 0x1bc   : > { %v920_v12 = vmul.f32 %v2624_v59, %v919_v47  ;;  %v926_v13 = vmul.f32 %v2626_v38, %v3245_v15  ;;  %vm932_vm14 = vweird.f32 %v2626_v38 }
 0x1bd   : > { %2627 = vrsqrt.f32 %v3269_v7  ;;  %v1309_v23 = vmax.f32 %v1277_v10, 0.0  ;;  %v736_v25 = vmul.f32 %v3272_v9, %v3272_v9  ;;  %v3300_v10 = vadd.f32 %v2973_v19, %v575_v46  ;;  %vm933_vm0 = vmor %vm931_vm15, %vm932_vm14 }
 0x1be   : > { %v927_v52 = vmul.f32 %v2626_v38, %v926_v13  ;;  %v924_v56 = vsel %vm923_vm13, %v2624_v59, %v920_v12  ;;  %v3304_v12 = vadd.f32 %v2973_v19, %v3124_v51  ;;  %vm941_vm2 = vweird.f32 %v3269_v7 }
 0x1bf   : > { %624 = vadd.xlane.f32.xlu1 %v3282_v4  ;;  %779 = vadd.xlane.f32.xlu0 %v736_v25  ;;  %v1208_v41 = vmul.f32 %v924_v56, %v3070_v17  ;;  %4845 = vst [vmem:[#allocation11_spill] sm:$0xff] %v3300_v10 }
 0x1c0   : > { %v928_v22 = vmul.f32 0.5, %v927_v52  ;;  %1381 = vmatmul.f32.gmra.mxu1 %v1309_v23  ;;  %642 = vadd.xlane.f32.xlu2 %v3278_v14  ;;  %v615_v50 = vpop.xlane.xlu1 %614  ;;  %v770_v58 = vpop.xlane.xlu0 %769  ;;  %4846 = vst [vmem:[#allocation12_spill] sm:$0xff] %v3304_v12 }
 0x1c1   : > { %v673_v60 = vmul.f32 %v3033_v57, %v615_v50  ;;  %v827_v29 = vmul.f32 %v770_v58, %v3033_v57  ;;  %v1243_v49 = vmul.f32 %v3210_v6, %v1208_v41  ;;  %v578_v15 = vpop.f32.mrf.mxu3 }
 0x1c2   : > { %v929_v0 = vsub.f32 1.5, %v928_v22 }
 0x1c3   : > { %v2628_v59 = vpop.eup %2627  ;;  %v3294_v1 = vsub.f32 %v3106_v44, %v673_v60  ;;  %v859_v32 = vadd.f32 1e-05, %v827_v29  ;;  %v1278_v17 = vadd.f32 %v3217_v40, %v1243_v49  ;;  %v3319_v49 = vadd.f32 %v2973_v19, %v578_v15 }
 0x1c4   : > { %v930_v3 = vmul.f32 %v2626_v38, %v929_v0  ;;  %v936_v47 = vmul.f32 %v2628_v59, %v3269_v7  ;;  %vm942_vm1 = vweird.f32 %v2628_v59  ;;  %v3323_v0 = vadd.f32 %v2973_v19, %v3135_v55 }
 0x1c5   : > { %2629 = vrsqrt.f32 %v859_v32  ;;  %v1310_v13 = vmax.f32 %v1278_v17, 0.0  ;;  %v737_v23 = vmul.f32 %v3294_v1, %v3294_v1  ;;  %4847 = vst [vmem:[#allocation13_spill] sm:$0xff] %v3319_v49  ;;  %vm943_vm3 = vmor %vm941_vm2, %vm942_vm1  ;;  %vm951_vm5 = vweird.f32 %v859_v32 }
 0x1c6   : > { %v937_v25 = vmul.f32 %v2628_v59, %v936_v47  ;;  %v934_v52 = vsel %vm933_vm0, %v2626_v38, %v930_v3  ;;  %4848 = vst [vmem:[#allocation14_spill] sm:$0xff] %v3323_v0 }
 0x1c7   : > { %626 = vadd.xlane.f32.xlu1 %v3304_v12  ;;  %781 = vadd.xlane.f32.xlu0 %v737_v23  ;;  %v1209_v56 = vmul.f32 %v934_v52, %v3081_v26 }
 0x1c8   : > { %v938_v46 = vmul.f32 0.5, %v937_v25  ;;  %644 = vadd.xlane.f32.xlu2 %v3300_v10  ;;  %1384 = vmatmul.f32.gmra.mxu1 %v1310_v13  ;;  %v617_v51 = vpop.xlane.xlu0 %616 }
 0x1c9   : > { %v674_v41 = vmul.f32 %v3033_v57, %v617_v51  ;;  %v1244_v22 = vmul.f32 %v3210_v6, %v1209_v56  ;;  %v581_v25 = vpop.f32.mrf.mxu3 }
 0x1ca   : > { %v939_v50 = vsub.f32 1.5, %v938_v46  ;;  %v3337_v46 = vadd.f32 %v2973_v19, %v3152_v63 }
 0x1cb   : > { %v2630_v58 = vpop.eup %2629  ;;  %v3314_v38 = vsub.f32 %v3117_v48, %v674_v41  ;;  %v1279_v60 = vadd.f32 %v3217_v40, %v1244_v22 }
 0x1cc   : > { %v940_v29 = vmul.f32 %v2628_v59, %v939_v50  ;;  %v946_v26 = vmul.f32 %v2630_v58, %v859_v32  ;;  %vm952_vm4 = vweird.f32 %v2630_v58  ;;  %4850 = vst [vmem:[#allocation16_spill] sm:$0xff] %v3337_v46  ;;  %v3346_v50 = vadd.f32 %v2973_v19, %v3170_v8 }
 0x1cd   : > { %v1311_v17 = vmax.f32 %v1279_v60, 0.0  ;;  %v738_v3 = vmul.f32 %v3314_v38, %v3314_v38  ;;  %vm953_vm6 = vmor %vm951_vm5, %vm952_vm4 }
 0x1ce   : > { %v947_v47 = vmul.f32 %v2630_v58, %v946_v26  ;;  %v944_v13 = vsel %vm943_vm3, %v2628_v59, %v940_v29  ;;  %v3333_v59 = vadd.f32 %v2973_v19, %v581_v25  ;;  %4851 = vst [vmem:[#allocation17_spill] sm:$0xff] %v3346_v50 }
 0x1cf   : > { %628 = vadd.xlane.f32.xlu1 %v3323_v0  ;;  %783 = vadd.xlane.f32.xlu0 %v738_v3  ;;  %v1210_v7 = vmul.f32 %v944_v13, %v3091_v35 }
 0x1d0   : > { %v948_v23 = vmul.f32 0.5, %v947_v47  ;;  %646 = vadd.xlane.f32.xlu2 %v3319_v49  ;;  %1387 = vmatmul.f32.gmra.mxu1 %v1311_v17  ;;  %4849 = vst [vmem:[#allocation15_spill] sm:$0xff] %v3333_v59 }
 0x1d1   : > { %v1245_v55 = vmul.f32 %v3210_v6, %v1210_v7 }
 0x1d2   : > { %v949_v52 = vsub.f32 1.5, %v948_v23 }
 0x1d3   : > { %v1280_v15 = vadd.f32 %v3217_v40, %v1245_v55 }
 0x1d4   : > { %v950_v56 = vmul.f32 %v2630_v58, %v949_v52 }
 0x1d5   : > { %v1312_v35 = vmax.f32 %v1280_v15, 0.0 }
 0x1d6   : > { %v954_v51 = vsel %vm953_vm6, %v2630_v58, %v950_v56 }
 0x1d7   : > { %630 = vadd.xlane.f32.xlu1 %v3337_v46  ;;  %v1211_v41 = vmul.f32 %v954_v51, %v3103_v43 }
 0x1d8   : > { %648 = vadd.xlane.f32.xlu2 %v3333_v59  ;;  %1390 = vmatmul.f32.gmra.mxu1 %v1312_v35 }
 0x1d9   : > { %v1246_v22 = vmul.f32 %v3210_v6, %v1211_v41 }
 0x1db   : > { %v1281_v32 = vadd.f32 %v3217_v40, %v1246_v22 }
 0x1dd   : > { %v1313_v63 = vmax.f32 %v1281_v32, 0.0 }
 0x1df   : > { %632 = vadd.xlane.f32.xlu1 %v3346_v50 }
 0x1e0   : > { %1393 = vmatmul.f32.gmra.mxu1 %v1313_v63 }
 0x212   : > { %v772_v58 = vpop.xlane.xlu2 %771 }
 0x213   : > { %v828_v60 = vmul.f32 %v772_v58, %v3033_v57 }
 0x215   : > { %v860_v29 = vadd.f32 1e-05, %v828_v60 }
 0x217   : > { %2631 = vrsqrt.f32 %v860_v29  ;;  %vm961_vm8 = vweird.f32 %v860_v29 }
 0x21a   : > { %v774_v43 = vpop.xlane.xlu1 %773  ;;  %v619_v26 = vpop.xlane.xlu2 %618 }
 0x21b   : > { %v829_v17 = vmul.f32 %v774_v43, %v3033_v57  ;;  %v675_v3 = vmul.f32 %v3033_v57, %v619_v26 }
 0x21d   : > { %v2632_v47 = vpop.eup %2631  ;;  %v861_v13 = vadd.f32 1e-05, %v829_v17  ;;  %v3353_v8 = vsub.f32 %v3202_v2, %v675_v3  ;;  %v584_v3 = vpop.f32.mrf.mxu3 }
 0x21e   : > { %v956_v7 = vmul.f32 %v2632_v47, %v860_v29  ;;  %vm962_vm7 = vweird.f32 %v2632_v47 }
 0x21f   : > { %2633 = vrsqrt.f32 %v861_v13  ;;  %v739_v23 = vmul.f32 %v3353_v8, %v3353_v8  ;;  %vm963_vm9 = vmor %vm961_vm8, %vm962_vm7  ;;  %vm971_vm11 = vweird.f32 %v861_v13 }
 0x220   : > { %v957_v25 = vmul.f32 %v2632_v47, %v956_v7 }
 0x221   : > { %785 = vadd.xlane.f32.xlu0 %v739_v23 }
 0x222   : > { %v958_v55 = vmul.f32 0.5, %v957_v25  ;;  %v621_v52 = vpop.xlane.xlu1 %620  ;;  %v776_v15 = vpop.xlane.xlu0 %775 }
 0x223   : > { %v676_v56 = vmul.f32 %v3033_v57, %v621_v52  ;;  %v639_v35 = vpop.xlane.xlu2 %638  ;;  %v830_v51 = vmul.f32 %v776_v15, %v3033_v57 }
 0x224   : > { %v959_v41 = vsub.f32 1.5, %v958_v55  ;;  %v685_v22 = vmul.f32 %v3033_v57, %v639_v35 }
 0x225   : > { %v2634_v32 = vpop.eup %2633  ;;  %v3361_v63 = vsub.f32 %v3234_v54, %v676_v56  ;;  %v3363_v58 = vadd.f32 1e-05, %v830_v51 }
 0x226   : > { %v960_v60 = vmul.f32 %v2632_v47, %v959_v41  ;;  %v966_v43 = vmul.f32 %v2634_v32, %v861_v13  ;;  %v3366_v26 = vsub.f32 %v3230_v53, %v685_v22  ;;  %vm972_vm10 = vweird.f32 %v2634_v32  ;;  %v587_v13 = vpop.f32.mrf.mxu3 }
 0x227   : > { %2635 = vrsqrt.f32 %v3363_v58  ;;  %v740_v17 = vmul.f32 %v3361_v63, %v3361_v63  ;;  %vm973_vm12 = vmor %vm971_vm11, %vm972_vm10  ;;  %vm981_vm14 = vweird.f32 %v3363_v58 }
 0x228   : > { %v967_v7 = vmul.f32 %v2634_v32, %v966_v43  ;;  %v749_v23 = vmul.f32 %v3366_v26, %v3366_v26  ;;  %v964_v25 = vsel %vm963_vm9, %v2632_v47, %v960_v60 }
 0x229   : > { %787 = vadd.xlane.f32.xlu0 %v740_v17  ;;  %v1212_v55 = vmul.f32 %v964_v25, %v3187_v34  ;;  %v3383_v34 = vadd.f32 %v2973_v19, %v584_v3 }
 0x22a   : > { %v968_v29 = vmul.f32 0.5, %v967_v7  ;;  %805 = vadd.xlane.f32.xlu2 %v749_v23  ;;  %v623_v52 = vpop.xlane.xlu1 %622  ;;  %v778_v15 = vpop.xlane.xlu0 %777 }
 0x22b   : > { %v677_v56 = vmul.f32 %v3033_v57, %v623_v52  ;;  %v641_v35 = vpop.xlane.xlu2 %640  ;;  %v831_v51 = vmul.f32 %v778_v15, %v3033_v57  ;;  %v1247_v41 = vmul.f32 %v3210_v6, %v1212_v55  ;;  %4852 = vst [vmem:[#allocation18_spill] sm:$0xff] %v3383_v34  ;;  %v3393_v55 = vadd.f32 %v2973_v19, %v3182_v20 }
 0x22c   : > { %v969_v22 = vsub.f32 1.5, %v968_v29  ;;  %v686_v23 = vmul.f32 %v3033_v57, %v641_v35 }
 0x22d   : > { %v2636_v43 = vpop.eup %2635  ;;  %v3378_v53 = vsub.f32 %v3258_v42, %v677_v56  ;;  %v3380_v47 = vadd.f32 1e-05, %v831_v51  ;;  %v1282_v60 = vadd.f32 %v3217_v40, %v1247_v41  ;;  %4853 = vst [vmem:[#allocation19_spill] sm:$0xff] %v3393_v55 }
 0x22e   : > { %v970_v17 = vmul.f32 %v2634_v32, %v969_v22  ;;  %v976_v7 = vmul.f32 %v2636_v43, %v3363_v58  ;;  %v3399_v41 = vsub.f32 %v3254_v31, %v686_v23  ;;  %vm982_vm13 = vweird.f32 %v2636_v43 }
 0x22f   : > { %2637 = vrsqrt.f32 %v3380_v47  ;;  %v741_v25 = vmul.f32 %v3378_v53, %v3378_v53  ;;  %v1314_v29 = vmax.f32 %v1282_v60, 0.0  ;;  %vm983_vm15 = vmor %vm981_vm14, %vm982_vm13  ;;  %vm991_vm1 = vweird.f32 %v3380_v47 }
 0x230   : > { %v977_v3 = vmul.f32 %v2636_v43, %v976_v7  ;;  %v974_v52 = vsel %vm973_vm12, %v2634_v32, %v970_v17 }
 0x231   : > { %789 = vadd.xlane.f32.xlu1 %v741_v25  ;;  %650 = vadd.xlane.f32.xlu0 %v3383_v34  ;;  %v1213_v15 = vmul.f32 %v974_v52, %v3198_v61 }
 0x232   : > { %v978_v56 = vmul.f32 0.5, %v977_v3  ;;  %634 = vadd.xlane.f32.xlu2 %v3393_v55  ;;  %1396 = vmatmul.f32.gmra.mxu1 %v1314_v29  ;;  %v625_v35 = vpop.xlane.xlu1 %624  ;;  %v780_v51 = vpop.xlane.xlu0 %779  ;;  %v3410_v3 = vadd.f32 %v2973_v19, %v587_v13 }
 0x233   : > { %v678_v20 = vmul.f32 %v3033_v57, %v625_v35  ;;  %v643_v22 = vpop.xlane.xlu2 %642  ;;  %v832_v32 = vmul.f32 %v780_v51, %v3033_v57  ;;  %v1248_v60 = vmul.f32 %v3210_v6, %v1213_v15  ;;  %v750_v35 = vmul.f32 %v3399_v41, %v3399_v41 }
 0x234   : > { %v979_v17 = vsub.f32 1.5, %v978_v56  ;;  %v687_v15 = vmul.f32 %v3033_v57, %v643_v22 }
 0x235   : > { %v2638_v7 = vpop.eup %2637  ;;  %v3405_v61 = vsub.f32 %v3282_v4, %v678_v20  ;;  %v3407_v25 = vadd.f32 1e-05, %v832_v32  ;;  %v1283_v23 = vadd.f32 %v3217_v40, %v1248_v60 }
 0x236   : > { %v980_v29 = vmul.f32 %v2636_v43, %v979_v17  ;;  %v986_v52 = vmul.f32 %v2638_v7, %v3380_v47  ;;  %v3424_v17 = vsub.f32 %v3278_v14, %v687_v15  ;;  %vm992_vm0 = vweird.f32 %v2638_v7 }
 0x237   : > { %2639 = vrsqrt.f32 %v3407_v25  ;;  %v742_v56 = vmul.f32 %v3405_v61, %v3405_v61  ;;  %v1315_v51 = vmax.f32 %v1283_v23, 0.0  ;;  %v3437_v15 = vadd.f32 %v2973_v19, %v3191_v45  ;;  %vm993_vm2 = vmor %vm991_vm1, %vm992_vm0 }
 0x238   : > { %v987_v13 = vmul.f32 %v2638_v7, %v986_v52  ;;  %v984_v20 = vsel %vm983_vm15, %v2636_v43, %v980_v29  ;;  %vm1001_vm4 = vweird.f32 %v3407_v25 }
 0x239   : > { %652 = vadd.xlane.f32.xlu1 %v3410_v3  ;;  %807 = vadd.xlane.f32.xlu0 %v750_v35  ;;  %v1214_v58 = vmul.f32 %v984_v20, %v3223_v62 }
 0x23a   : > { %v988_v32 = vmul.f32 0.5, %v987_v13  ;;  %791 = vadd.xlane.f32.xlu2 %v742_v56  ;;  %1399 = vmatmul.f32.gmra.mxu1 %v1315_v51  ;;  %v627_v22 = vpop.xlane.xlu1 %626  ;;  %v782_v60 = vpop.xlane.xlu0 %781 }
 0x23b   : > { %v679_v4 = vmul.f32 %v3033_v57, %v627_v22  ;;  %v645_v31 = vpop.xlane.xlu2 %644  ;;  %v833_v52 = vmul.f32 %v782_v60, %v3033_v57  ;;  %v1249_v43 = vmul.f32 %v3210_v6, %v1214_v58  ;;  %v751_v58 = vmul.f32 %v3424_v17, %v3424_v17 }
 0x23c   : > { %v989_v23 = vsub.f32 1.5, %v988_v32  ;;  %v688_v20 = vmul.f32 %v3033_v57, %v645_v31 }
 0x23d   : > { %v2640_v29 = vpop.eup %2639  ;;  %v3430_v62 = vsub.f32 %v3304_v12, %v679_v4  ;;  %v3432_v56 = vadd.f32 1e-05, %v833_v52  ;;  %v1284_v35 = vadd.f32 %v3217_v40, %v1249_v43 }
 0x23e   : > { %v990_v13 = vmul.f32 %v2638_v7, %v989_v23  ;;  %v996_v51 = vmul.f32 %v2640_v29, %v3407_v25  ;;  %v3450_v52 = vsub.f32 %v3300_v10, %v688_v20  ;;  %vm1002_vm3 = vweird.f32 %v2640_v29 }
 0x23f   : > { %2641 = vrsqrt.f32 %v3432_v56  ;;  %v743_v4 = vmul.f32 %v3430_v62, %v3430_v62  ;;  %v1316_v22 = vmax.f32 %v1284_v35, 0.0  ;;  %vm1003_vm5 = vmor %vm1001_vm4, %vm1002_vm3  ;;  %vm1011_vm7 = vweird.f32 %v3432_v56 }
 0x240   : > { %v997_v32 = vmul.f32 %v2640_v29, %v996_v51  ;;  %v994_v19 = vsel %vm993_vm2, %v2638_v7, %v990_v13 }
 0x241   : > { %809 = vadd.xlane.f32.xlu1 %v751_v58  ;;  %636 = vadd.xlane.f32.xlu0 %v3437_v15  ;;  %v1215_v45 = vmul.f32 %v994_v19, %v3248_v16 }
 0x242   : > { %v998_v47 = vmul.f32 0.5, %v997_v32  ;;  %793 = vadd.xlane.f32.xlu2 %v743_v4  ;;  %1402 = vmatmul.f32.gmra.mxu1 %v1316_v22  ;;  %v629_v31 = vpop.xlane.xlu1 %628  ;;  %v784_v60 = vpop.xlane.xlu0 %783 }
 0x243   : > { %v680_v43 = vmul.f32 %v3033_v57, %v629_v31  ;;  %v647_v23 = vpop.xlane.xlu2 %646  ;;  %v834_v51 = vmul.f32 %v784_v60, %v3033_v57  ;;  %v1250_v7 = vmul.f32 %v3210_v6, %v1215_v45 }
 0x244   : > { %v999_v35 = vsub.f32 1.5, %v998_v47  ;;  %v689_v13 = vmul.f32 %v3033_v57, %v647_v23  ;;  %v752_v47 = vmul.f32 %v3450_v52, %v3450_v52 }
 0x245   : > { %v2642_v16 = vpop.eup %2641  ;;  %v3457_v4 = vsub.f32 %v3323_v0, %v680_v43  ;;  %v866_v58 = vadd.f32 1e-05, %v834_v51  ;;  %v1285_v32 = vadd.f32 %v3217_v40, %v1250_v7 }
 0x246   : > { %v1000_v20 = vmul.f32 %v2640_v29, %v999_v35  ;;  %v1006_v22 = vmul.f32 %v2642_v16, %v3432_v56  ;;  %v3463_v19 = vsub.f32 %v3319_v49, %v689_v13  ;;  %vm1012_vm6 = vweird.f32 %v2642_v16 }
 0x247   : > { %2643 = vrsqrt.f32 %v866_v58  ;;  %v744_v45 = vmul.f32 %v3457_v4, %v3457_v4  ;;  %v1317_v43 = vmax.f32 %v1285_v32, 0.0  ;;  %vm1013_vm8 = vmor %vm1011_vm7, %vm1012_vm6  ;;  %vm1021_vm10 = vweird.f32 %v866_v58 }
 0x248   : > { %v1007_v31 = vmul.f32 %v2642_v16, %v1006_v22  ;;  %v753_v60 = vmul.f32 %v3463_v19, %v3463_v19  ;;  %v1004_v23 = vsel %vm1003_vm5, %v2640_v29, %v1000_v20 }
 0x249   : > { %795 = vadd.xlane.f32.xlu1 %v744_v45  ;;  %811 = vadd.xlane.f32.xlu0 %v752_v47  ;;  %v1216_v25 = vmul.f32 %v1004_v23, %v3272_v9 }
 0x24a   : > { %v1008_v51 = vmul.f32 0.5, %v1007_v31  ;;  %813 = vadd.xlane.f32.xlu2 %v753_v60  ;;  %1405 = vmatmul.f32.gmra.mxu1 %v1317_v43  ;;  %v631_v7 = vpop.xlane.xlu1 %630 }
 0x24b   : > { %v681_v35 = vmul.f32 %v3033_v57, %v631_v7  ;;  %v649_v13 = vpop.xlane.xlu2 %648  ;;  %v1251_v49 = vmul.f32 %v3210_v6, %v1216_v25 }
 0x24c   : > { %v1009_v0 = vsub.f32 1.5, %v1008_v51  ;;  %v690_v22 = vmul.f32 %v3033_v57, %v649_v13 }
 0x24d   : > { %v2644_v10 = vpop.eup %2643  ;;  %v3476_v29 = vsub.f32 %v3337_v46, %v681_v35  ;;  %v1286_v32 = vadd.f32 %v3217_v40, %v1251_v49 }
 0x24e   : > { %v1010_v9 = vmul.f32 %v2642_v16, %v1009_v0  ;;  %v1016_v20 = vmul.f32 %v2644_v10, %v866_v58  ;;  %v3481_v45 = vsub.f32 %v3333_v59, %v690_v22  ;;  %vm1022_vm9 = vweird.f32 %v2644_v10 }
 0x24f   : > { %v745_v47 = vmul.f32 %v3476_v29, %v3476_v29  ;;  %v1318_v31 = vmax.f32 %v1286_v32, 0.0  ;;  %vm1023_vm11 = vmor %vm1021_vm10, %vm1022_vm9 }
 0x250   : > { %v1017_v60 = vmul.f32 %v2644_v10, %v1016_v20  ;;  %v754_v43 = vmul.f32 %v3481_v45, %v3481_v45  ;;  %v1014_v23 = vsel %vm1013_vm8, %v2642_v16, %v1010_v9 }
 0x251   : > { %797 = vadd.xlane.f32.xlu0 %v745_v47  ;;  %v1217_v49 = vmul.f32 %v1014_v23, %v3294_v1 }
 0x252   : > { %v1018_v0 = vmul.f32 0.5, %v1017_v60  ;;  %815 = vadd.xlane.f32.xlu1 %v754_v43  ;;  %1408 = vmatmul.f32.gmra.mxu1 %v1318_v31  ;;  %v633_v56 = vpop.xlane.xlu1 %632  ;;  %v1376_v60 = vpop.f32.mrf.mxu1 }
 0x253   : > { %v682_v25 = vmul.f32 %v3033_v57, %v633_v56  ;;  %v1252_v51 = vmul.f32 %v3210_v6, %v1217_v49 }
 0x254   : > { %v1019_v7 = vsub.f32 1.5, %v1018_v0 }
 0x255   : > { %v3491_v35 = vsub.f32 %v3346_v50, %v682_v25  ;;  %v1287_v13 = vadd.f32 %v3217_v40, %v1252_v51 }
 0x256   : > { %v1020_v22 = vmul.f32 %v2644_v10, %v1019_v7 }
 0x257   : > { %v746_v1 = vmul.f32 %v3491_v35, %v3491_v35  ;;  %v1319_v16 = vmax.f32 %v1287_v13, 0.0 }
 0x258   : > { %v1024_v32 = vsel %vm1023_vm11, %v2644_v10, %v1020_v22 }
 0x259   : > { %799 = vadd.xlane.f32.xlu2 %v746_v1  ;;  %v1218_v9 = vmul.f32 %v1024_v32, %v3314_v38 }
 0x25a   : > { %1411 = vmatmul.f32.gmra.mxu1 %v1319_v16  ;;  %v3499_v43 = vpop.f32.mrf.mxu1 }
 0x25b   : > { %v1253_v20 = vmul.f32 %v3210_v6, %v1218_v9 }
 0x25d   : > { %v1288_v47 = vadd.f32 %v3217_v40, %v1253_v20 }
 0x25f   : > { %v1320_v31 = vmax.f32 %v1288_v47, 0.0 }
 0x262   : > { %1414 = vmatmul.f32.gmra.mxu1 %v1320_v31  ;;  %v3502_v0 = vpop.f32.mrf.mxu1 }
 0x26a   : > { %v3509_v20 = vpop.f32.mrf.mxu1 }
 0x294   : > { %v786_v58 = vpop.xlane.xlu0 %785 }
 0x295   : > { %v835_v23 = vmul.f32 %v786_v58, %v3033_v57 }
 0x297   : > { %v867_v49 = vadd.f32 1e-05, %v835_v23 }
 0x299   : > { %2645 = vrsqrt.f32 %v867_v49  ;;  %vm1031_vm13 = vweird.f32 %v867_v49 }
 0x29c   : > { %v788_v10 = vpop.xlane.xlu0 %787 }
 0x29d   : > { %v806_v56 = vpop.xlane.xlu2 %805  ;;  %v836_v38 = vmul.f32 %v788_v10, %v3033_v57 }
 0x29e   : > { %v845_v25 = vmul.f32 %v806_v56, %v3033_v57 }
 0x29f   : > { %v2646_v51 = vpop.eup %2645  ;;  %v868_v7 = vadd.f32 1e-05, %v836_v38 }
 0x2a0   : > { %v1026_v13 = vmul.f32 %v2646_v51, %v867_v49  ;;  %v3506_v22 = vadd.f32 1e-05, %v845_v25  ;;  %vm1032_vm12 = vweird.f32 %v2646_v51 }
 0x2a1   : > { %2647 = vrsqrt.f32 %v868_v7  ;;  %vm1033_vm14 = vmor %vm1031_vm13, %vm1032_vm12  ;;  %vm1041_vm1 = vweird.f32 %v868_v7 }
 0x2a2   : > { %v1027_v1 = vmul.f32 %v2646_v51, %v1026_v13  ;;  %2649 = vrsqrt.f32 %v3506_v22  ;;  %vm1131_vm2 = vweird.f32 %v3506_v22 }
 0x2a4   : > { %v1028_v16 = vmul.f32 0.5, %v1027_v1  ;;  %v790_v32 = vpop.xlane.xlu1 %789  ;;  %v651_v9 = vpop.xlane.xlu0 %650  ;;  %v3524_v1 = vld [vmem:[%s4816_s4] ss:$0 sm:$0xff] }
 0x2a5   : > { %v837_v47 = vmul.f32 %v790_v32, %v3033_v57  ;;  %v635_v31 = vpop.xlane.xlu2 %634  ;;  %v691_v58 = vmul.f32 %v3033_v57, %v651_v9 }
 0x2a6   : > { %v1029_v23 = vsub.f32 1.5, %v1028_v16  ;;  %v683_v10 = vmul.f32 %v3033_v57, %v635_v31 }
 0x2a7   : > { %v3514_v56 = vpop.eup %2647  ;;  %v3516_v38 = vadd.f32 1e-05, %v837_v47  ;;  %v3519_v25 = vsub.f32 %v3383_v34, %v691_v58 }
 0x2a8   : > { %v2650_v13 = vpop.eup %2649  ;;  %v1030_v32 = vmul.f32 %v2646_v51, %v1029_v23  ;;  %v1036_v16 = vmul.f32 %v3514_v56, %v868_v7  ;;  %v3528_v9 = vsub.f32 %v3393_v55, %v683_v10  ;;  %v1377_v10 = vadd.f32 %v3524_v1, %v1376_v60 }
 0x2a9   : > { %v1126_v47 = vmul.f32 %v2650_v13, %v3506_v22  ;;  %2651 = vrsqrt.f32 %v3516_v38  ;;  %v755_v34 = vmul.f32 %v3519_v25, %v3519_v25  ;;  %vm1132_vm15 = vweird.f32 %v2650_v13 }
 0x2aa   : > { %v1037_v31 = vmul.f32 %v3514_v56, %v1036_v16  ;;  %v747_v58 = vmul.f32 %v3528_v9, %v3528_v9  ;;  %v1034_v23 = vsel %vm1033_vm14, %v2646_v51, %v1030_v32  ;;  %vm1042_vm0 = vweird.f32 %v3514_v56  ;;  %v1388_v32 = vpop.f32.mrf.mxu1  ;;  %vm1133_vm4 = vmor %vm1131_vm2, %vm1132_vm15 }
 0x2ab   : > { %v1127_v49 = vmul.f32 %v2650_v13, %v1126_v47  ;;  %v1219_v50 = vmul.f32 %v1034_v23, %v3353_v8  ;;  %817 = vadd.xlane.f32.xlu0 %v755_v34  ;;  %vm3558_vm3 = vmor %vm1041_vm1, %vm1042_vm0  ;;  %vm1051_vm6 = vweird.f32 %v3516_v38 }
 0x2ac   : > { %v1038_v55 = vmul.f32 0.5, %v1037_v31  ;;  %801 = vadd.xlane.f32.xlu1 %v747_v58  ;;  %v653_v59 = vpop.xlane.xlu1 %652  ;;  %v808_v46 = vpop.xlane.xlu0 %807 }
 0x2ad   : > { %v1128_v12 = vmul.f32 0.5, %v1127_v49  ;;  %v692_v16 = vmul.f32 %v3033_v57, %v653_v59  ;;  %v792_v14 = vpop.xlane.xlu2 %791  ;;  %v846_v42 = vmul.f32 %v808_v46, %v3033_v57  ;;  %v1254_v54 = vmul.f32 %v3210_v6, %v1219_v50 }
 0x2ae   : > { %v1039_v51 = vsub.f32 1.5, %v1038_v55  ;;  %v838_v8 = vmul.f32 %v792_v14, %v3033_v57 }
 0x2af   : > { %v3544_v60 = vpop.eup %2651  ;;  %v1129_v34 = vsub.f32 1.5, %v1128_v12  ;;  %v3547_v47 = vsub.f32 %v3410_v3, %v692_v16  ;;  %v3549_v31 = vadd.f32 1e-05, %v846_v42  ;;  %v1289_v59 = vadd.f32 %v3217_v40, %v1254_v54 }
 0x2b0   : > { %v1040_v46 = vmul.f32 %v3514_v56, %v1039_v51  ;;  %v1046_v50 = vmul.f32 %v3544_v60, %v3516_v38  ;;  %v3555_v55 = vadd.f32 1e-05, %v838_v8  ;;  %v3564_v42 = vadd.f32 %v1377_v10, %v2976_v21 }
 0x2b1   : > { %v1130_v14 = vmul.f32 %v2650_v13, %v1129_v34  ;;  %2653 = vrsqrt.f32 %v3549_v31  ;;  %v1380_v54 = vadd.f32 %v3524_v1, %v3499_v43  ;;  %v756_v22 = vmul.f32 %v3547_v47, %v3547_v47 }
 0x2b2   : > { %v1047_v7 = vmul.f32 %v3544_v60, %v1046_v50  ;;  %2655 = vrsqrt.f32 %v3555_v55  ;;  %v1321_v23 = vmax.f32 %v1289_v59, 0.0  ;;  %v1044_v49 = vsel %vm3558_vm3, %v3514_v56, %v1040_v46 }
 0x2b3   : > { %v1134_v58 = vsel %vm1133_vm4, %v2650_v13, %v1130_v14  ;;  %819 = vadd.xlane.f32.xlu2 %v756_v22  ;;  %v1220_v51 = vmul.f32 %v1044_v49, %v3361_v63  ;;  %v1386_v8 = vadd.f32 %v3524_v1, %v3509_v20  ;;  %v3585_v50 = vadd.f32 %v1380_v54, %v2982_v24 }
 0x2b4   : > { %v1048_v21 = vmul.f32 0.5, %v1047_v7  ;;  %1504 = vadd.xlane.f32.xlu1 %v3564_v42  ;;  %v810_v43 = vpop.xlane.xlu1 %809  ;;  %v637_v10 = vpop.xlane.xlu0 %636  ;;  %v1229_v16 = vmul.f32 %v1134_v58, %v3366_v26  ;;  %1417 = vmatmul.f32.gmra.mxu1 %v1321_v23  ;;  %vm1052_vm5 = vweird.f32 %v3544_v60  ;;  %v1383_v58 = vadd.f32 %v3524_v1, %v3502_v0 }
 0x2b5   : > { %v847_v13 = vmul.f32 %v810_v43, %v3033_v57  ;;  %v794_v34 = vpop.xlane.xlu2 %793  ;;  %v684_v59 = vmul.f32 %v3033_v57, %v637_v10  ;;  %v1255_v12 = vmul.f32 %v3210_v6, %v1220_v51  ;;  %v1391_v23 = vpop.f32.mrf.mxu1  ;;  %vm3616_vm7 = vmor %vm1051_vm6, %vm1052_vm5  ;;  %vm1061_vm10 = vweird.f32 %v3555_v55 }
 0x2b6   : > { %v1049_v56 = vsub.f32 1.5, %v1048_v21  ;;  %v839_v46 = vmul.f32 %v794_v34, %v3033_v57  ;;  %v1264_v20 = vmul.f32 %v3210_v6, %v1229_v16  ;;  %v3610_v6 = vadd.f32 %v1386_v8, %v2994_v30 }
 0x2b7   : > { %v3587_v14 = vpop.eup %2653  ;;  %v3589_v26 = vadd.f32 1e-05, %v847_v13  ;;  %v3592_v63 = vsub.f32 %v3437_v15, %v684_v59  ;;  %v1389_v21 = vadd.f32 %v3524_v1, %v1388_v32  ;;  %v1290_v51 = vadd.f32 %v3217_v40, %v1255_v12 }
 0x2b8   : > { %v3596_v7 = vpop.eup %2655  ;;  %v1050_v22 = vmul.f32 %v3544_v60, %v1049_v56  ;;  %v1136_v24 = vmul.f32 %v3587_v14, %v3549_v31  ;;  %v3602_v54 = vadd.f32 1e-05, %v839_v46  ;;  %v1299_v16 = vadd.f32 %v3217_v40, %v1264_v20 }
 0x2b9   : > { %v1056_v49 = vmul.f32 %v3596_v7, %v3555_v55  ;;  %2657 = vrsqrt.f32 %v3589_v26  ;;  %v748_v30 = vmul.f32 %v3592_v63, %v3592_v63  ;;  %v1322_v56 = vmax.f32 %v1290_v51, 0.0 }
 0x2ba   : > { %v1137_v43 = vmul.f32 %v3587_v14, %v1136_v24  ;;  %2659 = vrsqrt.f32 %v3602_v54  ;;  %v1054_v13 = vsel %vm3616_vm7, %v3544_v60, %v1050_v22  ;;  %v1331_v59 = vmax.f32 %v1299_v16, 0.0 }
 0x2bb   : > { %v1057_v0 = vmul.f32 %v3596_v7, %v1056_v49  ;;  %1506 = vadd.xlane.f32.xlu2 %v3585_v50  ;;  %803 = vadd.xlane.f32.xlu0 %v748_v30  ;;  %v3633_v24 = vadd.f32 %v1389_v21, %v3000_v33  ;;  %v3636_v49 = vadd.f32 %v1383_v58, %v2988_v27  ;;  %vm1062_vm8 = vweird.f32 %v3596_v7 }
 0x2bc   : > { %v1138_v32 = vmul.f32 0.5, %v1137_v43  ;;  %1510 = vadd.xlane.f32.xlu1 %v3610_v6  ;;  %v796_v38 = vpop.xlane.xlu1 %795  ;;  %v812_v8 = vpop.xlane.xlu0 %811  ;;  %1447 = vmatmul.f32.vlgmr.msrb.gmra.mxu3 %v1331_v59  ;;  %vm1142_vm9 = vweird.f32 %v3587_v14  ;;  %vm3661_vm11 = vmor %vm1061_vm10, %vm1062_vm8  ;;  %vm1141_vm12 = vweird.f32 %v3549_v31  ;;  %vm1071_vm15 = vweird.f32 %v3602_v54 }
 0x2bd   : > { %v1058_v34 = vmul.f32 0.5, %v1057_v0  ;;  %v840_v40 = vmul.f32 %v796_v38, %v3033_v57  ;;  %v814_v46 = vpop.xlane.xlu2 %813  ;;  %1420 = vmatmul.f32.gmra.mxu1 %v1322_v56  ;;  %v848_v22 = vmul.f32 %v812_v8, %v3033_v57  ;;  %v1221_v0 = vmul.f32 %v1054_v13, %v3378_v53  ;;  %vm3677_vm13 = vmor %vm1141_vm12, %vm1142_vm9 }
 0x2be   : > { %v1139_v20 = vsub.f32 1.5, %v1138_v32  ;;  %v849_v12 = vmul.f32 %v814_v46, %v3033_v57  ;;  %v1392_v53 = vadd.f32 %v3524_v1, %v1391_v23  ;;  %v1394_v32 = vpop.f32.mrf.mxu1  ;;  %v3672_v23 = vld [vmem:[%s4817_s5] ss:$0 sm:$0xff]  ;;  %vm1151_vm2 = vweird.f32 %v3589_v26 }
 0x2bf   : > { %v3638_v43 = vpop.eup %2657  ;;  %v1059_v10 = vsub.f32 1.5, %v1058_v34  ;;  %v3640_v60 = vadd.f32 1e-05, %v840_v40  ;;  %v3667_v13 = vadd.f32 1e-05, %v848_v22  ;;  %v1256_v55 = vmul.f32 %v3672_v23, %v1221_v0 }
 0x2c0   : > { %v3644_v16 = vpop.eup %2659  ;;  %v1146_v27 = vmul.f32 %v3638_v43, %v3589_v26  ;;  %v3650_v33 = vadd.f32 1e-05, %v849_v12  ;;  %v1140_v21 = vmul.f32 %v3587_v14, %v1139_v20  ;;  %v3689_v46 = vld [vmem:[%s4818_s6] ss:$0 sm:$0xff]  ;;  %v1395_v22 = vadd.f32 %v3524_v1, %v1394_v32 }
 0x2c1   : > { %v1060_v58 = vmul.f32 %v3596_v7, %v1059_v10  ;;  %v1066_v51 = vmul.f32 %v3644_v16, %v3602_v54  ;;  %2661 = vrsqrt.f32 %v3640_v60  ;;  %v1291_v20 = vadd.f32 %v3689_v46, %v1256_v55 }
 0x2c2   : > { %v1147_v30 = vmul.f32 %v3638_v43, %v1146_v27  ;;  %2663 = vrsqrt.f32 %v3650_v33  ;;  %v1144_v10 = vsel %vm3677_vm13, %v3587_v14, %v1140_v21  ;;  %v3703_v38 = vadd.f32 %v1392_v53, %v3006_v36 }
 0x2c3   : > { %v1067_v8 = vmul.f32 %v3644_v16, %v1066_v51  ;;  %1512 = vadd.xlane.f32.xlu2 %v3633_v24  ;;  %v1064_v56 = vsel %vm3661_vm11, %v3596_v7, %v1060_v58  ;;  %2665 = vrsqrt.f32 %v3667_v13  ;;  %1508 = vadd.xlane.f32.xlu0 %v3636_v49  ;;  %v1323_v51 = vmax.f32 %v1291_v20, 0.0 }
 0x2c4   : > { %v1148_v59 = vmul.f32 0.5, %v1147_v30  ;;  %v798_v31 = vpop.xlane.xlu0 %797  ;;  %v1222_v30 = vmul.f32 %v1064_v56, %v3405_v61  ;;  %v1230_v32 = vmul.f32 %v1144_v10, %v3399_v41  ;;  %vm1072_vm14 = vweird.f32 %v3644_v16 }
 0x2c5   : > { %v1068_v40 = vmul.f32 0.5, %v1067_v8  ;;  %v816_v12 = vpop.xlane.xlu1 %815  ;;  %v841_v0 = vmul.f32 %v798_v31, %v3033_v57  ;;  %1423 = vmatmul.f32.gmra.mxu1 %v1323_v51  ;;  %vm1152_vm0 = vweird.f32 %v3638_v43  ;;  %vm3731_vm1 = vmor %vm1071_vm15, %vm1072_vm14  ;;  %vm1081_vm5 = vweird.f32 %v3640_v60 }
 0x2c6   : > { %v850_v7 = vmul.f32 %v816_v12, %v3033_v57  ;;  %v1149_v55 = vsub.f32 1.5, %v1148_v59  ;;  %v3722_v59 = vadd.f32 %v1395_v22, %v3012_v39  ;;  %v1257_v56 = vmul.f32 %v3672_v23, %v1222_v30  ;;  %vm3750_vm3 = vmor %vm1151_vm2, %vm1152_vm0 }
 0x2c7   : > { %v3699_v27 = vpop.eup %2661  ;;  %v1069_v58 = vsub.f32 1.5, %v1068_v40  ;;  %v3716_v36 = vadd.f32 1e-05, %v841_v0  ;;  %v1265_v12 = vmul.f32 %v3672_v23, %v1230_v32  ;;  %vm1161_vm8 = vweird.f32 %v3667_v13 }
 0x2c8   : > { %v3705_v8 = vpop.eup %2663  ;;  %v1076_v14 = vmul.f32 %v3699_v27, %v3640_v60  ;;  %v3709_v21 = vadd.f32 1e-05, %v850_v7  ;;  %v1150_v40 = vmul.f32 %v3638_v43, %v1149_v55  ;;  %v1292_v7 = vadd.f32 %v3689_v46, %v1257_v56 }
 0x2c9   : > { %v1070_v34 = vmul.f32 %v3644_v16, %v1069_v58  ;;  %v1166_v61 = vmul.f32 %v3705_v8, %v3650_v33  ;;  %v3724_v41 = vpop.eup %2665  ;;  %v1300_v55 = vadd.f32 %v3689_v46, %v1265_v12  ;;  %vm1082_vm4 = vweird.f32 %v3699_v27 }
 0x2ca   : > { %v1077_v53 = vmul.f32 %v3699_v27, %v1076_v14  ;;  %2667 = vrsqrt.f32 %v3709_v21  ;;  %v1156_v39 = vmul.f32 %v3724_v41, %v3667_v13  ;;  %v1324_v32 = vmax.f32 %v1292_v7, 0.0  ;;  %vm1083_vm6 = vmor %vm1081_vm5, %vm1082_vm4 }
 0x2cb   : > { %v1167_v31 = vmul.f32 %v3705_v8, %v1166_v61  ;;  %2669 = vrsqrt.f32 %v3716_v36  ;;  %1516 = vadd.xlane.f32.xlu2 %v3722_v59  ;;  %1514 = vadd.xlane.f32.xlu0 %v3703_v38  ;;  %v1074_v58 = vsel %vm3731_vm1, %v3644_v16, %v1070_v34  ;;  %v1154_v56 = vsel %vm3750_vm3, %v3638_v43, %v1150_v40 }
 0x2cc   : > { %v1078_v20 = vmul.f32 0.5, %v1077_v53  ;;  %v800_v10 = vpop.xlane.xlu2 %799  ;;  %v1157_v30 = vmul.f32 %v3724_v41, %v1156_v39  ;;  %v1223_v16 = vmul.f32 %v1074_v58, %v3430_v62  ;;  %vm1162_vm7 = vweird.f32 %v3724_v41 }
 0x2cd   : > { %v1168_v22 = vmul.f32 0.5, %v1167_v31  ;;  %v842_v0 = vmul.f32 %v800_v10, %v3033_v57  ;;  %v1332_v31 = vmax.f32 %v1300_v55, 0.0  ;;  %1426 = vmatmul.f32.gmra.mxu1 %v1324_v32  ;;  %v1231_v40 = vmul.f32 %v1154_v56, %v3424_v17  ;;  %vm1163_vm10 = vmor %vm1161_vm8, %vm1162_vm7 }
 0x2ce   : > { %v1079_v51 = vsub.f32 1.5, %v1078_v20  ;;  %v1158_v53 = vmul.f32 0.5, %v1157_v30  ;;  %v1258_v60 = vmul.f32 %v3672_v23, %v1223_v16  ;;  %vm1172_vm9 = vweird.f32 %v3705_v8 }
 0x2cf   : > { %v3755_v61 = vadd.f32 1e-05, %v842_v0  ;;  %v1169_v20 = vsub.f32 1.5, %v1168_v22  ;;  %1450 = vmatmul.f32.gmra.mxu3 %v1332_v31  ;;  %v1266_v30 = vmul.f32 %v3672_v23, %v1231_v40  ;;  %vm1171_vm11 = vweird.f32 %v3650_v33 }
 0x2d0   : > { %v3758_v34 = vpop.eup %2667  ;;  %v1080_v26 = vmul.f32 %v3699_v27, %v1079_v51  ;;  %v1159_v62 = vsub.f32 1.5, %v1158_v53  ;;  %v1293_v51 = vadd.f32 %v3689_v46, %v1258_v60  ;;  %vm3791_vm13 = vmor %vm1171_vm11, %vm1172_vm9  ;;  %vm1091_vm14 = vweird.f32 %v3716_v36 }
 0x2d1   : > { %v2670_v54 = vpop.eup %2669  ;;  %v1176_v39 = vmul.f32 %v3758_v34, %v3709_v21  ;;  %2671 = vrsqrt.f32 %v3755_v61  ;;  %v1170_v58 = vmul.f32 %v3705_v8, %v1169_v20  ;;  %v1301_v16 = vadd.f32 %v3689_v46, %v1266_v30 }
 0x2d2   : > { %v1086_v12 = vmul.f32 %v2670_v54, %v3716_v36  ;;  %v1084_v10 = vsel %vm1083_vm6, %v3699_v27, %v1080_v26  ;;  %v1160_v22 = vmul.f32 %v3724_v41, %v1159_v62  ;;  %v1325_v13 = vmax.f32 %v1293_v51, 0.0 }
 0x2d3   : > { %v1177_v43 = vmul.f32 %v3758_v34, %v1176_v39  ;;  %v1224_v0 = vmul.f32 %v1084_v10, %v3457_v4  ;;  %vm1092_vm12 = vweird.f32 %v2670_v54  ;;  %v1174_v62 = vsel %vm3791_vm13, %v3705_v8, %v1170_v58 }
 0x2d4   : > { %v1087_v7 = vmul.f32 %v2670_v54, %v1086_v12  ;;  %v1164_v14 = vsel %vm1163_vm10, %v3724_v41, %v1160_v22  ;;  %v1333_v41 = vmax.f32 %v1301_v16, 0.0  ;;  %vm1093_vm15 = vmor %vm1091_vm14, %vm1092_vm12  ;;  %vm1182_vm0 = vweird.f32 %v3758_v34 }
 0x2d5   : > { %v1178_v55 = vmul.f32 0.5, %v1177_v43  ;;  %v1259_v27 = vmul.f32 %v3672_v23, %v1224_v0  ;;  %v1232_v4 = vmul.f32 %v1164_v14, %v3450_v52  ;;  %1429 = vmatmul.f32.gmra.mxu1 %v1325_v13  ;;  %v1233_v10 = vmul.f32 %v1174_v62, %v3463_v19 }
 0x2d6   : > { %v1088_v17 = vmul.f32 0.5, %v1087_v7  ;;  %vm1181_vm2 = vweird.f32 %v3709_v21  ;;  %vm1101_vm4 = vweird.f32 %v3755_v61 }
 0x2d7   : > { %v2672_v32 = vpop.eup %2671  ;;  %v1294_v56 = vadd.f32 %v3689_v46, %v1259_v27  ;;  %v1267_v52 = vmul.f32 %v3672_v23, %v1232_v4  ;;  %v1179_v20 = vsub.f32 1.5, %v1178_v55  ;;  %1453 = vmatmul.f32.gmra.mxu3 %v1333_v41  ;;  %vm1183_vm3 = vmor %vm1181_vm2, %vm1182_vm0 }
 0x2d8   : > { %v1089_v26 = vsub.f32 1.5, %v1088_v17  ;;  %v1096_v53 = vmul.f32 %v2672_v32, %v3755_v61  ;;  %vm1102_vm1 = vweird.f32 %v2672_v32 }
 0x2d9   : > { %v1302_v12 = vadd.f32 %v3689_v46, %v1267_v52  ;;  %v1326_v36 = vmax.f32 %v1294_v56, 0.0  ;;  %v1180_v22 = vmul.f32 %v3758_v34, %v1179_v20  ;;  %vm1103_vm5 = vmor %vm1101_vm4, %vm1102_vm1 }
 0x2da   : > { %v1090_v33 = vmul.f32 %v2670_v54, %v1089_v26  ;;  %v1097_v39 = vmul.f32 %v2672_v32, %v1096_v53 }
 0x2db   : > { %v1334_v8 = vmax.f32 %v1302_v12, 0.0  ;;  %v1184_v51 = vsel %vm1183_vm3, %v3758_v34, %v1180_v22 }
 0x2dc   : > { %v1098_v43 = vmul.f32 0.5, %v1097_v39  ;;  %v1094_v60 = vsel %vm1093_vm15, %v2670_v54, %v1090_v33  ;;  %v1234_v27 = vmul.f32 %v1184_v51, %v3481_v45 }
 0x2dd   : > { %v1225_v40 = vmul.f32 %v1094_v60, %v3476_v29  ;;  %1432 = vmatmul.f32.gmra.mxu1 %v1326_v36  ;;  %v1268_v29 = vmul.f32 %v3672_v23, %v1233_v10 }
 0x2de   : > { %v1099_v7 = vsub.f32 1.5, %v1098_v43  ;;  %v1269_v13 = vmul.f32 %v3672_v23, %v1234_v27 }
 0x2df   : > { %v1260_v0 = vmul.f32 %v3672_v23, %v1225_v40  ;;  %1456 = vmatmul.f32.gmra.mxu3 %v1334_v8  ;;  %v1303_v55 = vadd.f32 %v3689_v46, %v1268_v29 }
 0x2e0   : > { %v1100_v58 = vmul.f32 %v2672_v32, %v1099_v7  ;;  %v1304_v34 = vadd.f32 %v3689_v46, %v1269_v13 }
 0x2e1   : > { %v1295_v54 = vadd.f32 %v3689_v46, %v1260_v0  ;;  %v1335_v61 = vmax.f32 %v1303_v55, 0.0 }
 0x2e2   : > { %v1104_v19 = vsel %vm1103_vm5, %v2672_v32, %v1100_v58  ;;  %v1336_v16 = vmax.f32 %v1304_v34, 0.0 }
 0x2e3   : > { %v1226_v30 = vmul.f32 %v1104_v19, %v3491_v35  ;;  %v1327_v21 = vmax.f32 %v1295_v54, 0.0  ;;  %v1397_v35 = vpop.f32.mrf.mxu1 }
 0x2e4   : > { %v1398_v51 = vadd.f32 %v3524_v1, %v1397_v35 }
 0x2e5   : > { %v1261_v17 = vmul.f32 %v3672_v23, %v1226_v30  ;;  %1435 = vmatmul.f32.gmra.mxu1 %v1327_v21 }
 0x2e7   : > { %v1296_v14 = vadd.f32 %v3689_v46, %v1261_v17  ;;  %1459 = vmatmul.f32.gmra.mxu3 %v1335_v61 }
 0x2e9   : > { %v1328_v32 = vmax.f32 %v1296_v14, 0.0 }
 0x2eb   : > { %v1400_v4 = vpop.f32.mrf.mxu1 }
 0x2ed   : > { %1438 = vmatmul.f32.gmra.mxu1 %v1328_v32 }
 0x2ef   : > { %1462 = vmatmul.f32.gmra.mxu3 %v1336_v16 }
 0x2f3   : > { %v3821_v52 = vpop.f32.mrf.mxu1 }
 0x2fb   : > { %v3830_v54 = vpop.f32.mrf.mxu1 }
 0x31e   : > { %v818_v53 = vpop.xlane.xlu0 %817 }
 0x31f   : > { %v802_v26 = vpop.xlane.xlu1 %801  ;;  %v851_v45 = vmul.f32 %v818_v53, %v3033_v57 }
 0x320   : > { %v843_v31 = vmul.f32 %v802_v26, %v3033_v57 }
 0x321   : > { %v883_v56 = vadd.f32 1e-05, %v851_v45 }
 0x322   : > { %v875_v41 = vadd.f32 1e-05, %v843_v31 }
 0x323   : > { %vm1191_vm10 = vweird.f32 %v883_v56 }
 0x324   : > { %2673 = vrsqrt.f32 %v875_v41  ;;  %vm1111_vm8 = vweird.f32 %v875_v41 }
 0x325   : > { %2675 = vrsqrt.f32 %v883_v56 }
 0x326   : > { %v820_v33 = vpop.xlane.xlu2 %819 }
 0x327   : > { %v1505_v20 = vpop.xlane.xlu1 %1504  ;;  %v852_v62 = vmul.f32 %v820_v33, %v3033_v57 }
 0x328   : > { %v1568_v39 = vmul.f32 %v1505_v20, %v3033_v57  ;;  %v1401_v20 = vadd.f32 %v3524_v1, %v1400_v4 }
 0x329   : > { %v884_v60 = vadd.f32 1e-05, %v852_v62 }
 0x32a   : > { %v2674_v12 = vpop.eup %2673  ;;  %v3826_v43 = vsub.f32 %v3564_v42, %v1568_v39 }
 0x32b   : > { %v2676_v36 = vpop.eup %2675  ;;  %v1106_v40 = vmul.f32 %v2674_v12, %v875_v41  ;;  %2677 = vrsqrt.f32 %v884_v60  ;;  %vm1112_vm6 = vweird.f32 %v2674_v12  ;;  %vm1201_vm13 = vweird.f32 %v884_v60 }
 0x32c   : > { %v1186_v10 = vmul.f32 %v2676_v36, %v883_v56  ;;  %v1632_v7 = vmul.f32 %v3826_v43, %v3826_v43  ;;  %vm1192_vm7 = vweird.f32 %v2676_v36  ;;  %vm1113_vm9 = vmor %vm1111_vm8, %vm1112_vm6 }
 0x32d   : > { %v1107_v22 = vmul.f32 %v2674_v12, %v1106_v40  ;;  %vm1193_vm11 = vmor %vm1191_vm10, %vm1192_vm7 }
 0x32e   : > { %v1187_v8 = vmul.f32 %v2676_v36, %v1186_v10  ;;  %1664 = vadd.xlane.f32.xlu1 %v1632_v7  ;;  %v1507_v58 = vpop.xlane.xlu2 %1506  ;;  %v804_v42 = vpop.xlane.xlu0 %803 }
 0x32f   : > { %v1108_v0 = vmul.f32 0.5, %v1107_v22  ;;  %v1569_v19 = vmul.f32 %v1507_v58, %v3033_v57  ;;  %v1511_v21 = vpop.xlane.xlu1 %1510  ;;  %v844_v55 = vmul.f32 %v804_v42, %v3033_v57 }
 0x330   : > { %v1188_v29 = vmul.f32 0.5, %v1187_v8  ;;  %v1571_v16 = vmul.f32 %v1511_v21, %v3033_v57 }
 0x331   : > { %v1109_v30 = vsub.f32 1.5, %v1108_v0  ;;  %v2678_v17 = vpop.eup %2677  ;;  %v3836_v61 = vsub.f32 %v3585_v50, %v1569_v19  ;;  %v3838_v32 = vadd.f32 1e-05, %v844_v55  ;;  %v3845_v50 = vadd.f32 %v1398_v51, %v3049_v5 }
 0x332   : > { %v1189_v27 = vsub.f32 1.5, %v1188_v29  ;;  %v1196_v13 = vmul.f32 %v2678_v17, %v884_v60  ;;  %v3852_v33 = vsub.f32 %v3610_v6, %v1571_v16  ;;  %vm1202_vm12 = vweird.f32 %v2678_v17 }
 0x333   : > { %v1110_v14 = vmul.f32 %v2674_v12, %v1109_v30  ;;  %v1633_v35 = vmul.f32 %v3836_v61, %v3836_v61  ;;  %2679 = vrsqrt.f32 %v3838_v32  ;;  %vm1203_vm14 = vmor %vm1201_vm13, %vm1202_vm12  ;;  %v3865_v0 = vadd.f32 %v1401_v20, %v3061_v11 }
 0x334   : > { %v1190_v34 = vmul.f32 %v2676_v36, %v1189_v27  ;;  %v1197_v26 = vmul.f32 %v2678_v17, %v1196_v13  ;;  %v1635_v29 = vmul.f32 %v3852_v33, %v3852_v33  ;;  %v1407_v55 = vadd.f32 %v3524_v1, %v3830_v54 }
 0x335   : > { %v1114_v53 = vsel %vm1113_vm9, %v2674_v12, %v1110_v14  ;;  %1666 = vadd.xlane.f32.xlu0 %v1633_v35  ;;  %vm1121_vm0 = vweird.f32 %v3838_v32 }
 0x336   : > { %v1227_v31 = vmul.f32 %v1114_v53, %v3528_v9  ;;  %v1194_v45 = vsel %vm1193_vm11, %v2676_v36, %v1190_v34  ;;  %v1198_v41 = vmul.f32 0.5, %v1197_v26  ;;  %1518 = vadd.xlane.f32.xlu1 %v3845_v50  ;;  %v1513_v39 = vpop.xlane.xlu2 %1512  ;;  %v1509_v62 = vpop.xlane.xlu0 %1508  ;;  %v3887_v26 = vadd.f32 %v1407_v55, %v3084_v28 }
 0x337   : > { %v1235_v56 = vmul.f32 %v1194_v45, %v3519_v25  ;;  %v1570_v12 = vmul.f32 %v1509_v62, %v3033_v57  ;;  %v1409_v36 = vpop.f32.mrf.mxu1  ;;  %v1572_v8 = vmul.f32 %v1513_v39, %v3033_v57 }
 0x338   : > { %v1262_v5 = vmul.f32 %v3672_v23, %v1227_v31  ;;  %v1199_v40 = vsub.f32 1.5, %v1198_v41  ;;  %v1410_v45 = vadd.f32 %v3524_v1, %v1409_v36  ;;  %v2251_v36 = vld [vmem:[%s4819_s7 + $0x58] sm:$0xff] }
 0x339   : > { %v1270_v9 = vmul.f32 %v3672_v23, %v1235_v56  ;;  %v2680_v22 = vpop.eup %2679  ;;  %v3859_v4 = vsub.f32 %v3636_v49, %v1570_v12  ;;  %v3874_v11 = vsub.f32 %v3633_v24, %v1572_v8  ;;  %v2255_v12 = vld [vmem:[%s4819_s7 + $0x78] sm:$0xff]  ;;  %v2245_v8 = vld [vmem:[%s4819_s7 + $0x28] sm:$0xff] }
 0x33a   : > { %v1297_v10 = vadd.f32 %v3689_v46, %v1262_v5  ;;  %v1200_v25 = vmul.f32 %v2678_v17, %v1199_v40  ;;  %v1116_v7 = vmul.f32 %v2680_v22, %v3838_v32  ;;  %vm1122_vm15 = vweird.f32 %v2680_v22  ;;  %2260 = vmatpush.msra.mxu2 %v2255_v12  ;;  %2552 = vmatpush.msra.mxu3 %v2255_v12 }
 0x33b   : > { %v1305_v6 = vadd.f32 %v3689_v46, %v1270_v9  ;;  %v1634_v60 = vmul.f32 %v3859_v4, %v3859_v4  ;;  %v1636_v24 = vmul.f32 %v3874_v11, %v3874_v11  ;;  %vm1123_vm1 = vmor %vm1121_vm0, %vm1122_vm15  ;;  %v3906_v20 = vadd.f32 %v1410_v45, %v3094_v37  ;;  %v2254_v9 = vld [vmem:[%s4819_s7 + $0x70] sm:$0xff] }
 0x33c   : > { %v1329_v58 = vmax.f32 %v1297_v10, 0.0  ;;  %v1204_v49 = vsel %vm1203_vm14, %v2678_v17, %v1200_v25  ;;  %v1117_v42 = vmul.f32 %v2680_v22, %v1116_v7  ;;  %v1404_v17 = vadd.f32 %v3524_v1, %v3821_v52  ;;  %2261 = vmatpush.msra.mxu2 %v2254_v9  ;;  %2553 = vmatpush.msra.mxu3 %v2254_v9  ;;  %v2250_v10 = vld [vmem:[%s4819_s7 + $0x50] sm:$0xff]  ;;  %v2248_v25 = vld [vmem:[%s4819_s7 + $0x40] sm:$0xff] }
 0x33d   : > { %v1337_v19 = vmax.f32 %v1305_v6, 0.0  ;;  %1520 = vadd.xlane.f32.xlu0 %v3865_v0  ;;  %v1236_v51 = vmul.f32 %v1204_v49, %v3547_v47  ;;  %1668 = vadd.xlane.f32.xlu2 %v1634_v60  ;;  %v2247_v6 = vld [vmem:[%s4819_s7 + $0x38] sm:$0xff]  ;;  %v2246_v7 = vld [vmem:[%s4819_s7 + $0x30] sm:$0xff] }
 0x33e   : > { %1441 = vmatmul.f32.gmra.mxu1 %v1329_v58  ;;  %1670 = vadd.xlane.f32.xlu1 %v1635_v29  ;;  %v1118_v30 = vmul.f32 0.5, %v1117_v42  ;;  %v1517_v14 = vpop.xlane.xlu2 %1516  ;;  %v1515_v13 = vpop.xlane.xlu0 %1514  ;;  %v3891_v53 = vadd.f32 %v1404_v17, %v3073_v18  ;;  %v2243_v49 = vld [vmem:[%s4819_s7 + $0x18] sm:$0xff] }
 0x33f   : > { %1465 = vmatmul.f32.gmra.mxu3 %v1337_v19  ;;  %v1271_v21 = vmul.f32 %v3672_v23, %v1236_v51  ;;  %v1412_v34 = vpop.f32.mrf.mxu1  ;;  %v1574_v54 = vmul.f32 %v1517_v14, %v3033_v57  ;;  %v1573_v52 = vmul.f32 %v1515_v13, %v3033_v57  ;;  %v2244_v19 = vld [vmem:[%s4819_s7 + $0x20] sm:$0xff]  ;;  %v2242_v51 = vld [vmem:[%s4819_s7 + $0x10] sm:$0xff] }
 0x340   : > { %v1119_v27 = vsub.f32 1.5, %v1118_v30  ;;  %v1413_v5 = vadd.f32 %v3524_v1, %v1412_v34  ;;  %v2241_v30 = vld [vmem:[%s4819_s7 + $0x8] sm:$0xff] }
 0x341   : > { %v1306_v47 = vadd.f32 %v3689_v46, %v1271_v21  ;;  %v3898_v41 = vsub.f32 %v3722_v59, %v1574_v54  ;;  %v3902_v56 = vsub.f32 %v3703_v38, %v1573_v52 }
 0x342   : > { %v1120_v16 = vmul.f32 %v2680_v22, %v1119_v27  ;;  %v3919_v40 = vadd.f32 %v1413_v5, %v3106_v44  ;;  %v2253_v44 = vld [vmem:[%s4819_s7 + $0x68] sm:$0xff]  ;;  %v2240_v27 = vld [vmem:[%s4819_s7] sm:$0xff] }
 0x343   : > { %v1338_v35 = vmax.f32 %v1306_v47, 0.0  ;;  %v1637_v59 = vmul.f32 %v3902_v56, %v3902_v56  ;;  %2262 = vmatpush.msra.mxu2 %v2253_v44  ;;  %2554 = vmatpush.msra.mxu3 %v2253_v44 }
 0x344   : > { %v1124_v31 = vsel %vm1123_vm1, %v2680_v22, %v1120_v16  ;;  %v2249_v22 = vld [vmem:[%s4819_s7 + $0x48] sm:$0xff] }
 0x345   : > { %1672 = vadd.xlane.f32.xlu0 %v1636_v24  ;;  %v1228_v32 = vmul.f32 %v1124_v31, %v3592_v63  ;;  %1522 = vadd.xlane.f32.xlu2 %v3891_v53  ;;  %v1638_v63 = vmul.f32 %v3898_v41, %v3898_v41 }
 0x346   : > { %1524 = vadd.xlane.f32.xlu1 %v3887_v26 }
 0x347   : > { %1468 = vmatmul.f32.gmra.mxu3 %v1338_v35  ;;  %v1263_v28 = vmul.f32 %v3672_v23, %v1228_v32  ;;  %v1415_v62 = vpop.f32.mrf.mxu1 }
 0x348   : > { %v1416_v38 = vadd.f32 %v3524_v1, %v1415_v62 }
 0x349   : > { %v1298_v18 = vadd.f32 %v3689_v46, %v1263_v28 }
 0x34a   : > { %v3916_v37 = vadd.f32 %v1416_v38, %v3117_v48  ;;  %v2252_v48 = vld [vmem:[%s4819_s7 + $0x60] sm:$0xff] }
 0x34b   : > { %v1330_v39 = vmax.f32 %v1298_v18, 0.0  ;;  %2263 = vmatpush.msra.mxu2 %v2252_v48  ;;  %2555 = vmatpush.msra.mxu3 %v2252_v48  ;;  %v1448_v48 = vpop.f32.mrf.mxu3 }
 0x34d   : > { %1526 = vadd.xlane.f32.xlu0 %v3906_v20  ;;  %1444 = vmatmul.f32.gmra.mxu1 %v1330_v39 }
 0x34e   : > { %1676 = vadd.xlane.f32.xlu1 %v1638_v63  ;;  %1674 = vadd.xlane.f32.xlu2 %v1637_v59 }
 0x34f   : > { %2264 = vmatpush.msra.mxu2 %v2251_v36  ;;  %2556 = vmatpush.msra.mxu3 %v2251_v36  ;;  %v1418_v58 = vpop.f32.mrf.mxu1 }
 0x350   : > { %v1419_v28 = vadd.f32 %v3524_v1, %v1418_v58 }
 0x351   : > { %2265 = vmatpush.msra.mxu2 %v2250_v10  ;;  %2557 = vmatpush.msra.mxu3 %v2250_v10  ;;  %v4003_v10 = vld [vmem:[%s4816_s4] ss:$0 sm:$0xff] }
 0x353   : > { %2266 = vmatpush.msra.mxu2 %v2249_v22  ;;  %2558 = vmatpush.msra.mxu3 %v2249_v22 }
 0x355   : > { %2267 = vmatpush.msra.mxu2 %v2248_v25  ;;  %2559 = vmatpush.msra.mxu3 %v2248_v25 }
 0x356   : > { %1530 = vadd.xlane.f32.xlu1 %v3916_v37  ;;  %1528 = vadd.xlane.f32.xlu2 %v3919_v40 }
 0x357   : > { %2268 = vmatpush.msra.mxu2 %v2247_v6  ;;  %2560 = vmatpush.msra.mxu3 %v2247_v6  ;;  %v1421_v14 = vpop.f32.mrf.mxu1 }
 0x358   : > { %v1422_v22 = vadd.f32 %v4003_v10, %v1421_v14 }
 0x359   : > { %2269 = vmatpush.msra.mxu2 %v2246_v7  ;;  %2561 = vmatpush.msra.mxu3 %v2246_v7 }
 0x35b   : > { %2270 = vmatpush.msra.mxu2 %v2245_v8  ;;  %2562 = vmatpush.msra.mxu3 %v2245_v8 }
 0x35d   : > { %2271 = vmatpush.msra.mxu2 %v2244_v19  ;;  %2563 = vmatpush.msra.mxu3 %v2244_v19 }
 0x35f   : > { %2272 = vmatpush.msra.mxu2 %v2243_v49  ;;  %2564 = vmatpush.msra.mxu3 %v2243_v49  ;;  %v1424_v38 = vpop.f32.mrf.mxu1 }
 0x361   : > { %2273 = vmatpush.msra.mxu2 %v2242_v51  ;;  %2565 = vmatpush.msra.mxu3 %v2242_v51 }
 0x363   : > { %2274 = vmatpush.msra.mxu2 %v2241_v30  ;;  %2566 = vmatpush.msra.mxu3 %v2241_v30  ;;  %v4868_v30 = vld [vmem:[#allocation6_spill] sm:$0xff] }
 0x365   : > { %2275 = vmatpush.msra.mxu2 %v2240_v27  ;;  %2567 = vmatpush.msra.mxu3 %v2240_v27 }
 0x3a1   : > { %v1665_v29 = vpop.xlane.xlu1 %1664 }
 0x3a2   : > { %v1728_v60 = vmul.f32 %v1665_v29, %v3033_v57 }
 0x3a4   : > { %v1760_v42 = vadd.f32 1e-05, %v1728_v60 }
 0x3a6   : > { %2681 = vrsqrt.f32 %v1760_v42  ;;  %vm1798_vm3 = vweird.f32 %v1760_v42 }
 0x3a8   : > { %v1667_v21 = vpop.xlane.xlu0 %1666 }
 0x3a9   : > { %v1519_v55 = vpop.xlane.xlu1 %1518  ;;  %v1729_v17 = vmul.f32 %v1667_v21, %v3033_v57  ;;  %v4016_v21 = vadd.f32 %v1422_v22, %v4868_v30 }
 0x3aa   : > { %v1575_v47 = vmul.f32 %v1519_v55, %v3033_v57 }
 0x3ab   : > { %v3974_v13 = vadd.f32 1e-05, %v1729_v17 }
 0x3ac   : > { %v2682_v34 = vpop.eup %2681  ;;  %v3977_v16 = vsub.f32 %v3845_v50, %v1575_v47 }
 0x3ad   : > { %v1793_v24 = vmul.f32 %v2682_v34, %v1760_v42  ;;  %2683 = vrsqrt.f32 %v3974_v13  ;;  %vm1799_vm2 = vweird.f32 %v2682_v34  ;;  %vm1808_vm6 = vweird.f32 %v3974_v13 }
 0x3ae   : > { %v1639_v35 = vmul.f32 %v3977_v16, %v3977_v16  ;;  %vm1800_vm4 = vmor %vm1798_vm3, %vm1799_vm2 }
 0x3af   : > { %v1794_v54 = vmul.f32 %v2682_v34, %v1793_v24 }
 0x3b0   : > { %1678 = vadd.xlane.f32.xlu0 %v1639_v35  ;;  %v1521_v52 = vpop.xlane.xlu0 %1520  ;;  %v1669_v63 = vpop.xlane.xlu2 %1668 }
 0x3b1   : > { %v1795_v31 = vmul.f32 0.5, %v1794_v54  ;;  %v1671_v32 = vpop.xlane.xlu1 %1670  ;;  %v1576_v45 = vmul.f32 %v1521_v52, %v3033_v57  ;;  %v1730_v62 = vmul.f32 %v1669_v63, %v3033_v57  ;;  %v1427_v35 = vpop.f32.mrf.mxu1  ;;  %v1425_v63 = vadd.f32 %v4003_v10, %v1424_v38 }
 0x3b2   : > { %v1731_v18 = vmul.f32 %v1671_v32, %v3033_v57  ;;  %v1451_v54 = vpop.f32.mrf.mxu3 }
 0x3b3   : > { %v2684_v50 = vpop.eup %2683  ;;  %v1796_v39 = vsub.f32 1.5, %v1795_v31  ;;  %v3987_v59 = vsub.f32 %v3865_v0, %v1576_v45  ;;  %v3992_v44 = vadd.f32 1e-05, %v1730_v62  ;;  %v3998_v0 = vadd.f32 %v1419_v28, %v3202_v2 }
 0x3b4   : > { %v1803_v5 = vmul.f32 %v2684_v50, %v3974_v13  ;;  %v3990_v12 = vadd.f32 1e-05, %v1731_v18  ;;  %vm1809_vm5 = vweird.f32 %v2684_v50 }
 0x3b5   : > { %v1797_v9 = vmul.f32 %v2682_v34, %v1796_v39  ;;  %v1640_v1 = vmul.f32 %v3987_v59, %v3987_v59  ;;  %vm1810_vm7 = vmor %vm1808_vm6, %vm1809_vm5  ;;  %vm1818_vm11 = vweird.f32 %v3992_v44 }
 0x3b6   : > { %v1804_v36 = vmul.f32 %v2684_v50, %v1803_v5  ;;  %2685 = vrsqrt.f32 %v3990_v12  ;;  %vm1828_vm8 = vweird.f32 %v3990_v12 }
 0x3b7   : > { %2687 = vrsqrt.f32 %v3992_v44  ;;  %1680 = vadd.xlane.f32.xlu2 %v1640_v1  ;;  %v1801_v25 = vsel %vm1800_vm4, %v2682_v34, %v1797_v9  ;;  %v4869_v9 = vld [vmem:[#allocation5_spill] sm:$0xff] }
 0x3b8   : > { %v1805_v6 = vmul.f32 0.5, %v1804_v36  ;;  %1532 = vadd.xlane.f32.xlu0 %v3998_v0  ;;  %v1673_v7 = vpop.xlane.xlu0 %1672  ;;  %v2112_v8 = vmul.f32 %v1801_v25, %v3826_v43  ;;  %v1523_v60 = vpop.xlane.xlu2 %1522  ;;  %v1449_v43 = vadd.f32 %v4003_v10, %v1448_v48 }
 0x3b9   : > { %v1525_v58 = vpop.xlane.xlu1 %1524  ;;  %v1732_v2 = vmul.f32 %v1673_v7, %v3033_v57  ;;  %v1577_v42 = vmul.f32 %v1523_v60, %v3033_v57 }
 0x3ba   : > { %v1806_v29 = vsub.f32 1.5, %v1805_v6  ;;  %v1578_v19 = vmul.f32 %v1525_v58, %v3033_v57  ;;  %v2144_v49 = vmul.f32 %v3672_v23, %v2112_v8  ;;  %v4048_v1 = vadd.f32 %v1449_v43, %v4869_v9  ;;  %v1430_v43 = vpop.f32.mrf.mxu1 }
 0x3bb   : > { %v4013_v51 = vadd.f32 1e-05, %v1732_v2  ;;  %v4031_v24 = vsub.f32 %v3891_v53, %v1577_v42 }
 0x3bc   : > { %v4018_v55 = vpop.eup %2685  ;;  %v1807_v17 = vmul.f32 %v2684_v50, %v1806_v29  ;;  %v4022_v27 = vsub.f32 %v3887_v26, %v1578_v19  ;;  %v2176_v14 = vadd.f32 %v3689_v46, %v2144_v49 }
 0x3bd   : > { %v4025_v47 = vpop.eup %2687  ;;  %v1823_v34 = vmul.f32 %v4018_v55, %v3990_v12  ;;  %2689 = vrsqrt.f32 %v4013_v51  ;;  %v1641_v32 = vmul.f32 %v4031_v24, %v4031_v24  ;;  %vm1829_vm9 = vweird.f32 %v4018_v55 }
 0x3be   : > { %v1813_v26 = vmul.f32 %v4025_v47, %v3992_v44  ;;  %v2208_v52 = vmax.f32 %v2176_v14, 0.0  ;;  %v1642_v13 = vmul.f32 %v4022_v27, %v4022_v27  ;;  %v1811_v53 = vsel %vm1810_vm7, %v2684_v50, %v1807_v17  ;;  %vm4072_vm12 = vmor %vm1828_vm8, %vm1829_vm9  ;;  %v4872_v44 = vld [vmem:[#allocation8_spill] sm:$0xff]  ;;  %v1454_v17 = vpop.f32.mrf.mxu3 }
 0x3bf   : > { %v1824_v31 = vmul.f32 %v4018_v55, %v1823_v34  ;;  %1534 = vadd.xlane.f32.xlu2 %v4016_v21  ;;  %v2113_v18 = vmul.f32 %v1811_v53, %v3836_v61  ;;  %1682 = vadd.xlane.f32.xlu1 %v1641_v32  ;;  %vm1819_vm10 = vweird.f32 %v4025_v47  ;;  %v4083_v30 = vadd.f32 %v1425_v63, %v4872_v44 }
 0x3c0   : > { %v1814_v45 = vmul.f32 %v4025_v47, %v1813_v26  ;;  %2276 = vmatmul.f32.vlgmr.msra.gmra.mxu2 %v2208_v52  ;;  %v1527_v28 = vpop.xlane.xlu0 %1526  ;;  %1684 = vadd.xlane.f32.xlu0 %v1642_v13  ;;  %vm1820_vm13 = vmor %vm1818_vm11, %vm1819_vm10  ;;  %v1452_v52 = vadd.f32 %v4003_v10, %v1451_v54  ;;  %v1428_v53 = vadd.f32 %v4003_v10, %v1427_v35  ;;  %vm1838_vm15 = vweird.f32 %v4013_v51 }
 0x3c1   : > { %v1825_v39 = vmul.f32 0.5, %v1824_v31  ;;  %v1677_v62 = vpop.xlane.xlu1 %1676  ;;  %v1579_v5 = vmul.f32 %v1527_v28, %v3033_v57  ;;  %v1675_v36 = vpop.xlane.xlu2 %1674  ;;  %v2145_v22 = vmul.f32 %v3672_v23, %v2113_v18 }
 0x3c2   : > { %v1815_v50 = vmul.f32 0.5, %v1814_v45  ;;  %v1734_v48 = vmul.f32 %v1677_v62, %v3033_v57  ;;  %v1733_v25 = vmul.f32 %v1675_v36, %v3033_v57  ;;  %v4873_v62 = vld [vmem:[#allocation7_spill] sm:$0xff] }
 0x3c3   : > { %v4053_v61 = vpop.eup %2689  ;;  %v1826_v38 = vsub.f32 1.5, %v1825_v39  ;;  %v4058_v6 = vsub.f32 %v3906_v20, %v1579_v5  ;;  %v2177_v19 = vadd.f32 %v3689_v46, %v2145_v22  ;;  %v4108_v5 = vadd.f32 %v1452_v52, %v4873_v62 }
 0x3c4   : > { %v1816_v7 = vsub.f32 1.5, %v1815_v50  ;;  %v1833_v8 = vmul.f32 %v4053_v61, %v4013_v51  ;;  %v4063_v58 = vadd.f32 1e-05, %v1734_v48  ;;  %v4067_v29 = vadd.f32 1e-05, %v1733_v25  ;;  %v4876_v50 = vld [vmem:[#allocation10_spill] sm:$0xff] }
 0x3c5   : > { %v1827_v2 = vmul.f32 %v4018_v55, %v1826_v38  ;;  %v1643_v42 = vmul.f32 %v4058_v6, %v4058_v6  ;;  %v2209_v12 = vmax.f32 %v2177_v19, 0.0  ;;  %vm1839_vm14 = vweird.f32 %v4053_v61 }
 0x3c6   : > { %v1817_v60 = vmul.f32 %v4025_v47, %v1816_v7  ;;  %v1834_v49 = vmul.f32 %v4053_v61, %v1833_v8  ;;  %2691 = vrsqrt.f32 %v4063_v58  ;;  %vm4112_vm0 = vmor %vm1838_vm15, %vm1839_vm14  ;;  %v4117_v48 = vadd.f32 %v1428_v53, %v4876_v50  ;;  %v1457_v19 = vpop.f32.mrf.mxu3  ;;  %v4164_v53 = vld [vmem:[%s4818_s6] ss:$0 sm:$0xff] }
 0x3c7   : > { %2693 = vrsqrt.f32 %v4067_v29  ;;  %1552 = vadd.xlane.f32.xlu2 %v4048_v1  ;;  %v1831_v26 = vsel %vm4072_vm12, %v4018_v55, %v1827_v2  ;;  %1536 = vadd.xlane.f32.xlu1 %v4083_v30  ;;  %v1455_v8 = vadd.f32 %v4003_v10, %v1454_v17  ;;  %v1433_v2 = vpop.f32.mrf.mxu1  ;;  %vm1848_vm2 = vweird.f32 %v4067_v29 }
 0x3c8   : > { %v1835_v14 = vmul.f32 0.5, %v1834_v49  ;;  %v1821_v34 = vsel %vm1820_vm13, %v4025_v47, %v1817_v60  ;;  %2279 = vmatmul.f32.gmra.mxu2 %v2209_v12  ;;  %1686 = vadd.xlane.f32.xlu0 %v1643_v42  ;;  %v2115_v28 = vmul.f32 %v1831_v26, %v3852_v33  ;;  %v4877_v12 = vld [vmem:[#allocation9_spill] sm:$0xff]  ;;  %vm1858_vm5 = vweird.f32 %v4063_v58 }
 0x3c9   : > { %v2114_v31 = vmul.f32 %v1821_v34, %v3859_v4  ;;  %v1529_v32 = vpop.xlane.xlu2 %1528  ;;  %v1531_v63 = vpop.xlane.xlu1 %1530  ;;  %v4137_v17 = vadd.f32 %v1455_v8, %v4877_v12  ;;  %v4887_v34 = vld [vmem:[#allocation19_spill] sm:$0xff] }
 0x3ca   : > { %v1836_v13 = vsub.f32 1.5, %v1835_v14  ;;  %v1580_v45 = vmul.f32 %v1529_v32, %v3033_v57  ;;  %v2147_v22 = vmul.f32 %v3672_v23, %v2115_v28  ;;  %v1581_v25 = vmul.f32 %v1531_v63, %v3033_v57 }
 0x3cb   : > { %v2146_v47 = vmul.f32 %v3672_v23, %v2114_v31  ;;  %v1431_v23 = vadd.f32 %v4003_v10, %v1430_v43  ;;  %v4880_v43 = vld [vmem:[#allocation12_spill] sm:$0xff]  ;;  %v1434_v32 = vadd.f32 %v4003_v10, %v1433_v2 }
 0x3cc   : > { %v4097_v18 = vpop.eup %2691  ;;  %v1837_v55 = vmul.f32 %v4053_v61, %v1836_v13  ;;  %v4104_v39 = vsub.f32 %v3919_v40, %v1580_v45  ;;  %v2179_v60 = vadd.f32 %v3689_v46, %v2147_v22  ;;  %v1458_v13 = vadd.f32 %v4003_v10, %v1457_v19  ;;  %v4883_v22 = vld [vmem:[#allocation13_spill] sm:$0xff] }
 0x3cd   : > { %v2694_v54 = vpop.eup %2693  ;;  %v1853_v4 = vmul.f32 %v4097_v18, %v4063_v58  ;;  %v2178_v35 = vadd.f32 %v3689_v46, %v2146_v47  ;;  %v4145_v46 = vadd.f32 %v1431_v23, %v4880_v43  ;;  %vm1859_vm4 = vweird.f32 %v4097_v18  ;;  %v4885_v23 = vld [vmem:[#allocation15_spill] sm:$0xff] }
 0x3ce   : > { %v1843_v33 = vmul.f32 %v2694_v54, %v4067_v29  ;;  %v1644_v40 = vmul.f32 %v4104_v39, %v4104_v39  ;;  %v1841_v7 = vsel %vm4112_vm0, %v4053_v61, %v1837_v55  ;;  %vm1849_vm1 = vweird.f32 %v2694_v54  ;;  %v1460_v55 = vpop.f32.mrf.mxu3  ;;  %vm1860_vm6 = vmor %vm1858_vm5, %vm1859_vm4 }
 0x3cf   : > { %v2210_v36 = vmax.f32 %v2178_v35, 0.0  ;;  %1554 = vadd.xlane.f32.xlu2 %v4108_v5  ;;  %v1854_v38 = vmul.f32 %v4097_v18, %v1853_v4  ;;  %1538 = vadd.xlane.f32.xlu1 %v4117_v48  ;;  %v2116_v49 = vmul.f32 %v1841_v7, %v3874_v11  ;;  %v4134_v61 = vsub.f32 %v3916_v37, %v1581_v25  ;;  %vm4140_vm3 = vmor %vm1848_vm2, %vm1849_vm1  ;;  %v4151_v37 = vld [vmem:[%s4817_s5] ss:$0 sm:$0xff]  ;;  %v1436_v28 = vpop.f32.mrf.mxu1  ;;  %v4881_v4 = vld [vmem:[#allocation11_spill] sm:$0xff] }
 0x3d0   : > { %v1844_v51 = vmul.f32 %v2694_v54, %v1843_v33  ;;  %1688 = vadd.xlane.f32.xlu0 %v1644_v40  ;;  %v2211_v11 = vmax.f32 %v2179_v60, 0.0  ;;  %v4171_v63 = vadd.f32 %v1458_v13, %v4881_v4  ;;  %v4882_v35 = vld [vmem:[#allocation14_spill] sm:$0xff]  ;;  %v1461_v50 = vadd.f32 %v4003_v10, %v1460_v55  ;;  %v4884_v7 = vld [vmem:[#allocation16_spill] sm:$0xff] }
 0x3d1   : > { %2282 = vmatmul.f32.gmra.mxu2 %v2210_v36  ;;  %v1855_v42 = vmul.f32 0.5, %v1854_v38  ;;  %v2148_v26 = vmul.f32 %v4151_v37, %v2116_v49  ;;  %v1645_v29 = vmul.f32 %v4134_v61, %v4134_v61  ;;  %v4175_v62 = vadd.f32 %v1434_v32, %v4882_v35 }
 0x3d2   : > { %v1845_v20 = vmul.f32 0.5, %v1844_v51  ;;  %v1437_v36 = vadd.f32 %v4003_v10, %v1436_v28  ;;  %v4186_v38 = vadd.f32 %v1461_v50, %v4883_v22 }
 0x3d3   : > { %v1856_v52 = vsub.f32 1.5, %v1855_v42  ;;  %v2180_v45 = vadd.f32 %v4164_v53, %v2148_v26  ;;  %v4886_v42 = vld [vmem:[#allocation17_spill] sm:$0xff] }
 0x3d4   : > { %v1846_v44 = vsub.f32 1.5, %v1845_v20  ;;  %v4189_v8 = vadd.f32 %v1437_v36, %v4884_v7 }
 0x3d5   : > { %v2212_v33 = vmax.f32 %v2180_v45, 0.0 }
 0x3d6   : > { %v1847_v14 = vmul.f32 %v2694_v54, %v1846_v44  ;;  %v1463_v25 = vpop.f32.mrf.mxu3 }
 0x3d7   : > { %1556 = vadd.xlane.f32.xlu2 %v4137_v17  ;;  %1540 = vadd.xlane.f32.xlu1 %v4145_v46  ;;  %v1439_v51 = vpop.f32.mrf.mxu1  ;;  %v1464_v19 = vadd.f32 %v4003_v10, %v1463_v25 }
 0x3d8   : > { %v1851_v31 = vsel %vm4140_vm3, %v2694_v54, %v1847_v14  ;;  %1690 = vadd.xlane.f32.xlu0 %v1645_v29  ;;  %v1857_v54 = vmul.f32 %v4097_v18, %v1856_v52 }
 0x3d9   : > { %2285 = vmatmul.f32.gmra.mxu2 %v2211_v11  ;;  %v2117_v47 = vmul.f32 %v1851_v31, %v3902_v56  ;;  %v4198_v60 = vadd.f32 %v1464_v19, %v4885_v23 }
 0x3da   : > { %v1861_v9 = vsel %vm1860_vm6, %v4097_v18, %v1857_v54 }
 0x3db   : > { %v2149_v56 = vmul.f32 %v4151_v37, %v2117_v47  ;;  %v2118_v40 = vmul.f32 %v1861_v9, %v3898_v41  ;;  %v1440_v41 = vadd.f32 %v4003_v10, %v1439_v51 }
 0x3dd   : > { %v2181_v58 = vadd.f32 %v4164_v53, %v2149_v56  ;;  %v2150_v2 = vmul.f32 %v4151_v37, %v2118_v40  ;;  %v4201_v44 = vadd.f32 %v1440_v41, %v4886_v42 }
 0x3de   : > { %v1466_v19 = vpop.f32.mrf.mxu3 }
 0x3df   : > { %1558 = vadd.xlane.f32.xlu2 %v4171_v63  ;;  %1542 = vadd.xlane.f32.xlu1 %v4175_v62  ;;  %v2213_v18 = vmax.f32 %v2181_v58, 0.0  ;;  %v2182_v20 = vadd.f32 %v4164_v53, %v2150_v2  ;;  %v1442_v49 = vpop.f32.mrf.mxu1  ;;  %v1467_v42 = vadd.f32 %v4003_v10, %v1466_v19 }
 0x3e0   : > { %v1443_v14 = vadd.f32 %v4003_v10, %v1442_v49 }
 0x3e1   : > { %2288 = vmatmul.f32.gmra.mxu2 %v2212_v33  ;;  %v2214_v12 = vmax.f32 %v2182_v20, 0.0 }
 0x3e2   : > { %v4207_v43 = vadd.f32 %v1443_v14, %v4887_v34 }
 0x3e7   : > { %1560 = vadd.xlane.f32.xlu2 %v4186_v38  ;;  %1544 = vadd.xlane.f32.xlu1 %v4189_v8 }
 0x3e9   : > { %2291 = vmatmul.f32.gmra.mxu2 %v2213_v18 }
 0x3ef   : > { %1562 = vadd.xlane.f32.xlu2 %v4198_v60  ;;  %1546 = vadd.xlane.f32.xlu1 %v4201_v44 }
 0x3f1   : > { %2294 = vmatmul.f32.gmra.mxu2 %v2214_v12 }
 0x3f7   : > { %1548 = vadd.xlane.f32.xlu2 %v4207_v43 }
 0x423   : > { %v1679_v11 = vpop.xlane.xlu0 %1678 }
 0x424   : > { %v1735_v26 = vmul.f32 %v1679_v11, %v3033_v57 }
 0x426   : > { %v1767_v52 = vadd.f32 1e-05, %v1735_v26 }
 0x428   : > { %2695 = vrsqrt.f32 %v1767_v52  ;;  %vm1868_vm8 = vweird.f32 %v1767_v52 }
 0x42a   : > { %v1681_v29 = vpop.xlane.xlu2 %1680 }
 0x42b   : > { %v1736_v31 = vmul.f32 %v1681_v29, %v3033_v57  ;;  %v1533_v13 = vpop.xlane.xlu0 %1532 }
 0x42c   : > { %v1582_v32 = vmul.f32 %v1533_v13, %v3033_v57 }
 0x42d   : > { %v1768_v45 = vadd.f32 1e-05, %v1736_v31 }
 0x42e   : > { %v2696_v47 = vpop.eup %2695  ;;  %v4214_v28 = vsub.f32 %v3998_v0, %v1582_v32 }
 0x42f   : > { %v1863_v55 = vmul.f32 %v2696_v47, %v1767_v52  ;;  %2697 = vrsqrt.f32 %v1768_v45  ;;  %vm1869_vm7 = vweird.f32 %v2696_v47  ;;  %vm1878_vm11 = vweird.f32 %v1768_v45 }
 0x430   : > { %v1646_v54 = vmul.f32 %v4214_v28, %v4214_v28  ;;  %vm1870_vm9 = vmor %vm1868_vm8, %vm1869_vm7 }
 0x431   : > { %v1864_v4 = vmul.f32 %v2696_v47, %v1863_v55 }
 0x432   : > { %1692 = vadd.xlane.f32.xlu0 %v1646_v54  ;;  %v1535_v35 = vpop.xlane.xlu2 %1534  ;;  %v1683_v9 = vpop.xlane.xlu1 %1682 }
 0x433   : > { %v1865_v33 = vmul.f32 0.5, %v1864_v4  ;;  %v1583_v56 = vmul.f32 %v1535_v35, %v3033_v57  ;;  %v1685_v50 = vpop.xlane.xlu0 %1684  ;;  %v1737_v40 = vmul.f32 %v1683_v9, %v3033_v57 }
 0x434   : > { %v1738_v22 = vmul.f32 %v1685_v50, %v3033_v57 }
 0x435   : > { %v2698_v36 = vpop.eup %2697  ;;  %v1866_v58 = vsub.f32 1.5, %v1865_v33  ;;  %v4221_v0 = vsub.f32 %v4016_v21, %v1583_v56  ;;  %v4224_v7 = vadd.f32 1e-05, %v1737_v40 }
 0x436   : > { %v1873_v51 = vmul.f32 %v2698_v36, %v1768_v45  ;;  %v4226_v18 = vadd.f32 1e-05, %v1738_v22  ;;  %vm1879_vm10 = vweird.f32 %v2698_v36  ;;  %v4262_v45 = vld [vmem:[%s4820_s8] ss:$0 sm:$0xff] }
 0x437   : > { %v1867_v25 = vmul.f32 %v2696_v47, %v1866_v58  ;;  %v1647_v2 = vmul.f32 %v4221_v0, %v4221_v0  ;;  %2699 = vrsqrt.f32 %v4224_v7  ;;  %vm1880_vm12 = vmor %vm1878_vm11, %vm1879_vm10  ;;  %vm1888_vm13 = vweird.f32 %v4224_v7 }
 0x438   : > { %v1874_v41 = vmul.f32 %v2698_v36, %v1873_v51  ;;  %2701 = vrsqrt.f32 %v4226_v18  ;;  %vm1898_vm1 = vweird.f32 %v4226_v18 }
 0x439   : > { %v1871_v21 = vsel %vm1870_vm9, %v2696_v47, %v1867_v25  ;;  %v4888_v47 = vld [vmem:[#allocation18_spill] sm:$0xff] }
 0x43a   : > { %v1875_v20 = vmul.f32 0.5, %v1874_v41  ;;  %1694 = vadd.xlane.f32.xlu0 %v1647_v2  ;;  %v1553_v23 = vpop.xlane.xlu2 %1552  ;;  %v2119_v49 = vmul.f32 %v1871_v21, %v3977_v16  ;;  %v1537_v34 = vpop.xlane.xlu1 %1536  ;;  %v4248_v55 = vadd.f32 %v1467_v42, %v4888_v47 }
 0x43b   : > { %v1592_v12 = vmul.f32 %v1553_v23, %v3033_v57  ;;  %v1687_v52 = vpop.xlane.xlu0 %1686  ;;  %v1584_v4 = vmul.f32 %v1537_v34, %v3033_v57  ;;  %v1445_v47 = vpop.f32.mrf.mxu1 }
 0x43c   : > { %v1876_v14 = vsub.f32 1.5, %v1875_v20  ;;  %v2151_v11 = vmul.f32 %v4151_v37, %v2119_v49  ;;  %v1739_v31 = vmul.f32 %v1687_v52, %v3033_v57  ;;  %v1469_v52 = vpop.f32.mrf.mxu3 }
 0x43d   : > { %v4238_v26 = vsub.f32 %v4048_v1, %v1592_v12  ;;  %v4243_v13 = vpop.eup %2699  ;;  %v4273_v19 = vsub.f32 %v4083_v30, %v1584_v4 }
 0x43e   : > { %v1877_v29 = vmul.f32 %v2698_v36, %v1876_v14  ;;  %v2183_v16 = vadd.f32 %v4164_v53, %v2151_v11  ;;  %v4250_v54 = vpop.eup %2701  ;;  %v1883_v1 = vmul.f32 %v4243_v13, %v4224_v7  ;;  %v4255_v35 = vadd.f32 1e-05, %v1739_v31 }
 0x43f   : > { %v1656_v32 = vmul.f32 %v4238_v26, %v4238_v26  ;;  %v1893_v56 = vmul.f32 %v4250_v54, %v4226_v18  ;;  %vm1889_vm14 = vweird.f32 %v4243_v13  ;;  %vm1899_vm15 = vweird.f32 %v4250_v54 }
 0x440   : > { %v2215_v33 = vmax.f32 %v2183_v16, 0.0  ;;  %v1881_v9 = vsel %vm1880_vm12, %v2698_v36, %v1877_v29  ;;  %v1884_v50 = vmul.f32 %v4243_v13, %v1883_v1  ;;  %2703 = vrsqrt.f32 %v4255_v35  ;;  %vm1890_vm0 = vmor %vm1888_vm13, %vm1889_vm14 }
 0x441   : > { %1712 = vadd.xlane.f32.xlu1 %v1656_v32  ;;  %v2120_v40 = vmul.f32 %v1881_v9, %v3987_v59  ;;  %v1894_v22 = vmul.f32 %v4250_v54, %v1893_v56  ;;  %v1648_v32 = vmul.f32 %v4273_v19, %v4273_v19  ;;  %vm4313_vm2 = vmor %vm1898_vm1, %vm1899_vm15  ;;  %v1470_v56 = vadd.f32 %v4003_v10, %v1469_v52 }
 0x442   : > { %2297 = vmatmul.f32.gmra.mxu2 %v2215_v33  ;;  %1564 = vadd.xlane.f32.xlu0 %v4248_v55  ;;  %v1555_v58 = vpop.xlane.xlu2 %1554  ;;  %v1885_v2 = vmul.f32 0.5, %v1884_v50  ;;  %v1539_v41 = vpop.xlane.xlu1 %1538  ;;  %vm1908_vm4 = vweird.f32 %v4255_v35 }
 0x443   : > { %v2277_v51 = vpop.f32.mrf.mxu2  ;;  %v1593_v25 = vmul.f32 %v1555_v58, %v3033_v57  ;;  %v2152_v21 = vmul.f32 %v4151_v37, %v2120_v40  ;;  %v1895_v20 = vmul.f32 0.5, %v1894_v22  ;;  %v1585_v23 = vmul.f32 %v1539_v41, %v3033_v57  ;;  %v1689_v49 = vpop.xlane.xlu0 %1688 }
 0x444   : > { %v2278_v36 = vadd.f32 %v4262_v45, %v2277_v51  ;;  %v1886_v42 = vsub.f32 1.5, %v1885_v2  ;;  %v1740_v30 = vmul.f32 %v1689_v49, %v3033_v57  ;;  %v1446_v40 = vadd.f32 %v4003_v10, %v1445_v47 }
 0x445   : > { %v4280_v59 = vsub.f32 %v4108_v5, %v1593_v25  ;;  %v2184_v12 = vadd.f32 %v4164_v53, %v2152_v21  ;;  %v1896_v14 = vsub.f32 1.5, %v1895_v20  ;;  %v4290_v34 = vsub.f32 %v4117_v48, %v1585_v23 }
 0x446   : > { %2373 = vst [vmem:[%s4283_s22] sm:$0xff] %v2278_v36  ;;  %v4294_v11 = vpop.eup %2703  ;;  %v1887_v29 = vmul.f32 %v4243_v13, %v1886_v42  ;;  %v4297_v31 = vadd.f32 1e-05, %v1740_v30  ;;  %v4337_v10 = vadd.f32 %v1470_v56, %v3410_v3 }
 0x447   : > { %v1657_v5 = vmul.f32 %v4280_v59, %v4280_v59  ;;  %v2216_v16 = vmax.f32 %v2184_v12, 0.0  ;;  %v1897_v48 = vmul.f32 %v4250_v54, %v1896_v14  ;;  %v1903_v1 = vmul.f32 %v4294_v11, %v4255_v35 }
 0x448   : > { %v1649_v4 = vmul.f32 %v4290_v34, %v4290_v34  ;;  %2705 = vrsqrt.f32 %v4297_v31  ;;  %v1891_v18 = vsel %vm1890_vm0, %v4243_v13, %v1887_v29  ;;  %vm1909_vm3 = vweird.f32 %v4294_v11 }
 0x449   : > { %1714 = vadd.xlane.f32.xlu2 %v1657_v5  ;;  %v1904_v9 = vmul.f32 %v4294_v11, %v1903_v1  ;;  %v2121_v50 = vmul.f32 %v1891_v18, %v4031_v24  ;;  %v1901_v58 = vsel %vm4313_vm2, %v4250_v54, %v1897_v48  ;;  %v4344_v12 = vadd.f32 %v1446_v40, %v3437_v15  ;;  %vm4351_vm5 = vmor %vm1908_vm4, %vm1909_vm3 }
 0x44a   : > { %2300 = vmatmul.f32.gmra.mxu2 %v2216_v16  ;;  %1696 = vadd.xlane.f32.xlu0 %v1648_v32  ;;  %v1557_v7 = vpop.xlane.xlu2 %1556  ;;  %v1541_v22 = vpop.xlane.xlu1 %1540  ;;  %v2122_v24 = vmul.f32 %v1901_v58, %v4022_v27  ;;  %vm1918_vm7 = vweird.f32 %v4297_v31 }
 0x44b   : > { %1698 = vadd.xlane.f32.xlu1 %v1649_v4  ;;  %v2280_v51 = vpop.f32.mrf.mxu2  ;;  %v1905_v25 = vmul.f32 0.5, %v1904_v9  ;;  %v1586_v2 = vmul.f32 %v1541_v22, %v3033_v57  ;;  %v1691_v36 = vpop.xlane.xlu0 %1690  ;;  %v2153_v21 = vmul.f32 %v4151_v37, %v2121_v50  ;;  %v1594_v49 = vmul.f32 %v1557_v7, %v3033_v57 }
 0x44c   : > { %v2281_v13 = vadd.f32 %v4262_v45, %v2280_v51  ;;  %v1741_v41 = vmul.f32 %v1691_v36, %v3033_v57  ;;  %v2154_v52 = vmul.f32 %v4151_v37, %v2122_v24 }
 0x44d   : > { %v1906_v20 = vsub.f32 1.5, %v1905_v25  ;;  %v4333_v54 = vsub.f32 %v4145_v46, %v1586_v2  ;;  %v2185_v30 = vadd.f32 %v4164_v53, %v2153_v21  ;;  %v4364_v32 = vsub.f32 %v4137_v17, %v1594_v49 }
 0x44e   : > { %2374 = vst [vmem:[%s4283_s22 + $0x8] sm:$0xff] %v2281_v13  ;;  %v2706_v23 = vpop.eup %2705  ;;  %v4340_v42 = vadd.f32 1e-05, %v1741_v41  ;;  %v2186_v18 = vadd.f32 %v4164_v53, %v2154_v52 }
 0x44f   : > { %v1907_v27 = vmul.f32 %v4294_v11, %v1906_v20  ;;  %v1913_v46 = vmul.f32 %v2706_v23, %v4297_v31  ;;  %v1650_v3 = vmul.f32 %v4333_v54, %v4333_v54  ;;  %v2217_v5 = vmax.f32 %v2185_v30, 0.0 }
 0x450   : > { %2707 = vrsqrt.f32 %v4340_v42  ;;  %vm1919_vm6 = vweird.f32 %v2706_v23  ;;  %v1658_v58 = vmul.f32 %v4364_v32, %v4364_v32  ;;  %vm1928_vm10 = vweird.f32 %v4340_v42 }
 0x451   : > { %v1914_v29 = vmul.f32 %v2706_v23, %v1913_v46  ;;  %1700 = vadd.xlane.f32.xlu2 %v1650_v3  ;;  %v1911_v16 = vsel %vm4351_vm5, %v4294_v11, %v1907_v27  ;;  %vm4385_vm8 = vmor %vm1918_vm7, %vm1919_vm6 }
 0x452   : > { %1550 = vadd.xlane.f32.xlu0 %v4344_v12  ;;  %v1559_v15 = vpop.xlane.xlu2 %1558  ;;  %2303 = vmatmul.f32.gmra.mxu2 %v2217_v5  ;;  %v1543_v47 = vpop.xlane.xlu1 %1542  ;;  %v2123_v56 = vmul.f32 %v1911_v16, %v4058_v6 }
 0x453   : > { %1566 = vadd.xlane.f32.xlu1 %v4337_v10  ;;  %v1595_v35 = vmul.f32 %v1559_v15, %v3033_v57  ;;  %v1915_v1 = vmul.f32 0.5, %v1914_v29  ;;  %v1587_v4 = vmul.f32 %v1543_v47, %v3033_v57 }
 0x454   : > { %v2283_v48 = vpop.f32.mrf.mxu2  ;;  %v2155_v25 = vmul.f32 %v4151_v37, %v2123_v56 }
 0x455   : > { %v2284_v33 = vadd.f32 %v4262_v45, %v2283_v48  ;;  %v4369_v7 = vsub.f32 %v4171_v63, %v1595_v35  ;;  %v1916_v9 = vsub.f32 1.5, %v1915_v1  ;;  %v4374_v17 = vsub.f32 %v4175_v62, %v1587_v4 }
 0x456   : > { %v2708_v50 = vpop.eup %2707  ;;  %v2218_v62 = vmax.f32 %v2186_v18, 0.0  ;;  %v2187_v30 = vadd.f32 %v4164_v53, %v2155_v25 }
 0x457   : > { %2375 = vst [vmem:[%s4283_s22 + $0x10] sm:$0xff] %v2284_v33  ;;  %v1659_v11 = vmul.f32 %v4369_v7, %v4369_v7  ;;  %v1917_v40 = vmul.f32 %v2706_v23, %v1916_v9  ;;  %v1923_v63 = vmul.f32 %v2708_v50, %v4340_v42  ;;  %v1651_v6 = vmul.f32 %v4374_v17, %v4374_v17 }
 0x458   : > { %vm1929_vm9 = vweird.f32 %v2708_v50  ;;  %v2219_v5 = vmax.f32 %v2187_v30, 0.0 }
 0x459   : > { %v1924_v2 = vmul.f32 %v2708_v50, %v1923_v63  ;;  %1718 = vadd.xlane.f32.xlu2 %v1659_v11  ;;  %v1921_v13 = vsel %vm4385_vm8, %v2706_v23, %v1917_v40  ;;  %vm1930_vm11 = vmor %vm1928_vm10, %vm1929_vm9 }
 0x45a   : > { %1716 = vadd.xlane.f32.xlu0 %v1658_v58  ;;  %v1561_v51 = vpop.xlane.xlu2 %1560  ;;  %2306 = vmatmul.f32.gmra.mxu2 %v2218_v62  ;;  %v1545_v36 = vpop.xlane.xlu1 %1544  ;;  %v2124_v27 = vmul.f32 %v1921_v13, %v4104_v39 }
 0x45b   : > { %1702 = vadd.xlane.f32.xlu1 %v1651_v6  ;;  %v1596_v31 = vmul.f32 %v1561_v51, %v3033_v57  ;;  %v1925_v21 = vmul.f32 0.5, %v1924_v2  ;;  %v1588_v24 = vmul.f32 %v1545_v36, %v3033_v57 }
 0x45c   : > { %v2286_v41 = vpop.f32.mrf.mxu2  ;;  %v2156_v39 = vmul.f32 %v4151_v37, %v2124_v27 }
 0x45d   : > { %v2287_v20 = vadd.f32 %v4262_v45, %v2286_v41  ;;  %v4396_v49 = vsub.f32 %v4186_v38, %v1596_v31  ;;  %v1926_v46 = vsub.f32 1.5, %v1925_v21  ;;  %v4401_v3 = vsub.f32 %v4189_v8, %v1588_v24 }
 0x45e   : > { %v2188_v48 = vadd.f32 %v4164_v53, %v2156_v39 }
 0x45f   : > { %2376 = vst [vmem:[%s4283_s22 + $0x18] sm:$0xff] %v2287_v20  ;;  %v1660_v23 = vmul.f32 %v4396_v49, %v4396_v49  ;;  %v1927_v14 = vmul.f32 %v2708_v50, %v1926_v46  ;;  %v1652_v38 = vmul.f32 %v4401_v3, %v4401_v3 }
 0x460   : > { %v2220_v56 = vmax.f32 %v2188_v48, 0.0 }
 0x461   : > { %v1931_v52 = vsel %vm1930_vm11, %v2708_v50, %v1927_v14 }
 0x462   : > { %v1563_v15 = vpop.xlane.xlu2 %1562  ;;  %1704 = vadd.xlane.f32.xlu0 %v1652_v38  ;;  %2309 = vmatmul.f32.gmra.mxu2 %v2219_v5  ;;  %v1547_v29 = vpop.xlane.xlu1 %1546  ;;  %v2125_v1 = vmul.f32 %v1931_v52, %v4134_v61 }
 0x463   : > { %1720 = vadd.xlane.f32.xlu1 %v1660_v23  ;;  %v1597_v8 = vmul.f32 %v1563_v15, %v3033_v57  ;;  %v1589_v16 = vmul.f32 %v1547_v29, %v3033_v57 }
 0x464   : > { %v2289_v35 = vpop.f32.mrf.mxu2  ;;  %v2157_v9 = vmul.f32 %v4151_v37, %v2125_v1 }
 0x465   : > { %v4413_v42 = vsub.f32 %v4198_v60, %v1597_v8  ;;  %v2290_v47 = vadd.f32 %v4262_v45, %v2289_v35  ;;  %v4419_v4 = vsub.f32 %v4201_v44, %v1589_v16 }
 0x466   : > { %v2189_v58 = vadd.f32 %v4164_v53, %v2157_v9 }
 0x467   : > { %2377 = vst [vmem:[%s4283_s22 + $0x20] sm:$0xff] %v2290_v47  ;;  %v1661_v33 = vmul.f32 %v4413_v42, %v4413_v42  ;;  %v1653_v18 = vmul.f32 %v4419_v4, %v4419_v4 }
 0x468   : > { %v2221_v63 = vmax.f32 %v2189_v58, 0.0 }
 0x469   : > { %1706 = vadd.xlane.f32.xlu2 %v1653_v18 }
 0x46a   : > { %v1549_v60 = vpop.xlane.xlu2 %1548  ;;  %1722 = vadd.xlane.f32.xlu0 %v1661_v33  ;;  %2312 = vmatmul.f32.gmra.mxu2 %v2220_v56 }
 0x46b   : > { %v1590_v61 = vmul.f32 %v1549_v60, %v3033_v57 }
 0x46c   : > { %v2292_v11 = vpop.f32.mrf.mxu2 }
 0x46d   : > { %v4429_v44 = vsub.f32 %v4207_v43, %v1590_v61  ;;  %v2293_v50 = vadd.f32 %v4262_v45, %v2292_v11 }
 0x46f   : > { %2378 = vst [vmem:[%s4283_s22 + $0x28] sm:$0xff] %v2293_v50  ;;  %v1654_v40 = vmul.f32 %v4429_v44, %v4429_v44 }
 0x471   : > { %1708 = vadd.xlane.f32.xlu1 %v1654_v40 }
 0x472   : > { %2315 = vmatmul.f32.gmra.mxu2 %v2221_v63 }
 0x474   : > { %v2295_v6 = vpop.f32.mrf.mxu2 }
 0x475   : > { %v2296_v22 = vadd.f32 %v4262_v45, %v2295_v6 }
 0x477   : > { %2379 = vst [vmem:[%s4283_s22 + $0x30] sm:$0xff] %v2296_v22 }
 0x4a5   : > { %v1693_v62 = vpop.xlane.xlu0 %1692 }
 0x4a6   : > { %v1742_v51 = vmul.f32 %v1693_v62, %v3033_v57 }
 0x4a8   : > { %v1774_v43 = vadd.f32 1e-05, %v1742_v51 }
 0x4aa   : > { %2709 = vrsqrt.f32 %v1774_v43  ;;  %vm1938_vm13 = vweird.f32 %v1774_v43 }
 0x4ad   : > { %v1695_v25 = vpop.xlane.xlu0 %1694 }
 0x4ae   : > { %v1743_v2 = vmul.f32 %v1695_v25, %v3033_v57 }
 0x4b0   : > { %v2710_v31 = vpop.eup %2709  ;;  %v1775_v13 = vadd.f32 1e-05, %v1743_v2 }
 0x4b1   : > { %v1933_v36 = vmul.f32 %v2710_v31, %v1774_v43  ;;  %vm1939_vm12 = vweird.f32 %v2710_v31 }
 0x4b2   : > { %2711 = vrsqrt.f32 %v1775_v13  ;;  %vm1940_vm14 = vmor %vm1938_vm13, %vm1939_vm12  ;;  %vm1948_vm0 = vweird.f32 %v1775_v13 }
 0x4b3   : > { %v1934_v41 = vmul.f32 %v2710_v31, %v1933_v36 }
 0x4b4   : > { %v1713_v21 = vpop.xlane.xlu1 %1712 }
 0x4b5   : > { %v1935_v24 = vmul.f32 0.5, %v1934_v41  ;;  %v1752_v20 = vmul.f32 %v1713_v21, %v3033_v57  ;;  %v1565_v30 = vpop.xlane.xlu0 %1564 }
 0x4b6   : > { %v1598_v27 = vmul.f32 %v1565_v30, %v3033_v57 }
 0x4b7   : > { %v1936_v46 = vsub.f32 1.5, %v1935_v24  ;;  %v1784_v23 = vadd.f32 1e-05, %v1752_v20 }
 0x4b8   : > { %v2712_v14 = vpop.eup %2711  ;;  %v4443_v38 = vsub.f32 %v4248_v55, %v1598_v27 }
 0x4b9   : > { %v1937_v5 = vmul.f32 %v2710_v31, %v1936_v46  ;;  %v1943_v15 = vmul.f32 %v2712_v14, %v1775_v13  ;;  %2713 = vrsqrt.f32 %v1784_v23  ;;  %vm1949_vm15 = vweird.f32 %v2712_v14 }
 0x4ba   : > { %v1662_v39 = vmul.f32 %v4443_v38, %v4443_v38  ;;  %vm1950_vm1 = vmor %vm1948_vm0, %vm1949_vm15  ;;  %vm2038_vm3 = vweird.f32 %v1784_v23 }
 0x4bb   : > { %v1944_v8 = vmul.f32 %v2712_v14, %v1943_v15  ;;  %v1941_v52 = vsel %vm1940_vm14, %v2710_v31, %v1937_v5 }
 0x4bc   : > { %1724 = vadd.xlane.f32.xlu2 %v1662_v39  ;;  %v1715_v29 = vpop.xlane.xlu2 %1714  ;;  %v2126_v35 = vmul.f32 %v1941_v52, %v4214_v28 }
 0x4bd   : > { %v1945_v16 = vmul.f32 0.5, %v1944_v8  ;;  %v1753_v47 = vmul.f32 %v1715_v29, %v3033_v57  ;;  %v1697_v48 = vpop.xlane.xlu0 %1696 }
 0x4be   : > { %v1699_v55 = vpop.xlane.xlu1 %1698  ;;  %v1744_v1 = vmul.f32 %v1697_v48, %v3033_v57  ;;  %v2158_v33 = vmul.f32 %v4151_v37, %v2126_v35 }
 0x4bf   : > { %v2714_v18 = vpop.eup %2713  ;;  %v1946_v56 = vsub.f32 1.5, %v1945_v16  ;;  %v1745_v60 = vmul.f32 %v1699_v55, %v3033_v57  ;;  %v4452_v9 = vadd.f32 1e-05, %v1753_v47 }
 0x4c0   : > { %v2033_v61 = vmul.f32 %v2714_v18, %v1784_v23  ;;  %v4454_v11 = vadd.f32 1e-05, %v1744_v1  ;;  %v2190_v28 = vadd.f32 %v4164_v53, %v2158_v33  ;;  %vm2039_vm2 = vweird.f32 %v2714_v18 }
 0x4c1   : > { %v1947_v50 = vmul.f32 %v2712_v14, %v1946_v56  ;;  %v4457_v58 = vadd.f32 1e-05, %v1745_v60  ;;  %2715 = vrsqrt.f32 %v4452_v9  ;;  %vm2040_vm4 = vmor %vm2038_vm3, %vm2039_vm2  ;;  %vm2048_vm5 = vweird.f32 %v4452_v9 }
 0x4c2   : > { %v2034_v40 = vmul.f32 %v2714_v18, %v2033_v61  ;;  %2717 = vrsqrt.f32 %v4454_v11  ;;  %v2222_v63 = vmax.f32 %v2190_v28, 0.0  ;;  %vm1958_vm10 = vweird.f32 %v4454_v11 }
 0x4c3   : > { %2719 = vrsqrt.f32 %v4457_v58  ;;  %v1951_v6 = vsel %vm1950_vm1, %v2712_v14, %v1947_v50  ;;  %vm1968_vm11 = vweird.f32 %v4457_v58 }
 0x4c4   : > { %v2035_v22 = vmul.f32 0.5, %v2034_v40  ;;  %2318 = vmatmul.f32.gmra.mxu2 %v2222_v63  ;;  %v2127_v62 = vmul.f32 %v1951_v6, %v4221_v0  ;;  %v1701_v31 = vpop.xlane.xlu2 %1700 }
 0x4c5   : > { %v2298_v51 = vpop.f32.mrf.mxu2  ;;  %v1551_v43 = vpop.xlane.xlu0 %1550  ;;  %v1746_v24 = vmul.f32 %v1701_v31, %v3033_v57 }
 0x4c6   : > { %v2036_v25 = vsub.f32 1.5, %v2035_v22  ;;  %v1567_v2 = vpop.xlane.xlu1 %1566  ;;  %v2299_v13 = vadd.f32 %v4262_v45, %v2298_v51  ;;  %v1591_v36 = vmul.f32 %v1551_v43, %v3033_v57  ;;  %v2159_v27 = vmul.f32 %v4151_v37, %v2127_v62 }
 0x4c7   : > { %v4465_v41 = vpop.eup %2715  ;;  %v1599_v21 = vmul.f32 %v1567_v2, %v3033_v57  ;;  %v4483_v15 = vadd.f32 1e-05, %v1746_v24 }
 0x4c8   : > { %v4469_v20 = vpop.eup %2717  ;;  %v2037_v0 = vmul.f32 %v2714_v18, %v2036_v25  ;;  %v2043_v30 = vmul.f32 %v4465_v41, %v4452_v9  ;;  %2380 = vst [vmem:[%s4283_s22 + $0x38] sm:$0xff] %v2299_v13  ;;  %v4486_v23 = vsub.f32 %v4344_v12, %v1591_v36  ;;  %vm2049_vm6 = vweird.f32 %v4465_v41 }
 0x4c9   : > { %v4475_v46 = vpop.eup %2719  ;;  %v1953_v14 = vmul.f32 %v4469_v20, %v4454_v11  ;;  %v4481_v5 = vsub.f32 %v4337_v10, %v1599_v21  ;;  %2721 = vrsqrt.f32 %v4483_v15  ;;  %v2191_v47 = vadd.f32 %v4164_v53, %v2159_v27  ;;  %vm2050_vm9 = vmor %vm2048_vm5, %vm2049_vm6 }
 0x4ca   : > { %v2041_v39 = vsel %vm2040_vm4, %v2714_v18, %v2037_v0  ;;  %v1963_v8 = vmul.f32 %v4475_v46, %v4457_v58  ;;  %v2044_v52 = vmul.f32 %v4465_v41, %v2043_v30  ;;  %vm1959_vm7 = vweird.f32 %v4469_v20 }
 0x4cb   : > { %v2136_v29 = vmul.f32 %v2041_v39, %v4238_v26  ;;  %v1954_v10 = vmul.f32 %v4469_v20, %v1953_v14  ;;  %v1663_v16 = vmul.f32 %v4481_v5, %v4481_v5  ;;  %v1655_v26 = vmul.f32 %v4486_v23, %v4486_v23  ;;  %vm1960_vm12 = vmor %vm1958_vm10, %vm1959_vm7 }
 0x4cc   : > { %v1964_v35 = vmul.f32 %v4475_v46, %v1963_v8  ;;  %v2045_v12 = vmul.f32 0.5, %v2044_v52  ;;  %v2223_v60 = vmax.f32 %v2191_v47, 0.0  ;;  %v1719_v28 = vpop.xlane.xlu2 %1718  ;;  %vm1969_vm8 = vweird.f32 %v4475_v46 }
 0x4cd   : > { %v1955_v48 = vmul.f32 0.5, %v1954_v10  ;;  %v2301_v55 = vpop.f32.mrf.mxu2  ;;  %v1717_v1 = vpop.xlane.xlu0 %1716  ;;  %v2168_v33 = vmul.f32 %v4151_v37, %v2136_v29  ;;  %1726 = vadd.xlane.f32.xlu1 %v1663_v16  ;;  %1710 = vadd.xlane.f32.xlu0 %v1655_v26  ;;  %v1755_v6 = vmul.f32 %v1719_v28, %v3033_v57  ;;  %vm1970_vm13 = vmor %vm1968_vm11, %vm1969_vm8  ;;  %vm1978_vm15 = vweird.f32 %v4483_v15 }
 0x4ce   : > { %v1965_v18 = vmul.f32 0.5, %v1964_v35  ;;  %v2046_v56 = vsub.f32 1.5, %v2045_v12  ;;  %v1703_v61 = vpop.xlane.xlu1 %1702  ;;  %v2302_v50 = vadd.f32 %v4262_v45, %v2301_v55  ;;  %v1754_v22 = vmul.f32 %v1717_v1, %v3033_v57  ;;  %2321 = vmatmul.f32.gmra.mxu2 %v2223_v60 }
 0x4cf   : > { %v1956_v40 = vsub.f32 1.5, %v1955_v48  ;;  %v1747_v63 = vmul.f32 %v1703_v61, %v3033_v57  ;;  %v2200_v43 = vadd.f32 %v4164_v53, %v2168_v33  ;;  %v4512_v25 = vpop.eup %2721  ;;  %v4517_v13 = vadd.f32 1e-05, %v1755_v6 }
 0x4d0   : > { %v1966_v62 = vsub.f32 1.5, %v1965_v18  ;;  %v2047_v51 = vmul.f32 %v4465_v41, %v2046_v56  ;;  %2381 = vst [vmem:[%s4283_s22 + $0x40] sm:$0xff] %v2302_v50  ;;  %v4519_v36 = vadd.f32 1e-05, %v1754_v22  ;;  %v1973_v24 = vmul.f32 %v4512_v25, %v4483_v15 }
 0x4d1   : > { %v1957_v2 = vmul.f32 %v4469_v20, %v1956_v40  ;;  %v4515_v31 = vadd.f32 1e-05, %v1747_v63  ;;  %v2232_v0 = vmax.f32 %v2200_v43, 0.0  ;;  %vm1979_vm14 = vweird.f32 %v4512_v25 }
 0x4d2   : > { %v1967_v21 = vmul.f32 %v4475_v46, %v1966_v62  ;;  %v1974_v30 = vmul.f32 %v4512_v25, %v1973_v24  ;;  %v2051_v11 = vsel %vm2050_vm9, %v4465_v41, %v2047_v51  ;;  %vm4576_vm1 = vmor %vm1978_vm15, %vm1979_vm14  ;;  %vm2068_vm2 = vweird.f32 %v4517_v13 }
 0x4d3   : > { %2723 = vrsqrt.f32 %v4515_v31  ;;  %2348 = vmatmul.f32.vlgmr.msra.gmra.mxu3 %v2232_v0  ;;  %v1961_v9 = vsel %vm1960_vm12, %v4469_v20, %v1957_v2  ;;  %v2137_v27 = vmul.f32 %v2051_v11, %v4280_v59  ;;  %vm1988_vm0 = vweird.f32 %v4515_v31 }
 0x4d4   : > { %2725 = vrsqrt.f32 %v4517_v13  ;;  %v2128_v58 = vmul.f32 %v1961_v9, %v4273_v19  ;;  %v1971_v14 = vsel %vm1970_vm13, %v4475_v46, %v1967_v21  ;;  %v1975_v39 = vmul.f32 0.5, %v1974_v30 }
 0x4d5   : > { %2727 = vrsqrt.f32 %v4519_v36  ;;  %v1705_v52 = vpop.xlane.xlu0 %1704  ;;  %v2129_v29 = vmul.f32 %v1971_v14, %v4290_v34  ;;  %v2304_v35 = vpop.f32.mrf.mxu2  ;;  %v2169_v12 = vmul.f32 %v4151_v37, %v2137_v27  ;;  %vm2058_vm7 = vweird.f32 %v4519_v36 }
 0x4d6   : > { %v1721_v8 = vpop.xlane.xlu1 %1720  ;;  %v1748_v20 = vmul.f32 %v1705_v52, %v3033_v57  ;;  %v2160_v41 = vmul.f32 %v4151_v37, %v2128_v58  ;;  %v1976_v19 = vsub.f32 1.5, %v1975_v39  ;;  %v2305_v59 = vadd.f32 %v4262_v45, %v2304_v35 }
 0x4d7   : > { %v1756_v10 = vmul.f32 %v1721_v8, %v3033_v57  ;;  %v2201_v48 = vadd.f32 %v4164_v53, %v2169_v12  ;;  %v2161_v56 = vmul.f32 %v4151_v37, %v2129_v29 }
 0x4d8   : > { %v4553_v47 = vadd.f32 1e-05, %v1748_v20  ;;  %v2192_v34 = vadd.f32 %v4164_v53, %v2160_v41  ;;  %v1977_v55 = vmul.f32 %v4512_v25, %v1976_v19  ;;  %2382 = vst [vmem:[%s4283_s22 + $0x48] sm:$0xff] %v2305_v59 }
 0x4d9   : > { %v4549_v16 = vpop.eup %2723  ;;  %v4551_v46 = vadd.f32 1e-05, %v1756_v10  ;;  %v2233_v40 = vmax.f32 %v2201_v48, 0.0  ;;  %v2193_v0 = vadd.f32 %v4164_v53, %v2161_v56 }
 0x4da   : > { %v4557_v26 = vpop.eup %2725  ;;  %v1983_v1 = vmul.f32 %v4549_v16, %v4515_v31  ;;  %v2224_v50 = vmax.f32 %v2192_v34, 0.0  ;;  %vm1989_vm3 = vweird.f32 %v4549_v16  ;;  %v1981_v51 = vsel %vm4576_vm1, %v4512_v25, %v1977_v55 }
 0x4db   : > { %v4564_v33 = vpop.eup %2727  ;;  %v2063_v18 = vmul.f32 %v4557_v26, %v4517_v13  ;;  %2729 = vrsqrt.f32 %v4551_v46  ;;  %2351 = vmatmul.f32.gmra.mxu3 %v2233_v40  ;;  %v2130_v58 = vmul.f32 %v1981_v51, %v4333_v54  ;;  %vm2069_vm4 = vweird.f32 %v4557_v26  ;;  %vm4610_vm6 = vmor %vm1988_vm0, %vm1989_vm3 }
 0x4dc   : > { %v1984_v60 = vmul.f32 %v4549_v16, %v1983_v1  ;;  %v2053_v61 = vmul.f32 %v4564_v33, %v4519_v36  ;;  %2731 = vrsqrt.f32 %v4553_v47  ;;  %v1707_v22 = vpop.xlane.xlu2 %1706  ;;  %2324 = vmatmul.f32.gmra.mxu2 %v2224_v50  ;;  %vm2059_vm5 = vweird.f32 %v4564_v33  ;;  %vm4621_vm8 = vmor %vm2068_vm2, %vm2069_vm4 }
 0x4dd   : > { %v2064_v15 = vmul.f32 %v4557_v26, %v2063_v18  ;;  %v1723_v62 = vpop.xlane.xlu0 %1722  ;;  %v1749_v2 = vmul.f32 %v1707_v22, %v3033_v57  ;;  %v2307_v21 = vpop.f32.mrf.mxu2  ;;  %v2162_v36 = vmul.f32 %v4151_v37, %v2130_v58  ;;  %vm2060_vm9 = vmor %vm2058_vm7, %vm2059_vm5  ;;  %v2225_v59 = vmax.f32 %v2193_v0, 0.0 }
 0x4de   : > { %v1985_v63 = vmul.f32 0.5, %v1984_v60  ;;  %v2054_v6 = vmul.f32 %v4564_v33, %v2053_v61  ;;  %v1757_v24 = vmul.f32 %v1723_v62, %v3033_v57  ;;  %v2308_v11 = vadd.f32 %v4262_v45, %v2307_v21 }
 0x4df   : > { %v2065_v43 = vmul.f32 0.5, %v2064_v15  ;;  %v4595_v14 = vadd.f32 1e-05, %v1749_v2  ;;  %vm2078_vm12 = vweird.f32 %v4551_v46  ;;  %vm1998_vm14 = vweird.f32 %v4553_v47 }
 0x4e0   : > { %v1986_v30 = vsub.f32 1.5, %v1985_v63  ;;  %v2055_v9 = vmul.f32 0.5, %v2054_v6  ;;  %v4597_v39 = vadd.f32 1e-05, %v1757_v24  ;;  %2383 = vst [vmem:[%s4283_s22 + $0x50] sm:$0xff] %v2308_v11 }
 0x4e1   : > { %v4592_v27 = vpop.eup %2729  ;;  %v2066_v25 = vsub.f32 1.5, %v2065_v43  ;;  %2733 = vrsqrt.f32 %v4595_v14  ;;  %vm2008_vm2 = vweird.f32 %v4595_v14 }
 0x4e2   : > { %v4599_v8 = vpop.eup %2731  ;;  %v1987_v52 = vmul.f32 %v4549_v16, %v1986_v30  ;;  %v2056_v53 = vsub.f32 1.5, %v2055_v9  ;;  %v2073_v29 = vmul.f32 %v4592_v27, %v4551_v46  ;;  %2735 = vrsqrt.f32 %v4597_v39 }
 0x4e3   : > { %v2067_v10 = vmul.f32 %v4557_v26, %v2066_v25  ;;  %v1993_v35 = vmul.f32 %v4599_v8, %v4553_v47  ;;  %vm2079_vm10 = vweird.f32 %v4592_v27  ;;  %vm1999_vm11 = vweird.f32 %v4599_v8 }
 0x4e4   : > { %v2057_v31 = vmul.f32 %v4564_v33, %v2056_v53  ;;  %v2074_v41 = vmul.f32 %v4592_v27, %v2073_v29  ;;  %v1709_v12 = vpop.xlane.xlu1 %1708  ;;  %v1991_v55 = vsel %vm4610_vm6, %v4549_v16, %v1987_v52  ;;  %2327 = vmatmul.f32.gmra.mxu2 %v2225_v59  ;;  %v4646_v16 = vld [vmem:[%s4818_s6] ss:$0 sm:$0xff]  ;;  %vm4671_vm13 = vmor %vm2078_vm12, %vm2079_vm10  ;;  %vm2088_vm4 = vweird.f32 %v4597_v39 }
 0x4e5   : > { %v1994_v19 = vmul.f32 %v4599_v8, %v1993_v35  ;;  %v1750_v34 = vmul.f32 %v1709_v12, %v3033_v57  ;;  %v2071_v1 = vsel %vm4621_vm8, %v4557_v26, %v2067_v10  ;;  %v2310_v56 = vpop.f32.mrf.mxu2  ;;  %v2194_v26 = vadd.f32 %v4646_v16, %v2162_v36  ;;  %vm4678_vm15 = vmor %vm1998_vm14, %vm1999_vm11 }
 0x4e6   : > { %v2075_v13 = vmul.f32 0.5, %v2074_v41  ;;  %v2061_v48 = vsel %vm2060_vm9, %v4564_v33, %v2057_v31  ;;  %v2311_v33 = vadd.f32 %v4262_v45, %v2310_v56  ;;  %v2131_v28 = vmul.f32 %v1991_v55, %v4374_v17 }
 0x4e7   : > { %v1995_v37 = vmul.f32 0.5, %v1994_v19  ;;  %v4639_v18 = vadd.f32 1e-05, %v1750_v34  ;;  %v2138_v60 = vmul.f32 %v2061_v48, %v4364_v32  ;;  %v4650_v15 = vpop.eup %2733  ;;  %v4656_v32 = vld [vmem:[%s4817_s5] ss:$0 sm:$0xff]  ;;  %v2139_v63 = vmul.f32 %v2071_v1, %v4369_v7 }
 0x4e8   : > { %v2076_v61 = vsub.f32 1.5, %v2075_v13  ;;  %v2736_v6 = vpop.eup %2735  ;;  %v2003_v17 = vmul.f32 %v4650_v15, %v4595_v14  ;;  %2384 = vst [vmem:[%s4283_s22 + $0x58] sm:$0xff] %v2311_v33  ;;  %v2163_v21 = vmul.f32 %v4656_v32, %v2131_v28  ;;  %v2226_v0 = vmax.f32 %v2194_v26, 0.0 }
 0x4e9   : > { %v1996_v50 = vsub.f32 1.5, %v1995_v37  ;;  %2737 = vrsqrt.f32 %v4639_v18  ;;  %v2170_v40 = vmul.f32 %v4656_v32, %v2138_v60  ;;  %v2083_v51 = vmul.f32 %v2736_v6, %v4597_v39 }
 0x4ea   : > { %v2077_v22 = vmul.f32 %v4592_v27, %v2076_v61  ;;  %v2004_v2 = vmul.f32 %v4650_v15, %v2003_v17  ;;  %v2171_v9 = vmul.f32 %v4656_v32, %v2139_v63  ;;  %vm2009_vm0 = vweird.f32 %v4650_v15 }
 0x4eb   : > { %v1997_v62 = vmul.f32 %v4599_v8, %v1996_v50  ;;  %v2202_v43 = vadd.f32 %v4646_v16, %v2170_v40  ;;  %v2084_v24 = vmul.f32 %v2736_v6, %v2083_v51  ;;  %v2195_v35 = vadd.f32 %v4646_v16, %v2163_v21  ;;  %vm4701_vm3 = vmor %vm2008_vm2, %vm2009_vm0 }
 0x4ec   : > { %v2005_v11 = vmul.f32 0.5, %v2004_v2  ;;  %v2081_v47 = vsel %vm4671_vm13, %v4592_v27, %v2077_v22  ;;  %2330 = vmatmul.f32.gmra.mxu2 %v2226_v0  ;;  %v2203_v20 = vadd.f32 %v4646_v16, %v2171_v9  ;;  %vm2089_vm1 = vweird.f32 %v2736_v6 }
 0x4ed   : > { %v2234_v30 = vmax.f32 %v2202_v43, 0.0  ;;  %v2001_v58 = vsel %vm4678_vm15, %v4599_v8, %v1997_v62  ;;  %v2085_v52 = vmul.f32 0.5, %v2084_v24  ;;  %v2313_v53 = vpop.f32.mrf.mxu2  ;;  %v2140_v31 = vmul.f32 %v2081_v47, %v4396_v49  ;;  %vm2090_vm5 = vmor %vm2088_vm4, %vm2089_vm1 }
 0x4ee   : > { %v2006_v29 = vsub.f32 1.5, %v2005_v11  ;;  %v2314_v10 = vadd.f32 %v4262_v45, %v2313_v53  ;;  %v2132_v27 = vmul.f32 %v2001_v58, %v4401_v3  ;;  %v2227_v3 = vmax.f32 %v2195_v35, 0.0 }
 0x4ef   : > { %v2738_v25 = vpop.eup %2737  ;;  %2354 = vmatmul.f32.gmra.mxu3 %v2234_v30  ;;  %v2086_v8 = vsub.f32 1.5, %v2085_v52  ;;  %v2235_v49 = vmax.f32 %v2203_v20, 0.0  ;;  %v2172_v13 = vmul.f32 %v4656_v32, %v2140_v31  ;;  %vm2018_vm7 = vweird.f32 %v4639_v18 }
 0x4f0   : > { %v2013_v54 = vmul.f32 %v2738_v25, %v4639_v18  ;;  %v2007_v41 = vmul.f32 %v4650_v15, %v2006_v29  ;;  %2385 = vst [vmem:[%s4283_s22 + $0x60] sm:$0xff] %v2314_v10  ;;  %v2164_v34 = vmul.f32 %v4656_v32, %v2132_v27  ;;  %vm2019_vm6 = vweird.f32 %v2738_v25  ;;  %v4732_v29 = vld [vmem:[%s4820_s8] ss:$0 sm:$0xff] }
 0x4f1   : > { %v2087_v36 = vmul.f32 %v2736_v6, %v2086_v8  ;;  %v2204_v56 = vadd.f32 %v4646_v16, %v2172_v13  ;;  %vm2020_vm8 = vmor %vm2018_vm7, %vm2019_vm6 }
 0x4f2   : > { %v2014_v12 = vmul.f32 %v2738_v25, %v2013_v54  ;;  %v2011_v14 = vsel %vm4701_vm3, %v4650_v15, %v2007_v41  ;;  %v2196_v37 = vadd.f32 %v4646_v16, %v2164_v34 }
 0x4f3   : > { %v2091_v55 = vsel %vm2090_vm5, %v2736_v6, %v2087_v36  ;;  %v2133_v60 = vmul.f32 %v2011_v14, %v4419_v4  ;;  %v2236_v28 = vmax.f32 %v2204_v56, 0.0 }
 0x4f4   : > { %v2015_v59 = vmul.f32 0.5, %v2014_v12  ;;  %2333 = vmatmul.f32.gmra.mxu2 %v2227_v3  ;;  %v2141_v61 = vmul.f32 %v2091_v55, %v4413_v42  ;;  %v2228_v26 = vmax.f32 %v2196_v37, 0.0 }
 0x4f5   : > { %v2316_v1 = vpop.f32.mrf.mxu2  ;;  %v2165_v15 = vmul.f32 %v4656_v32, %v2133_v60 }
 0x4f6   : > { %v2016_v48 = vsub.f32 1.5, %v2015_v59  ;;  %v2317_v39 = vadd.f32 %v4262_v45, %v2316_v1  ;;  %v2173_v45 = vmul.f32 %v4656_v32, %v2141_v61 }
 0x4f7   : > { %2357 = vmatmul.f32.gmra.mxu3 %v2235_v49  ;;  %v2197_v40 = vadd.f32 %v4646_v16, %v2165_v15 }
 0x4f8   : > { %v2017_v33 = vmul.f32 %v2738_v25, %v2016_v48  ;;  %2386 = vst [vmem:[%s4283_s22 + $0x68] sm:$0xff] %v2317_v39  ;;  %v2205_v4 = vadd.f32 %v4646_v16, %v2173_v45 }
 0x4f9   : > { %v2229_v63 = vmax.f32 %v2197_v40, 0.0 }
 0x4fa   : > { %v2021_v50 = vsel %vm2020_vm8, %v2738_v25, %v2017_v33  ;;  %v2237_v6 = vmax.f32 %v2205_v4, 0.0 }
 0x4fb   : > { %v2134_v42 = vmul.f32 %v2021_v50, %v4429_v44 }
 0x4fc   : > { %2336 = vmatmul.f32.gmra.mxu2 %v2228_v26 }
 0x4fd   : > { %v2166_v18 = vmul.f32 %v4656_v32, %v2134_v42 }
 0x4ff   : > { %2360 = vmatmul.f32.gmra.mxu3 %v2236_v28  ;;  %v2198_v22 = vadd.f32 %v4646_v16, %v2166_v18 }
 0x501   : > { %v2230_v17 = vmax.f32 %v2198_v22, 0.0 }
 0x504   : > { %2339 = vmatmul.f32.gmra.mxu2 %v2229_v63 }
 0x507   : > { %2363 = vmatmul.f32.gmra.mxu3 %v2237_v6 }
 0x50c   : > { %2342 = vmatmul.f32.gmra.mxu2 %v2230_v17 }
 0x52f   : > { %v1725_v62 = vpop.xlane.xlu2 %1724 }
 0x530   : > { %v1758_v51 = vmul.f32 %v1725_v62, %v3033_v57 }
 0x532   : > { %v1790_v43 = vadd.f32 1e-05, %v1758_v51 }
 0x534   : > { %2739 = vrsqrt.f32 %v1790_v43  ;;  %vm2098_vm10 = vweird.f32 %v1790_v43 }
 0x53a   : > { %v2740_v7 = vpop.eup %2739 }
 0x53b   : > { %v2093_v2 = vmul.f32 %v2740_v7, %v1790_v43  ;;  %vm2099_vm9 = vweird.f32 %v2740_v7 }
 0x53c   : > { %vm2100_vm11 = vmor %vm2098_vm10, %vm2099_vm9 }
 0x53d   : > { %v2094_v21 = vmul.f32 %v2740_v7, %v2093_v2 }
 0x53f   : > { %v2095_v46 = vmul.f32 0.5, %v2094_v21 }
 0x540   : > { %v1727_v24 = vpop.xlane.xlu1 %1726  ;;  %v1711_v30 = vpop.xlane.xlu0 %1710 }
 0x541   : > { %v2096_v44 = vsub.f32 1.5, %v2095_v46  ;;  %v1759_v0 = vmul.f32 %v1727_v24, %v3033_v57  ;;  %v1751_v11 = vmul.f32 %v1711_v30, %v3033_v57 }
 0x543   : > { %v2097_v9 = vmul.f32 %v2740_v7, %v2096_v44  ;;  %v1791_v58 = vadd.f32 1e-05, %v1759_v0  ;;  %v1783_v47 = vadd.f32 1e-05, %v1751_v11 }
 0x545   : > { %v2101_v25 = vsel %vm2100_vm11, %v2740_v7, %v2097_v9  ;;  %2741 = vrsqrt.f32 %v1791_v58  ;;  %vm2108_vm14 = vweird.f32 %v1791_v58  ;;  %vm2028_vm0 = vweird.f32 %v1783_v47 }
 0x546   : > { %v2142_v52 = vmul.f32 %v2101_v25, %v4443_v38  ;;  %2743 = vrsqrt.f32 %v1783_v47 }
 0x547   : > { %v2319_v53 = vpop.f32.mrf.mxu2 }
 0x548   : > { %v2320_v54 = vadd.f32 %v4732_v29, %v2319_v53  ;;  %v2174_v10 = vmul.f32 %v4656_v32, %v2142_v52 }
 0x54a   : > { %2387 = vst [vmem:[%s4283_s22 + $0x70] sm:$0xff] %v2320_v54  ;;  %v2206_v57 = vadd.f32 %v4646_v16, %v2174_v10 }
 0x54b   : > { %v2742_v35 = vpop.eup %2741 }
 0x54c   : > { %v2238_v8 = vmax.f32 %v2206_v57, 0.0  ;;  %v2744_v20 = vpop.eup %2743  ;;  %v2103_v27 = vmul.f32 %v2742_v35, %v1791_v58  ;;  %vm2109_vm12 = vweird.f32 %v2742_v35 }
 0x54d   : > { %v2023_v31 = vmul.f32 %v2744_v20, %v1783_v47  ;;  %vm2029_vm13 = vweird.f32 %v2744_v20  ;;  %vm2110_vm15 = vmor %vm2108_vm14, %vm2109_vm12 }
 0x54e   : > { %2366 = vmatmul.f32.gmra.mxu3 %v2238_v8  ;;  %v2104_v38 = vmul.f32 %v2742_v35, %v2103_v27  ;;  %vm2030_vm1 = vmor %vm2028_vm0, %vm2029_vm13 }
 0x54f   : > { %v2024_v41 = vmul.f32 %v2744_v20, %v2023_v31 }
 0x550   : > { %v2105_v12 = vmul.f32 0.5, %v2104_v38 }
 0x551   : > { %v2025_v36 = vmul.f32 0.5, %v2024_v41  ;;  %v2322_v59 = vpop.f32.mrf.mxu2 }
 0x552   : > { %v2106_v19 = vsub.f32 1.5, %v2105_v12  ;;  %v2323_v49 = vadd.f32 %v4732_v29, %v2322_v59 }
 0x553   : > { %v2026_v3 = vsub.f32 1.5, %v2025_v36 }
 0x554   : > { %v2107_v34 = vmul.f32 %v2742_v35, %v2106_v19  ;;  %2388 = vst [vmem:[%s4283_s22 + $0x78] sm:$0xff] %v2323_v49 }
 0x555   : > { %v2027_v13 = vmul.f32 %v2744_v20, %v2026_v3 }
 0x556   : > { %v2349_v48 = vpop.f32.mrf.mxu3  ;;  %v2111_v14 = vsel %vm2110_vm15, %v2742_v35, %v2107_v34 }
 0x557   : > { %v2350_v55 = vadd.f32 %v4732_v29, %v2349_v48  ;;  %v2031_v1 = vsel %vm2030_vm1, %v2744_v20, %v2027_v13  ;;  %v2143_v39 = vmul.f32 %v2111_v14, %v4481_v5 }
 0x558   : > { %v2135_v37 = vmul.f32 %v2031_v1, %v4486_v23 }
 0x559   : > { %2397 = vst [vmem:[%s4283_s22 + $0xc0] sm:$0xff] %v2350_v55  ;;  %v2175_v56 = vmul.f32 %v4656_v32, %v2143_v39 }
 0x55a   : > { %v2167_v60 = vmul.f32 %v4656_v32, %v2135_v37 }
 0x55b   : > { %v2207_v61 = vadd.f32 %v4646_v16, %v2175_v56 }
 0x55c   : > { %v2199_v33 = vadd.f32 %v4646_v16, %v2167_v60 }
 0x55d   : > { %v2239_v26 = vmax.f32 %v2207_v61, 0.0 }
 0x55e   : > { %v2231_v28 = vmax.f32 %v2199_v33, 0.0  ;;  %v2352_v15 = vpop.f32.mrf.mxu3 }
 0x55f   : > { %2369 = vmatmul.f32.gmra.mxu3 %v2239_v26  ;;  %v2325_v5 = vpop.f32.mrf.mxu2  ;;  %v2353_v45 = vadd.f32 %v4732_v29, %v2352_v15 }
 0x560   : > { %2345 = vmatmul.f32.gmra.mxu2 %v2231_v28  ;;  %v2326_v23 = vadd.f32 %v4732_v29, %v2325_v5 }
 0x561   : > { %2398 = vst [vmem:[%s4283_s22 + $0xc8] sm:$0xff] %v2353_v45 }
 0x562   : > { %2389 = vst [vmem:[%s4283_s22 + $0x80] sm:$0xff] %v2326_v23 }
 0x567   : > { %v2328_v32 = vpop.f32.mrf.mxu2 }
 0x568   : > { %v2329_v50 = vadd.f32 %v4732_v29, %v2328_v32 }
 0x56a   : > { %2390 = vst [vmem:[%s4283_s22 + $0x88] sm:$0xff] %v2329_v50 }
 0x56f   : > { %v2331_v16 = vpop.f32.mrf.mxu2 }
 0x570   : > { %v2332_v4 = vadd.f32 %v4732_v29, %v2331_v16 }
 0x572   : > { %v2355_v40 = vpop.f32.mrf.mxu3  ;;  %2391 = vst [vmem:[%s4283_s22 + $0x90] sm:$0xff] %v2332_v4 }
 0x573   : > { %v2356_v42 = vadd.f32 %v4732_v29, %v2355_v40 }
 0x575   : > { %2399 = vst [vmem:[%s4283_s22 + $0xd0] sm:$0xff] %v2356_v42 }
 0x577   : > { %v2334_v63 = vpop.f32.mrf.mxu2 }
 0x578   : > { %v2335_v18 = vadd.f32 %v4732_v29, %v2334_v63 }
 0x57a   : > { %v2358_v6 = vpop.f32.mrf.mxu3  ;;  %2392 = vst [vmem:[%s4283_s22 + $0x98] sm:$0xff] %v2335_v18 }
 0x57b   : > { %v2359_v22 = vadd.f32 %v4732_v29, %v2358_v6 }
 0x57d   : > { %2400 = vst [vmem:[%s4283_s22 + $0xd8] sm:$0xff] %v2359_v22 }
 0x57f   : > { %v2337_v17 = vpop.f32.mrf.mxu2 }
 0x580   : > { %v2338_v51 = vadd.f32 %v4732_v29, %v2337_v17 }
 0x582   : > { %v2361_v62 = vpop.f32.mrf.mxu3  ;;  %2393 = vst [vmem:[%s4283_s22 + $0xa0] sm:$0xff] %v2338_v51 }
 0x583   : > { %v2362_v43 = vadd.f32 %v4732_v29, %v2361_v62 }
 0x585   : > { %2401 = vst [vmem:[%s4283_s22 + $0xe0] sm:$0xff] %v2362_v43 }
 0x587   : > { %v2340_v7 = vpop.f32.mrf.mxu2 }
 0x588   : > { %v2341_v21 = vadd.f32 %v4732_v29, %v2340_v7 }
 0x58a   : > { %v2364_v2 = vpop.f32.mrf.mxu3  ;;  %2394 = vst [vmem:[%s4283_s22 + $0xa8] sm:$0xff] %v2341_v21 }
 0x58b   : > { %v2365_v46 = vadd.f32 %v4732_v29, %v2364_v2 }
 0x58d   : > { %2402 = vst [vmem:[%s4283_s22 + $0xe8] sm:$0xff] %v2365_v46 }
 0x58f   : > { %v2343_v44 = vpop.f32.mrf.mxu2 }
 0x590   : > { %v2344_v24 = vadd.f32 %v4732_v29, %v2343_v44 }
 0x592   : > { %2395 = vst [vmem:[%s4283_s22 + $0xb0] sm:$0xff] %v2344_v24 }
 0x5d1   : > { %v2367_v0 = vpop.f32.mrf.mxu3 }
 0x5d2   : > { %v2368_v30 = vadd.f32 %v4732_v29, %v2367_v0 }
 0x5d4   : > { %2403 = vst [vmem:[%s4283_s22 + $0xf0] sm:$0xff] %v2368_v30 }
 0x5e2   : > { %v2370_v9 = vpop.f32.mrf.mxu3 }
 0x5e3   : > { %v2346_v11 = vpop.f32.mrf.mxu2  ;;  %v2371_v58 = vadd.f32 %v4732_v29, %v2370_v9 }
 0x5e4   : > { %v2347_v47 = vadd.f32 %v4732_v29, %v2346_v11 }
 0x5e5   : > { %2404 = vst [vmem:[%s4283_s22 + $0xf8] sm:$0xff] %v2371_v58 }
 0x5e6   : > { %2396 = vst [vmem:[%s4283_s22 + $0xb8] sm:$0xff] %v2347_v47 }
 0x5e7   : > { %2780 = shalt.err (!%p2777_p3)
}
 0x5e8   : > { %s2818_s28 = smov 128   ;;  %s2819_s22 = smov 8  }
 0x5e9   : > { %2568 = dma.vmem_to_hbm [thread:$0]  (%p2908_p5), %s2419_s23, 4096, %s2421_s24, %s2406_s26, %s2818_s28, %s2818_s28, %s2819_s22  }
 0x5ea PF: > { %p2574_p4 = scmp.ge.s32.totalorder %s2815_s12, 2  ;;  %s2435_s21 = sand.u32 1, %s2803_s30  }
 0x5eb   : > { %s2436_s25 = scalar_lea.sflag [#allocation3], %s2435_s21 }
 0x5ec   : > { %p2571_p7 = pnand %p2574_p4, %p2912_p6 }
 0x5ee   : > { %p2572_p8 = pneg %p2571_p7 }
 0x5f0   : > { %2798 = dma.done.wait (%p2572_p8), %s2436_s25, 4096  }
 0x5f1   : > { %2800 = vsyncadd (%p2572_p8), %s2436_s25, 4294963200  ;;  %p19_p9 = scmp.ge.s32.totalorder %s2895_s15, 6   ;;  %s4907_s30 = smov %s2807_s10 }
 0x5f2   : > { %s4908_s10 = smov %s2811_s11  ;;  %s4909_s11 = smov %s2906_s18 }
 0x5f3   : > { %s4910_s12 = smov %s2895_s15  ;;  %21 = sbr.rel (!%p19_p9) target bundleno = 3 (0x3), region = 91 }
 0x5f8   :  { %2442 = vsyncpa [#allocation3], 1 }
 0x5f9   :  { %2444 = vsyncpa [#allocation3 + $0x1], 1 }

</bundles_post_ra>
